<compile_context>
chip_gen: v5e
topology: v5e:2x2
jax: 0.10.0
libtpu: 0.0.40
codegen_flags: <defaults>
</compile_context>

<pallas_src>
import functools

import jax
import jax.numpy as jnp
from jax.experimental import pallas as pl
from jax.experimental.pallas import tpu as pltpu

EPS = 1e-5
SLOPE = 0.01                      # PyTorch LeakyReLU default negative_slope
EXPANSION = 4
ROW_TILE = 512                    # row tile for 1x1-conv matmuls / epilogue
CONV_CHUNK_ROWS = 256             # target output rows per conv3x3 chunk


@functools.lru_cache(maxsize=None)
def _vmem_limit_bytes():
  """Per-generation VMEM budget: ~60% of physical, clamped to [32, 96] MiB."""
  try:
    cap = int(pltpu.get_tpu_info().vmem_capacity_bytes)
  except Exception:                                     # query unavailable
    cap = 64 * 1024 * 1024
  return max(32 * 1024 * 1024, min(96 * 1024 * 1024, int(cap * 0.6)))


def _mosaic_params(n_axes=1):
  return pltpu.CompilerParams(
      dimension_semantics=("parallel",) * n_axes,
      vmem_limit_bytes=_vmem_limit_bytes())


def _row_tile(m):
  return m if m <= ROW_TILE else ROW_TILE


def _leaky(x):
  return jnp.where(x >= 0.0, x, SLOPE * x)


def _stats_block(sums, sumsq, n):
  """Pack per-channel partial (sum, sum_sq) into an (8, n) block."""
  return jnp.concatenate([sums, sumsq, jnp.zeros((6, n), jnp.float32)], axis=0)


# ---------------------------------------------------------------------------
# Pallas kernels
# ---------------------------------------------------------------------------
def matmul_stats_kernel(x_ref, w_ref, scale_ref, shift_ref, y_ref, stats_ref,
                        *, apply_prologue, m_total, tm):
  """Row-tiled (TM,K)@(K,N) bf16 MXU matmul.

  Optional prologue applies the previous layer's folded BatchNorm
  (scale*x + shift) plus LeakyReLU.  Emits the result tile in bf16 and
  per-channel partial (sum, sum_sq) from the f32 accumulator for this layer's
  BatchNorm.  The ragged last tile (cdiv grid) is masked out of the stats.
  """
  x = x_ref[...].astype(jnp.float32)
  if apply_prologue:
    x = _leaky(x * scale_ref[...] + shift_ref[...])
  y = jnp.dot(x.astype(jnp.bfloat16), w_ref[...],
              preferred_element_type=jnp.float32)
  y_ref[...] = y.astype(y_ref.dtype)

  if m_total % tm != 0:                               # ragged last tile
    rows_left = m_total - pl.program_id(0) * tm
    valid = jax.lax.broadcasted_iota(jnp.int32, (tm, 1), 0) < rows_left
    y = jnp.where(valid, y, 0.0)
  n = y.shape[1]
  stats_ref[0] = _stats_block(jnp.sum(y, axis=0, keepdims=True),
                              jnp.sum(y * y, axis=0, keepdims=True), n)


def conv3x3_stats_kernel(x_ref, w_ref, scale_ref, shift_ref, y_ref, stats_ref,
                         *, H, W, C, Cout, stride, chunk_rows):
  """3x3 conv (pad=1) with im2col fused in-kernel.  One grid step = one image.

  The prologue applies the previous BN (scale/shift) + LeakyReLU to the raw
  bf16 conv1 output; the zero halo is built in-registers (no HBM pad pass).
  stride==1: input block (1, H, W, C); 9 shifted-slice accumulating matmuls.
  stride==2: input block (1, H, W/2, 2C) (free pair-merge reshape done by the
             wrapper); 3x2 matmuls against pre-concatenated tap weights so no
             strided loads / lane shuffles are needed.
  Output rows are processed in chunks so the f32 accumulator stays small
  (vreg / MRB resident) instead of round-tripping VMEM 9 times.
  """
  a = x_ref[0].astype(jnp.float32)
  a = _leaky(a * scale_ref[...] + shift_ref[...]).astype(jnp.bfloat16)

  ho = (H - 1) // stride + 1
  wo = (W - 1) // stride + 1

  if stride == 1:
    zc = jnp.zeros((H, 1, C), jnp.bfloat16)
    body = jnp.concatenate([zc, a, zc], axis=1)             # (H, W+2, C)
    wcols, cdim = W + 2, C
  else:
    # Merged input: lanes [0:C) = even source column, [C:2C) = odd column.
    # Padded pair p: phase0 lanes hold padded col 2p, phase1 lanes col 2p+1.
    zc = jnp.zeros((H, 1, C), jnp.bfloat16)
    lo = jnp.concatenate([zc, a[:, :, C:2 * C]], axis=1)    # padded col 2p
    hi = jnp.concatenate([a[:, :, 0:C], zc], axis=1)        # padded col 2p+1
    body = jnp.concatenate([lo, hi], axis=-1)               # (H, W/2+1, 2C)
    wcols, cdim = W // 2 + 1, 2 * C
  zr = jnp.zeros((1, wcols, cdim), jnp.bfloat16)
  padded = jnp.concatenate([zr, body, zr], axis=0)          # (H+2, wcols, cdim)

  wfull = w_ref[...]                                        # bf16, small
  s_acc = jnp.zeros((1, Cout), jnp.float32)
  q_acc = jnp.zeros((1, Cout), jnp.float32)

  for r0 in range(0, ho, chunk_rows):
    rh = min(chunk_rows, ho - r0)
    acc = jnp.zeros((rh * wo, Cout), jnp.float32)
    if stride == 1:
      # TODO(synk): full-width matmul + pltpu.roll realignment would avoid the
      # 9 shifted-slice tap copies entirely.
      for dh in range(3):
        for dw in range(3):
          tap = padded[r0 + dh:r0 + dh + rh, dw:dw + wo, :].reshape(rh * wo, C)
          acc = acc + jnp.dot(tap, wfull[3 * dh + dw],
                              preferred_element_type=jnp.float32)
    else:
      for dh in range(3):
        rows = padded[2 * r0 + dh:2 * r0 + dh + 2 * rh]
        rows = rows.reshape(rh, 2, wcols, cdim)[:, 0]       # every other row
        t0 = rows[:, 0:wo, :].reshape(rh * wo, cdim)        # taps dw=0,1
        t1 = rows[:, 1:wo + 1, :].reshape(rh * wo, cdim)    # tap dw=2
        acc = acc + jnp.dot(t0, wfull[dh, 0],
                            preferred_element_type=jnp.float32)
        acc = acc + jnp.dot(t1, wfull[dh, 1],
                            preferred_element_type=jnp.float32)
    y_ref[0, r0 * wo:(r0 + rh) * wo, :] = acc.astype(y_ref.dtype)
    s_acc = s_acc + jnp.sum(acc, axis=0, keepdims=True)
    q_acc = q_acc + jnp.sum(acc * acc, axis=0, keepdims=True)

  stats_ref[0] = _stats_block(s_acc, q_acc, Cout)


def shortcut_conv_kernel(x_ref, w_ref, y_ref, stats_ref, *, H, W, Cin, Cout,
                         stride):
  """Strided 1x1 projection shortcut.  One grid step = one image.

  The spatial subsample happens in-kernel: rows via a free leading-dim
  reshape, columns via the pair-merged channel layout (phase-0 lanes).
  """
  x = x_ref[0]                                     # (H, W/stride, stride*Cin)
  ho, wo = H // stride, W // stride
  rows = x[0:stride * ho].reshape(ho, stride, wo, stride * Cin)[:, 0]
  sub = rows[:, :, 0:Cin]                          # phase-0 lanes -> x[::s, ::s]
  y = jnp.dot(sub.reshape(ho * wo, Cin).astype(jnp.bfloat16), w_ref[...],
              preferred_element_type=jnp.float32)
  y_ref[0] = y.astype(y_ref.dtype)
  stats_ref[0] = _stats_block(jnp.sum(y, axis=0, keepdims=True),
                              jnp.sum(y * y, axis=0, keepdims=True), Cout)


def bn_residual_lrelu_kernel(y_ref, sc_ref, sy_ref, hy_ref, ss_ref, hs_ref,
                             o_ref):
  """Fused epilogue: BN(conv3) + BN(shortcut) + residual add + LeakyReLU."""
  r = y_ref[...].astype(jnp.float32) * sy_ref[...] + hy_ref[...]
  s = sc_ref[...].astype(jnp.float32) * ss_ref[...] + hs_ref[...]
  o_ref[...] = _leaky(r + s).astype(o_ref.dtype)


# ---------------------------------------------------------------------------
# pallas_call wrappers
# ---------------------------------------------------------------------------
def matmul_stats(x2d, w, scale, shift, *, apply_prologue):
  m, k = x2d.shape
  nout = w.shape[1]
  tm = _row_tile(m)
  g = pl.cdiv(m, tm)
  kern = functools.partial(matmul_stats_kernel, apply_prologue=apply_prologue,
                           m_total=m, tm=tm)
  bytes_acc = (m * k * x2d.dtype.itemsize + k * nout * w.dtype.itemsize
               + m * nout * 2 + g * 8 * nout * 4)
  y, stats = pl.pallas_call(
      kern,
      grid=(g,),
      in_specs=[
          pl.BlockSpec((tm, k), lambda i: (i, 0)),
          pl.BlockSpec((k, nout), lambda i: (0, 0)),
          pl.BlockSpec((1, k), lambda i: (0, 0)),
          pl.BlockSpec((1, k), lambda i: (0, 0)),
      ],
      out_specs=[
          pl.BlockSpec((tm, nout), lambda i: (i, 0)),
          pl.BlockSpec((1, 8, nout), lambda i: (i, 0, 0)),
      ],
      out_shape=[
          jax.ShapeDtypeStruct((m, nout), jnp.bfloat16),
          jax.ShapeDtypeStruct((g, 8, nout), jnp.float32),
      ],
      compiler_params=_mosaic_params(1),
      cost_estimate=pl.CostEstimate(flops=2 * m * k * nout, transcendentals=0,
                                    bytes_accessed=int(bytes_acc)),
  )(x2d, w, scale, shift)
  return y, stats


def conv3x3_stats(a, w2, scale, shift, *, h, w, c, cout, stride):
  n = a.shape[0]
  ho = (h - 1) // stride + 1
  wo = (w - 1) // stride + 1
  chunk = max(1, min(ho, CONV_CHUNK_ROWS // max(wo, 1)))
  kern = functools.partial(conv3x3_stats_kernel, H=h, W=w, C=c, Cout=cout,
                           stride=stride, chunk_rows=chunk)
  cdim = a.shape[-1]
  flops = 2 * n * ho * wo * 9 * c * cout
  bytes_acc = (a.size * a.dtype.itemsize + w2.size * w2.dtype.itemsize
               + n * ho * wo * cout * 2 + n * 8 * cout * 4)
  y2, stats = pl.pallas_call(
      kern,
      grid=(n,),
      in_specs=[
          pl.BlockSpec((1,) + a.shape[1:], lambda i: (i, 0, 0, 0)),
          pl.BlockSpec(w2.shape, lambda i: (0,) * w2.ndim),
          pl.BlockSpec((1, cdim), lambda i: (0, 0)),
          pl.BlockSpec((1, cdim), lambda i: (0, 0)),
      ],
      out_specs=[
          pl.BlockSpec((1, ho * wo, cout), lambda i: (i, 0, 0)),
          pl.BlockSpec((1, 8, cout), lambda i: (i, 0, 0)),
      ],
      out_shape=[
          jax.ShapeDtypeStruct((n, ho * wo, cout), jnp.bfloat16),
          jax.ShapeDtypeStruct((n, 8, cout), jnp.float32),
      ],
      compiler_params=_mosaic_params(1),
      cost_estimate=pl.CostEstimate(flops=flops, transcendentals=0,
                                    bytes_accessed=int(bytes_acc)),
  )(a, w2, scale, shift)
  return y2, stats


def shortcut_conv(x_merged, ws, *, h, w, cin, cexp, stride):
  n = x_merged.shape[0]
  ho, wo = h // stride, w // stride
  kern = functools.partial(shortcut_conv_kernel, H=h, W=w, Cin=cin, Cout=cexp,
                           stride=stride)
  flops = 2 * n * ho * wo * cin * cexp
  bytes_acc = (x_merged.size * x_merged.dtype.itemsize
               + cin * cexp * ws.dtype.itemsize + n * ho * wo * cexp * 2)
  # TODO(synk): for cin >= 128, fetch only x[:, ::2, ::2, :] via the BlockSpec
  # DMA instead of shipping the whole image and subsampling in-kernel.
  y, stats = pl.pallas_call(
      kern,
      grid=(n,),
      in_specs=[
          pl.BlockSpec((1,) + x_merged.shape[1:], lambda i: (i, 0, 0, 0)),
          pl.BlockSpec((cin, cexp), lambda i: (0, 0)),
      ],
      out_specs=[
          pl.BlockSpec((1, ho * wo, cexp), lambda i: (i, 0, 0)),
          pl.BlockSpec((1, 8, cexp), lambda i: (i, 0, 0)),
      ],
      out_shape=[
          jax.ShapeDtypeStruct((n, ho * wo, cexp), jnp.bfloat16),
          jax.ShapeDtypeStruct((n, 8, cexp), jnp.float32),
      ],
      compiler_params=_mosaic_params(1),
      cost_estimate=pl.CostEstimate(flops=flops, transcendentals=0,
                                    bytes_accessed=int(bytes_acc)),
  )(x_merged, ws)
  return y, stats


def bn_residual_lrelu(y3, sc, s3, h3, ss, hs):
  m, c = y3.shape
  tm = _row_tile(m)
  g = pl.cdiv(m, tm)
  bytes_acc = (y3.size * y3.dtype.itemsize + sc.size * sc.dtype.itemsize
               + m * c * 4)
  return pl.pallas_call(
      bn_residual_lrelu_kernel,
      grid=(g,),
      in_specs=[
          pl.BlockSpec((tm, c), lambda i: (i, 0)),
          pl.BlockSpec((tm, c), lambda i: (i, 0)),
          pl.BlockSpec((1, c), lambda i: (0, 0)),
          pl.BlockSpec((1, c), lambda i: (0, 0)),
          pl.BlockSpec((1, c), lambda i: (0, 0)),
          pl.BlockSpec((1, c), lambda i: (0, 0)),
      ],
      out_specs=pl.BlockSpec((tm, c), lambda i: (i, 0)),
      out_shape=jax.ShapeDtypeStruct((m, c), jnp.float32),
      compiler_params=_mosaic_params(1),
      cost_estimate=pl.CostEstimate(flops=5 * m * c, transcendentals=0,
                                    bytes_accessed=int(bytes_acc)),
  )(y3, sc, s3, h3, ss, hs)


# ---------------------------------------------------------------------------
# Glue
# ---------------------------------------------------------------------------
def fold_bn(stats, m_rows, gamma, beta):
  """Fold training-mode BN (batch stats, biased var) into scale/shift."""
  total = jnp.sum(stats, axis=0)                   # (8, C): row0=sum, row1=sum^2
  mean = total[0] / m_rows
  var = jnp.maximum(total[1] / m_rows - mean * mean, 0.0)
  # TODO(synk): switch to centered per-tile partial sums if deep-stage
  # activations develop large means (E[y^2]-mean^2 cancellation).
  scale = gamma * jax.lax.rsqrt(var + EPS)
  shift = beta - mean * scale
  return scale.reshape(1, -1), shift.reshape(1, -1)


def bottleneck_forward(x_nchw, params, *, stride):
  """x_nchw: (N, Cin, H, W) float32 -> (N, 4*Cout, H/s, W/s) float32."""
  assert stride in (1, 2)
  n, cin, h, w = x_nchw.shape
  assert h % stride == 0 and w % stride == 0
  cout = params["w1"].shape[1]
  cexp = cout * EXPANSION

  x = jnp.transpose(x_nchw, (0, 2, 3, 1))          # NHWC
  # TODO(synk): keep NHWC across blocks in a full network so the entry/exit
  # transposes (full-tensor XLA copies) disappear.

  m1 = n * h * w
  ones_c = jnp.ones((1, cin), jnp.float32)
  zeros_c = jnp.zeros((1, cin), jnp.float32)

  # ---- conv1: 1x1 (Cin -> Cout), bf16 output + BN1 partial stats ----------
  y1, st1 = matmul_stats(x.reshape(m1, cin), params["w1"], ones_c, zeros_c,
                         apply_prologue=False)
  scale1, shift1 = fold_bn(st1, m1, params["g1"], params["b1"])

  # ---- conv2: 3x3, stride s, pad 1.  BN1 + LeakyReLU fused as prologue ----
  ho = (h - 1) // stride + 1
  wo = (w - 1) // stride + 1
  if stride == 1:
    a_in = y1.reshape(n, h, w, cout)
    w2_in = params["w2"]
    sc_in, sh_in = scale1, shift1
  else:
    # Free pair-merge reshape: (W, C) -> (W/2, 2C); lanes [0:C)=even col,
    # [C:2C)=odd col.  The kernel re-phases it against the zero halo.
    a_in = y1.reshape(n, h, w // 2, 2 * cout)
    w2 = params["w2"]
    zeros_w = jnp.zeros((cout, cout), jnp.bfloat16)
    wa = jnp.stack([jnp.concatenate([w2[3 * d + 0], w2[3 * d + 1]], axis=0)
                    for d in range(3)])
    wb = jnp.stack([jnp.concatenate([w2[3 * d + 2], zeros_w], axis=0)
                    for d in range(3)])
    w2_in = jnp.stack([wa, wb], axis=1)            # (3, 2, 2C, Cout)
    sc_in = jnp.tile(scale1, (1, 2))
    sh_in = jnp.tile(shift1, (1, 2))
  y2, st2 = conv3x3_stats(a_in, w2_in, sc_in, sh_in, h=h, w=w, c=cout,
                          cout=cout, stride=stride)         # (n, ho*wo, cout)
  m2 = n * ho * wo
  scale2, shift2 = fold_bn(st2, m2, params["g2"], params["b2"])

  # ---- conv3: 1x1 (Cout -> 4*Cout).  BN2 + LeakyReLU fused as prologue ----
  y3, st3 = matmul_stats(y2.reshape(m2, cout), params["w3"], scale2, shift2,
                         apply_prologue=True)
  scale3, shift3 = fold_bn(st3, m2, params["g3"], params["b3"])

  # ---- shortcut -----------------------------------------------------------
  if stride == 1 and cin == cexp:
    short_act = x.reshape(m2, cexp)                # identity (stays f32)
    scale_s = jnp.ones((1, cexp), jnp.float32)
    shift_s = jnp.zeros((1, cexp), jnp.float32)
  else:
    if stride == 1:
      ysc, sts = matmul_stats(x.reshape(m1, cin), params["ws"], ones_c,
                              zeros_c, apply_prologue=False)
    else:
      x_merged = x.reshape(n, h, w // 2, 2 * cin)  # free reshape
      ysc, sts = shortcut_conv(x_merged, params["ws"], h=h, w=w, cin=cin,
                               cexp=cexp, stride=stride)
    short_act = ysc.reshape(m2, cexp)
    scale_s, shift_s = fold_bn(sts, m2, params["gs"], params["bs"])

  # ---- fused: BN3 + BN_shortcut + residual add + LeakyReLU ----------------
  out2d = bn_residual_lrelu(y3, short_act, scale3, shift3, scale_s, shift_s)
  out = out2d.reshape(n, ho, wo, cexp)
  return jnp.transpose(out, (0, 3, 1, 2))          # back to NCHW


# ---------------------------------------------------------------------------
# Parameters (He init, weights stored bf16 for the MXU)
# ---------------------------------------------------------------------------
def init_params(key, in_channels, out_channels):
  cexp = out_channels * EXPANSION
  k1, k2, k3, ks = jax.random.split(key, 4)

  def he(k, shape, fan_in):
    wgt = jax.random.normal(k, shape, jnp.float32) * jnp.sqrt(2.0 / fan_in)
    return wgt.astype(jnp.bfloat16)

  return {
      "w1": he(k1, (in_channels, out_channels), in_channels),
      # 3x3 weight stored tap-major: (kh*3+kw, Cin, Cout)
      "w2": he(k2, (9, out_channels, out_channels), 9 * out_channels),
      "w3": he(k3, (out_channels, cexp), out_channels),
      "ws": he(ks, (in_channels, cexp), in_channels),
      "g1": jnp.ones((out_channels,), jnp.float32),
      "b1": jnp.zeros((out_channels,), jnp.float32),
      "g2": jnp.ones((out_channels,), jnp.float32),
      "b2": jnp.zeros((out_channels,), jnp.float32),
      "g3": jnp.ones((cexp,), jnp.float32),
      "b3": jnp.zeros((cexp,), jnp.float32),
      "gs": jnp.ones((cexp,), jnp.float32),
      "bs": jnp.zeros((cexp,), jnp.float32),
  }


# ---------------------------------------------------------------------------
# Pure-JAX reference (matches the kernel's bf16 rounding points)
# ---------------------------------------------------------------------------
def reference_forward(x_nchw, params, *, stride):
  f32 = jnp.float32
  hi = jax.lax.Precision.HIGHEST

  def q(a):
    return a.astype(jnp.bfloat16).astype(f32)

  def bn_q(y, g, b):
    # BN folded from f32 statistics, applied to the bf16-stored activation.
    axes = tuple(range(y.ndim - 1))
    mean = jnp.mean(y, axis=axes)
    var = jnp.mean(jnp.square(y - mean), axis=axes)
    scale = g * jax.lax.rsqrt(var + EPS)
    shift = b - mean * scale
    return q(y) * scale + shift

  def lrelu(y):
    return jnp.where(y >= 0, y, SLOPE * y)

  n, cin, h, w = x_nchw.shape
  cout = params["w1"].shape[1]
  cexp = cout * EXPANSION
  x = jnp.transpose(x_nchw, (0, 2, 3, 1))
  y1 = jnp.einsum("nhwc,cd->nhwd", q(x), params["w1"].astype(f32),
                  precision=hi)
  a1 = lrelu(bn_q(y1, params["g1"], params["b1"]))
  w2 = params["w2"].astype(f32).reshape(3, 3, cout, cout)
  y2 = jax.lax.conv_general_dilated(
      q(a1), w2, (stride, stride), ((1, 1), (1, 1)),
      dimension_numbers=("NHWC", "HWIO", "NHWC"), precision=hi)
  a2 = lrelu(bn_q(y2, params["g2"], params["b2"]))
  y3 = jnp.einsum("nhwc,cd->nhwd", q(a2), params["w3"].astype(f32),
                  precision=hi)
  r = bn_q(y3, params["g3"], params["b3"])
  if stride == 1 and cin == cexp:
    s = x
  else:
    xs = x[:, ::stride, ::stride, :]
    ys = jnp.einsum("nhwc,cd->nhwd", q(xs), params["ws"].astype(f32),
                    precision=hi)
    s = bn_q(ys, params["gs"], params["bs"])
  return jnp.transpose(lrelu(r + s), (0, 3, 1, 2))


if __name__ == "__main__":
  key = jax.random.PRNGKey(0)

  def run_case(batch, cin, cout, spatial, stride, kk):
    kx, kp = jax.random.split(kk)
    x = jax.random.normal(kx, (batch, cin, spatial, spatial), jnp.float32)
    params = init_params(kp, cin, cout)
    fwd = jax.jit(functools.partial(bottleneck_forward, stride=stride))
    out = fwd(x, params)
    jax.block_until_ready(out)
    expected = (batch, cout * EXPANSION, spatial // stride, spatial // stride)
    assert out.shape == expected, (out.shape, expected)
    assert bool(jnp.isfinite(out).all())
    ref = reference_forward(x, params, stride=stride)
    err = float(jnp.max(jnp.abs(out - ref)))
    assert err < 1e-2, f"max abs err {err}"

  k1, k2, k3 = jax.random.split(key, 3)
  run_case(2, 4, 4, 16, 2, k1)    # projection shortcut, strided 3x3 conv
  run_case(2, 16, 4, 8, 1, k2)    # identity shortcut, stride-1 3x3 conv
  run_case(2, 8, 4, 8, 1, k3)     # stride-1 projection shortcut
  print("KERNEL_OK")
</pallas_src>

<mosaic_0001>
module attributes {stable_mosaic.version = 11 : i64} {
  func.func @matmul_stats_kernel(%arg0: i32, %arg1: memref<512x4xf32, #tpu.memory_space<vmem>>, %arg2: memref<4x4xbf16, #tpu.memory_space<vmem>>, %arg3: memref<1x4xf32, #tpu.memory_space<vmem>>, %arg4: memref<1x4xf32, #tpu.memory_space<vmem>>, %arg5: memref<512x4xbf16, #tpu.memory_space<vmem>>, %arg6: memref<1x8x4xf32, #tpu.memory_space<vmem>>) attributes {dimension_semantics = [#tpu.dimension_semantics<parallel>], iteration_bounds = array<i64: 1>, scalar_prefetch = 0 : i64, scratch_operands = 0 : i64, tpu.core_type = #tpu.core_type<tc>, window_params = [{transform_indices = @transform_0, window_bounds = array<i64: 512, 4>}, {pipeline_mode = #tpu.pipeline_mode<synchronous>, transform_indices = @transform_1, window_bounds = array<i64: 4, 4>}, {pipeline_mode = #tpu.pipeline_mode<synchronous>, transform_indices = @transform_2, window_bounds = array<i64: 1, 4>}, {pipeline_mode = #tpu.pipeline_mode<synchronous>, transform_indices = @transform_3, window_bounds = array<i64: 1, 4>}, {transform_indices = @transform_4, window_bounds = array<i64: 512, 4>}, {transform_indices = @transform_5, window_bounds = array<i64: 1, 8, 4>}]} {
    %c0 = arith.constant 0 : index
    %c0_0 = arith.constant 0 : index
    %0 = vector.load %arg1[%c0, %c0_0] : memref<512x4xf32, #tpu.memory_space<vmem>>, vector<512x4xf32>
    %1 = arith.truncf %0 : vector<512x4xf32> to vector<512x4xbf16>
    %c0_1 = arith.constant 0 : index
    %c0_2 = arith.constant 0 : index
    %2 = vector.load %arg2[%c0_1, %c0_2] : memref<4x4xbf16, #tpu.memory_space<vmem>>, vector<4x4xbf16>
    %cst = arith.constant dense<0.000000e+00> : vector<512x4xf32>
    %3 = tpu.matmul %1, %2, %cst {dimension_numbers = #tpu.dot_dimension_numbers<[1], [0], [0], [1], [0, 0, 1, 1], [], []>} : vector<512x4xbf16>, vector<4x4xbf16>, vector<512x4xf32> -> vector<512x4xf32>
    %4 = arith.truncf %3 : vector<512x4xf32> to vector<512x4xbf16>
    %c0_3 = arith.constant 0 : index
    %c0_4 = arith.constant 0 : index
    %5 = vector.load %arg5[%c0_3, %c0_4] : memref<512x4xbf16, #tpu.memory_space<vmem>>, vector<512x4xbf16>
    tpu.vector_store %arg5[%c0_3, %c0_4], %4 {strides = array<i32>} : memref<512x4xbf16, #tpu.memory_space<vmem>>, vector<512x4xbf16>,
    %cst_5 = arith.constant dense<0.000000e+00> : vector<4xf32>
    %6 = vector.multi_reduction <add>, %3, %cst_5 [0] : vector<512x4xf32> to vector<4xf32>
    %7 = vector.shape_cast %6 : vector<4xf32> to vector<1x4xf32>
    %8 = arith.mulf %3, %3 : vector<512x4xf32>
    %cst_6 = arith.constant dense<0.000000e+00> : vector<4xf32>
    %9 = vector.multi_reduction <add>, %8, %cst_6 [0] : vector<512x4xf32> to vector<4xf32>
    %10 = vector.shape_cast %9 : vector<4xf32> to vector<1x4xf32>
    %cst_7 = arith.constant 0.000000e+00 : f32
    %11 = vector.broadcast %cst_7 : f32 to vector<6x4xf32>
    %12 = tpu.concatenate %7, %10, %11 in 0 : vector<1x4xf32>, vector<1x4xf32>, vector<6x4xf32> -> vector<8x4xf32>
    %c0_8 = arith.constant 0 : index
    %c0_9 = arith.constant 0 : index
    %c0_10 = arith.constant 0 : index
    %13 = vector.load %arg6[%c0_8, %c0_9, %c0_10] : memref<1x8x4xf32, #tpu.memory_space<vmem>>, vector<1x8x4xf32>
    %14 = vector.shape_cast %13 : vector<1x8x4xf32> to vector<8x4xf32>
    %15 = vector.shape_cast %12 : vector<8x4xf32> to vector<1x8x4xf32>
    tpu.vector_store %arg6[%c0_8, %c0_9, %c0_10], %15 {strides = array<i32>} : memref<1x8x4xf32, #tpu.memory_space<vmem>>, vector<1x8x4xf32>,
    return
  }
  func.func @transform_0(%arg0: i32) -> (i32, i32) {
    %c0_i32 = arith.constant 0 : i32
    %c0_i32_0 = arith.constant 0 : i32
    return %arg0, %c0_i32 : i32, i32
  }
  func.func @transform_1(%arg0: i32) -> (i32, i32) {
    %c0_i32 = arith.constant 0 : i32
    %c0_i32_0 = arith.constant 0 : i32
    %c0_i32_1 = arith.constant 0 : i32
    return %c0_i32, %c0_i32_0 : i32, i32
  }
  func.func @transform_2(%arg0: i32) -> (i32, i32) {
    %c0_i32 = arith.constant 0 : i32
    %c0_i32_0 = arith.constant 0 : i32
    %c0_i32_1 = arith.constant 0 : i32
    return %c0_i32, %c0_i32_0 : i32, i32
  }
  func.func @transform_3(%arg0: i32) -> (i32, i32) {
    %c0_i32 = arith.constant 0 : i32
    %c0_i32_0 = arith.constant 0 : i32
    %c0_i32_1 = arith.constant 0 : i32
    return %c0_i32, %c0_i32_0 : i32, i32
  }
  func.func @transform_4(%arg0: i32) -> (i32, i32) {
    %c0_i32 = arith.constant 0 : i32
    %c0_i32_0 = arith.constant 0 : i32
    return %arg0, %c0_i32 : i32, i32
  }
  func.func @transform_5(%arg0: i32) -> (i32, i32, i32) {
    %c0_i32 = arith.constant 0 : i32
    %c0_i32_0 = arith.constant 0 : i32
    %c0_i32_1 = arith.constant 0 : i32
    return %arg0, %c0_i32, %c0_i32_0 : i32, i32, i32
  }
}

module attributes {stable_mosaic.version = 11 : i64} {
  func.func @matmul_stats_kernel(%arg0: i32, %arg1: memref<128x4xbf16, #tpu.memory_space<vmem>>, %arg2: memref<4x16xbf16, #tpu.memory_space<vmem>>, %arg3: memref<1x4xf32, #tpu.memory_space<vmem>>, %arg4: memref<1x4xf32, #tpu.memory_space<vmem>>, %arg5: memref<128x16xbf16, #tpu.memory_space<vmem>>, %arg6: memref<1x8x16xf32, #tpu.memory_space<vmem>>) attributes {dimension_semantics = [#tpu.dimension_semantics<parallel>], iteration_bounds = array<i64: 1>, scalar_prefetch = 0 : i64, scratch_operands = 0 : i64, tpu.core_type = #tpu.core_type<tc>, window_params = [{transform_indices = @transform_0, window_bounds = array<i64: 128, 4>}, {pipeline_mode = #tpu.pipeline_mode<synchronous>, transform_indices = @transform_1, window_bounds = array<i64: 4, 16>}, {pipeline_mode = #tpu.pipeline_mode<synchronous>, transform_indices = @transform_2, window_bounds = array<i64: 1, 4>}, {pipeline_mode = #tpu.pipeline_mode<synchronous>, transform_indices = @transform_3, window_bounds = array<i64: 1, 4>}, {transform_indices = @transform_4, window_bounds = array<i64: 128, 16>}, {transform_indices = @transform_5, window_bounds = array<i64: 1, 8, 16>}]} {
    %c0 = arith.constant 0 : index
    %c0_0 = arith.constant 0 : index
    %0 = vector.load %arg1[%c0, %c0_0] : memref<128x4xbf16, #tpu.memory_space<vmem>>, vector<128x4xbf16>
    %1 = arith.extf %0 : vector<128x4xbf16> to vector<128x4xf32>
    %c0_1 = arith.constant 0 : index
    %c0_2 = arith.constant 0 : index
    %2 = vector.load %arg3[%c0_1, %c0_2] : memref<1x4xf32, #tpu.memory_space<vmem>>, vector<1x4xf32>
    %3 = vector.broadcast %2 : vector<1x4xf32> to vector<128x4xf32>
    %4 = arith.mulf %1, %3 : vector<128x4xf32>
    %c0_3 = arith.constant 0 : index
    %c0_4 = arith.constant 0 : index
    %5 = vector.load %arg4[%c0_3, %c0_4] : memref<1x4xf32, #tpu.memory_space<vmem>>, vector<1x4xf32>
    %6 = vector.broadcast %5 : vector<1x4xf32> to vector<128x4xf32>
    %7 = arith.addf %4, %6 : vector<128x4xf32>
    %cst = arith.constant 0.000000e+00 : f32
    %8 = vector.broadcast %cst : f32 to vector<128x4xf32>
    %9 = arith.cmpf oge, %7, %8 : vector<128x4xf32>
    %cst_5 = arith.constant 0.00999999977 : f32
    %10 = vector.broadcast %cst_5 : f32 to vector<128x4xf32>
    %11 = arith.mulf %10, %7 : vector<128x4xf32>
    %12 = arith.select %9, %7, %11 : vector<128x4xi1>, vector<128x4xf32>
    %13 = arith.truncf %12 : vector<128x4xf32> to vector<128x4xbf16>
    %c0_6 = arith.constant 0 : index
    %c0_7 = arith.constant 0 : index
    %14 = vector.load %arg2[%c0_6, %c0_7] : memref<4x16xbf16, #tpu.memory_space<vmem>>, vector<4x16xbf16>
    %cst_8 = arith.constant dense<0.000000e+00> : vector<128x16xf32>
    %15 = tpu.matmul %13, %14, %cst_8 {dimension_numbers = #tpu.dot_dimension_numbers<[1], [0], [0], [1], [0, 0, 1, 1], [], []>} : vector<128x4xbf16>, vector<4x16xbf16>, vector<128x16xf32> -> vector<128x16xf32>
    %16 = arith.truncf %15 : vector<128x16xf32> to vector<128x16xbf16>
    %c0_9 = arith.constant 0 : index
    %c0_10 = arith.constant 0 : index
    %17 = vector.load %arg5[%c0_9, %c0_10] : memref<128x16xbf16, #tpu.memory_space<vmem>>, vector<128x16xbf16>
    tpu.vector_store %arg5[%c0_9, %c0_10], %16 {strides = array<i32>} : memref<128x16xbf16, #tpu.memory_space<vmem>>, vector<128x16xbf16>,
    %cst_11 = arith.constant dense<0.000000e+00> : vector<16xf32>
    %18 = vector.multi_reduction <add>, %15, %cst_11 [0] : vector<128x16xf32> to vector<16xf32>
    %19 = vector.shape_cast %18 : vector<16xf32> to vector<1x16xf32>
    %20 = arith.mulf %15, %15 : vector<128x16xf32>
    %cst_12 = arith.constant dense<0.000000e+00> : vector<16xf32>
    %21 = vector.multi_reduction <add>, %20, %cst_12 [0] : vector<128x16xf32> to vector<16xf32>
    %22 = vector.shape_cast %21 : vector<16xf32> to vector<1x16xf32>
    %cst_13 = arith.constant 0.000000e+00 : f32
    %23 = vector.broadcast %cst_13 : f32 to vector<6x16xf32>
    %24 = tpu.concatenate %19, %22, %23 in 0 : vector<1x16xf32>, vector<1x16xf32>, vector<6x16xf32> -> vector<8x16xf32>
    %c0_14 = arith.constant 0 : index
    %c0_15 = arith.constant 0 : index
    %c0_16 = arith.constant 0 : index
    %25 = vector.load %arg6[%c0_14, %c0_15, %c0_16] : memref<1x8x16xf32, #tpu.memory_space<vmem>>, vector<1x8x16xf32>
    %26 = vector.shape_cast %25 : vector<1x8x16xf32> to vector<8x16xf32>
    %27 = vector.shape_cast %24 : vector<8x16xf32> to vector<1x8x16xf32>
    tpu.vector_store %arg6[%c0_14, %c0_15, %c0_16], %27 {strides = array<i32>} : memref<1x8x16xf32, #tpu.memory_space<vmem>>, vector<1x8x16xf32>,
    return
  }
  func.func @transform_0(%arg0: i32) -> (i32, i32) {
    %c0_i32 = arith.constant 0 : i32
    %c0_i32_0 = arith.constant 0 : i32
    return %arg0, %c0_i32 : i32, i32
  }
  func.func @transform_1(%arg0: i32) -> (i32, i32) {
    %c0_i32 = arith.constant 0 : i32
    %c0_i32_0 = arith.constant 0 : i32
    %c0_i32_1 = arith.constant 0 : i32
    return %c0_i32, %c0_i32_0 : i32, i32
  }
  func.func @transform_2(%arg0: i32) -> (i32, i32) {
    %c0_i32 = arith.constant 0 : i32
    %c0_i32_0 = arith.constant 0 : i32
    %c0_i32_1 = arith.constant 0 : i32
    return %c0_i32, %c0_i32_0 : i32, i32
  }
  func.func @transform_3(%arg0: i32) -> (i32, i32) {
    %c0_i32 = arith.constant 0 : i32
    %c0_i32_0 = arith.constant 0 : i32
    %c0_i32_1 = arith.constant 0 : i32
    return %c0_i32, %c0_i32_0 : i32, i32
  }
  func.func @transform_4(%arg0: i32) -> (i32, i32) {
    %c0_i32 = arith.constant 0 : i32
    %c0_i32_0 = arith.constant 0 : i32
    return %arg0, %c0_i32 : i32, i32
  }
  func.func @transform_5(%arg0: i32) -> (i32, i32, i32) {
    %c0_i32 = arith.constant 0 : i32
    %c0_i32_0 = arith.constant 0 : i32
    %c0_i32_1 = arith.constant 0 : i32
    return %arg0, %c0_i32, %c0_i32_0 : i32, i32, i32
  }
}

module attributes {stable_mosaic.version = 11 : i64} {
  func.func @conv3x3_stats_kernel(%arg0: i32, %arg1: memref<1x16x8x8xbf16, #tpu.memory_space<vmem>>, %arg2: memref<3x2x8x4xbf16, #tpu.memory_space<vmem>>, %arg3: memref<1x8xf32, #tpu.memory_space<vmem>>, %arg4: memref<1x8xf32, #tpu.memory_space<vmem>>, %arg5: memref<1x64x4xbf16, #tpu.memory_space<vmem>>, %arg6: memref<1x8x4xf32, #tpu.memory_space<vmem>>) attributes {dimension_semantics = [#tpu.dimension_semantics<parallel>], iteration_bounds = array<i64: 2>, scalar_prefetch = 0 : i64, scratch_operands = 0 : i64, tpu.core_type = #tpu.core_type<tc>, window_params = [{transform_indices = @transform_0, window_bounds = array<i64: 1, 16, 8, 8>}, {pipeline_mode = #tpu.pipeline_mode<synchronous>, transform_indices = @transform_1, window_bounds = array<i64: 3, 2, 8, 4>}, {pipeline_mode = #tpu.pipeline_mode<synchronous>, transform_indices = @transform_2, window_bounds = array<i64: 1, 8>}, {pipeline_mode = #tpu.pipeline_mode<synchronous>, transform_indices = @transform_3, window_bounds = array<i64: 1, 8>}, {transform_indices = @transform_4, window_bounds = array<i64: 1, 64, 4>}, {transform_indices = @transform_5, window_bounds = array<i64: 1, 8, 4>}]} {
    %c0 = arith.constant 0 : index
    %c0_0 = arith.constant 0 : index
    %c0_1 = arith.constant 0 : index
    %c0_2 = arith.constant 0 : index
    %0 = vector.load %arg1[%c0, %c0_0, %c0_1, %c0_2] : memref<1x16x8x8xbf16, #tpu.memory_space<vmem>>, vector<1x16x8x8xbf16>
    %1 = vector.shape_cast %0 : vector<1x16x8x8xbf16> to vector<16x8x8xbf16>
    %2 = arith.extf %1 : vector<16x8x8xbf16> to vector<16x8x8xf32>
    %c0_3 = arith.constant 0 : index
    %c0_4 = arith.constant 0 : index
    %3 = vector.load %arg3[%c0_3, %c0_4] : memref<1x8xf32, #tpu.memory_space<vmem>>, vector<1x8xf32>
    %4 = vector.shape_cast %3 : vector<1x8xf32> to vector<1x1x8xf32>
    %5 = vector.broadcast %4 : vector<1x1x8xf32> to vector<16x8x8xf32>
    %6 = arith.mulf %2, %5 : vector<16x8x8xf32>
    %c0_5 = arith.constant 0 : index
    %c0_6 = arith.constant 0 : index
    %7 = vector.load %arg4[%c0_5, %c0_6] : memref<1x8xf32, #tpu.memory_space<vmem>>, vector<1x8xf32>
    %8 = vector.shape_cast %7 : vector<1x8xf32> to vector<1x1x8xf32>
    %9 = vector.broadcast %8 : vector<1x1x8xf32> to vector<16x8x8xf32>
    %10 = arith.addf %6, %9 : vector<16x8x8xf32>
    %cst = arith.constant 0.000000e+00 : f32
    %11 = vector.broadcast %cst : f32 to vector<16x8x8xf32>
    %12 = arith.cmpf oge, %10, %11 : vector<16x8x8xf32>
    %cst_7 = arith.constant 0.00999999977 : f32
    %13 = vector.broadcast %cst_7 : f32 to vector<16x8x8xf32>
    %14 = arith.mulf %13, %10 : vector<16x8x8xf32>
    %15 = arith.select %12, %10, %14 : vector<16x8x8xi1>, vector<16x8x8xf32>
    %16 = arith.truncf %15 : vector<16x8x8xf32> to vector<16x8x8xbf16>
    %cst_8 = arith.constant 0.000000e+00 : bf16
    %17 = vector.broadcast %cst_8 : bf16 to vector<16x1x4xbf16>
    %18 = vector.extract_strided_slice %16 {offsets = [0, 0, 4], sizes = [16, 8, 4], strides = [1, 1, 1]} : vector<16x8x8xbf16> to vector<16x8x4xbf16>
    %19 = tpu.concatenate %17, %18 in 1 : vector<16x1x4xbf16>, vector<16x8x4xbf16> -> vector<16x9x4xbf16>
    %20 = vector.extract_strided_slice %16 {offsets = [0, 0, 0], sizes = [16, 8, 4], strides = [1, 1, 1]} : vector<16x8x8xbf16> to vector<16x8x4xbf16>
    %21 = tpu.concatenate %20, %17 in 1 : vector<16x8x4xbf16>, vector<16x1x4xbf16> -> vector<16x9x4xbf16>
    %22 = tpu.concatenate %19, %21 in 2 : vector<16x9x4xbf16>, vector<16x9x4xbf16> -> vector<16x9x8xbf16>
    %cst_9 = arith.constant 0.000000e+00 : bf16
    %23 = vector.broadcast %cst_9 : bf16 to vector<1x9x8xbf16>
    %24 = tpu.concatenate %23, %22, %23 in 0 : vector<1x9x8xbf16>, vector<16x9x8xbf16>, vector<1x9x8xbf16> -> vector<18x9x8xbf16>
    %c0_10 = arith.constant 0 : index
    %c0_11 = arith.constant 0 : index
    %c0_12 = arith.constant 0 : index
    %c0_13 = arith.constant 0 : index
    %25 = vector.load %arg2[%c0_10, %c0_11, %c0_12, %c0_13] : memref<3x2x8x4xbf16, #tpu.memory_space<vmem>>, vector<3x2x8x4xbf16>
    %cst_14 = arith.constant 0.000000e+00 : f32
    %26 = vector.broadcast %cst_14 : f32 to vector<1x4xf32>
    %cst_15 = arith.constant 0.000000e+00 : f32
    %27 = vector.broadcast %cst_15 : f32 to vector<1x4xf32>
    %cst_16 = arith.constant 0.000000e+00 : f32
    %28 = vector.broadcast %cst_16 : f32 to vector<64x4xf32>
    %29 = vector.extract_strided_slice %24 {offsets = [0, 0, 0], sizes = [16, 9, 8], strides = [1, 1, 1]} : vector<18x9x8xbf16> to vector<16x9x8xbf16>
    %30 = vector.shape_cast %29 : vector<16x9x8xbf16> to vector<8x2x9x8xbf16>
    %31 = vector.extract_strided_slice %30 {offsets = [0, 0, 0, 0], sizes = [8, 1, 9, 8], strides = [1, 1, 1, 1]} : vector<8x2x9x8xbf16> to vector<8x1x9x8xbf16>
    %32 = vector.shape_cast %31 : vector<8x1x9x8xbf16> to vector<8x9x8xbf16>
    %33 = vector.extract_strided_slice %32 {offsets = [0, 0, 0], sizes = [8, 8, 8], strides = [1, 1, 1]} : vector<8x9x8xbf16> to vector<8x8x8xbf16>
    %34 = vector.shape_cast %33 : vector<8x8x8xbf16> to vector<64x8xbf16>
    %35 = vector.extract_strided_slice %32 {offsets = [0, 1, 0], sizes = [8, 8, 8], strides = [1, 1, 1]} : vector<8x9x8xbf16> to vector<8x8x8xbf16>
    %36 = vector.shape_cast %35 : vector<8x8x8xbf16> to vector<64x8xbf16>
    %37 = vector.extract_strided_slice %25 {offsets = [0, 0, 0, 0], sizes = [1, 1, 8, 4], strides = [1, 1, 1, 1]} : vector<3x2x8x4xbf16> to vector<1x1x8x4xbf16>
    %38 = vector.shape_cast %37 : vector<1x1x8x4xbf16> to vector<8x4xbf16>
    %cst_17 = arith.constant dense<0.000000e+00> : vector<64x4xf32>
    %39 = tpu.matmul %34, %38, %cst_17 {dimension_numbers = #tpu.dot_dimension_numbers<[1], [0], [0], [1], [0, 0, 1, 1], [], []>} : vector<64x8xbf16>, vector<8x4xbf16>, vector<64x4xf32> -> vector<64x4xf32>
    %40 = arith.addf %28, %39 : vector<64x4xf32>
    %41 = vector.extract_strided_slice %25 {offsets = [0, 1, 0, 0], sizes = [1, 1, 8, 4], strides = [1, 1, 1, 1]} : vector<3x2x8x4xbf16> to vector<1x1x8x4xbf16>
    %42 = vector.shape_cast %41 : vector<1x1x8x4xbf16> to vector<8x4xbf16>
    %cst_18 = arith.constant dense<0.000000e+00> : vector<64x4xf32>
    %43 = tpu.matmul %36, %42, %cst_18 {dimension_numbers = #tpu.dot_dimension_numbers<[1], [0], [0], [1], [0, 0, 1, 1], [], []>} : vector<64x8xbf16>, vector<8x4xbf16>, vector<64x4xf32> -> vector<64x4xf32>
    %44 = arith.addf %40, %43 : vector<64x4xf32>
    %45 = vector.extract_strided_slice %24 {offsets = [1, 0, 0], sizes = [16, 9, 8], strides = [1, 1, 1]} : vector<18x9x8xbf16> to vector<16x9x8xbf16>
    %46 = vector.shape_cast %45 : vector<16x9x8xbf16> to vector<8x2x9x8xbf16>
    %47 = vector.extract_strided_slice %46 {offsets = [0, 0, 0, 0], sizes = [8, 1, 9, 8], strides = [1, 1, 1, 1]} : vector<8x2x9x8xbf16> to vector<8x1x9x8xbf16>
    %48 = vector.shape_cast %47 : vector<8x1x9x8xbf16> to vector<8x9x8xbf16>
    %49 = vector.extract_strided_slice %48 {offsets = [0, 0, 0], sizes = [8, 8, 8], strides = [1, 1, 1]} : vector<8x9x8xbf16> to vector<8x8x8xbf16>
    %50 = vector.shape_cast %49 : vector<8x8x8xbf16> to vector<64x8xbf16>
    %51 = vector.extract_strided_slice %48 {offsets = [0, 1, 0], sizes = [8, 8, 8], strides = [1, 1, 1]} : vector<8x9x8xbf16> to vector<8x8x8xbf16>
    %52 = vector.shape_cast %51 : vector<8x8x8xbf16> to vector<64x8xbf16>
    %53 = vector.extract_strided_slice %25 {offsets = [1, 0, 0, 0], sizes = [1, 1, 8, 4], strides = [1, 1, 1, 1]} : vector<3x2x8x4xbf16> to vector<1x1x8x4xbf16>
    %54 = vector.shape_cast %53 : vector<1x1x8x4xbf16> to vector<8x4xbf16>
    %cst_19 = arith.constant dense<0.000000e+00> : vector<64x4xf32>
    %55 = tpu.matmul %50, %54, %cst_19 {dimension_numbers = #tpu.dot_dimension_numbers<[1], [0], [0], [1], [0, 0, 1, 1], [], []>} : vector<64x8xbf16>, vector<8x4xbf16>, vector<64x4xf32> -> vector<64x4xf32>
    %56 = arith.addf %44, %55 : vector<64x4xf32>
    %57 = vector.extract_strided_slice %25 {offsets = [1, 1, 0, 0], sizes = [1, 1, 8, 4], strides = [1, 1, 1, 1]} : vector<3x2x8x4xbf16> to vector<1x1x8x4xbf16>
    %58 = vector.shape_cast %57 : vector<1x1x8x4xbf16> to vector<8x4xbf16>
    %cst_20 = arith.constant dense<0.000000e+00> : vector<64x4xf32>
    %59 = tpu.matmul %52, %58, %cst_20 {dimension_numbers = #tpu.dot_dimension_numbers<[1], [0], [0], [1], [0, 0, 1, 1], [], []>} : vector<64x8xbf16>, vector<8x4xbf16>, vector<64x4xf32> -> vector<64x4xf32>
    %60 = arith.addf %56, %59 : vector<64x4xf32>
    %61 = vector.extract_strided_slice %24 {offsets = [2, 0, 0], sizes = [16, 9, 8], strides = [1, 1, 1]} : vector<18x9x8xbf16> to vector<16x9x8xbf16>
    %62 = vector.shape_cast %61 : vector<16x9x8xbf16> to vector<8x2x9x8xbf16>
    %63 = vector.extract_strided_slice %62 {offsets = [0, 0, 0, 0], sizes = [8, 1, 9, 8], strides = [1, 1, 1, 1]} : vector<8x2x9x8xbf16> to vector<8x1x9x8xbf16>
    %64 = vector.shape_cast %63 : vector<8x1x9x8xbf16> to vector<8x9x8xbf16>
    %65 = vector.extract_strided_slice %64 {offsets = [0, 0, 0], sizes = [8, 8, 8], strides = [1, 1, 1]} : vector<8x9x8xbf16> to vector<8x8x8xbf16>
    %66 = vector.shape_cast %65 : vector<8x8x8xbf16> to vector<64x8xbf16>
    %67 = vector.extract_strided_slice %64 {offsets = [0, 1, 0], sizes = [8, 8, 8], strides = [1, 1, 1]} : vector<8x9x8xbf16> to vector<8x8x8xbf16>
    %68 = vector.shape_cast %67 : vector<8x8x8xbf16> to vector<64x8xbf16>
    %69 = vector.extract_strided_slice %25 {offsets = [2, 0, 0, 0], sizes = [1, 1, 8, 4], strides = [1, 1, 1, 1]} : vector<3x2x8x4xbf16> to vector<1x1x8x4xbf16>
    %70 = vector.shape_cast %69 : vector<1x1x8x4xbf16> to vector<8x4xbf16>
    %cst_21 = arith.constant dense<0.000000e+00> : vector<64x4xf32>
    %71 = tpu.matmul %66, %70, %cst_21 {dimension_numbers = #tpu.dot_dimension_numbers<[1], [0], [0], [1], [0, 0, 1, 1], [], []>} : vector<64x8xbf16>, vector<8x4xbf16>, vector<64x4xf32> -> vector<64x4xf32>
    %72 = arith.addf %60, %71 : vector<64x4xf32>
    %73 = vector.extract_strided_slice %25 {offsets = [2, 1, 0, 0], sizes = [1, 1, 8, 4], strides = [1, 1, 1, 1]} : vector<3x2x8x4xbf16> to vector<1x1x8x4xbf16>
    %74 = vector.shape_cast %73 : vector<1x1x8x4xbf16> to vector<8x4xbf16>
    %cst_22 = arith.constant dense<0.000000e+00> : vector<64x4xf32>
    %75 = tpu.matmul %68, %74, %cst_22 {dimension_numbers = #tpu.dot_dimension_numbers<[1], [0], [0], [1], [0, 0, 1, 1], [], []>} : vector<64x8xbf16>, vector<8x4xbf16>, vector<64x4xf32> -> vector<64x4xf32>
    %76 = arith.addf %72, %75 : vector<64x4xf32>
    %77 = arith.truncf %76 : vector<64x4xf32> to vector<64x4xbf16>
    %c0_23 = arith.constant 0 : index
    %c0_24 = arith.constant 0 : index
    %c0_25 = arith.constant 0 : index
    %78 = vector.load %arg5[%c0_23, %c0_24, %c0_25] : memref<1x64x4xbf16, #tpu.memory_space<vmem>>, vector<1x64x4xbf16>
    %79 = vector.shape_cast %78 : vector<1x64x4xbf16> to vector<64x4xbf16>
    %80 = vector.shape_cast %77 : vector<64x4xbf16> to vector<1x64x4xbf16>
    tpu.vector_store %arg5[%c0_23, %c0_24, %c0_25], %80 {strides = array<i32>} : memref<1x64x4xbf16, #tpu.memory_space<vmem>>, vector<1x64x4xbf16>,
    %cst_26 = arith.constant dense<0.000000e+00> : vector<4xf32>
    %81 = vector.multi_reduction <add>, %76, %cst_26 [0] : vector<64x4xf32> to vector<4xf32>
    %82 = vector.shape_cast %81 : vector<4xf32> to vector<1x4xf32>
    %83 = arith.addf %26, %82 : vector<1x4xf32>
    %84 = arith.mulf %76, %76 : vector<64x4xf32>
    %cst_27 = arith.constant dense<0.000000e+00> : vector<4xf32>
    %85 = vector.multi_reduction <add>, %84, %cst_27 [0] : vector<64x4xf32> to vector<4xf32>
    %86 = vector.shape_cast %85 : vector<4xf32> to vector<1x4xf32>
    %87 = arith.addf %27, %86 : vector<1x4xf32>
    %cst_28 = arith.constant 0.000000e+00 : f32
    %88 = vector.broadcast %cst_28 : f32 to vector<6x4xf32>
    %89 = tpu.concatenate %83, %87, %88 in 0 : vector<1x4xf32>, vector<1x4xf32>, vector<6x4xf32> -> vector<8x4xf32>
    %c0_29 = arith.constant 0 : index
    %c0_30 = arith.constant 0 : index
    %c0_31 = arith.constant 0 : index
    %90 = vector.load %arg6[%c0_29, %c0_30, %c0_31] : memref<1x8x4xf32, #tpu.memory_space<vmem>>, vector<1x8x4xf32>
    %91 = vector.shape_cast %90 : vector<1x8x4xf32> to vector<8x4xf32>
    %92 = vector.shape_cast %89 : vector<8x4xf32> to vector<1x8x4xf32>
    tpu.vector_store %arg6[%c0_29, %c0_30, %c0_31], %92 {strides = array<i32>} : memref<1x8x4xf32, #tpu.memory_space<vmem>>, vector<1x8x4xf32>,
    return
  }
  func.func @transform_0(%arg0: i32) -> (i32, i32, i32, i32) {
    %c0_i32 = arith.constant 0 : i32
    %c0_i32_0 = arith.constant 0 : i32
    %c0_i32_1 = arith.constant 0 : i32
    %c0_i32_2 = arith.constant 0 : i32
    return %arg0, %c0_i32, %c0_i32_0, %c0_i32_1 : i32, i32, i32, i32
  }
  func.func @transform_1(%arg0: i32) -> (i32, i32, i32, i32) {
    %c0_i32 = arith.constant 0 : i32
    %c0_i32_0 = arith.constant 0 : i32
    %c0_i32_1 = arith.constant 0 : i32
    %c0_i32_2 = arith.constant 0 : i32
    %c0_i32_3 = arith.constant 0 : i32
    return %c0_i32, %c0_i32_0, %c0_i32_1, %c0_i32_2 : i32, i32, i32, i32
  }
  func.func @transform_2(%arg0: i32) -> (i32, i32) {
    %c0_i32 = arith.constant 0 : i32
    %c0_i32_0 = arith.constant 0 : i32
    %c0_i32_1 = arith.constant 0 : i32
    return %c0_i32, %c0_i32_0 : i32, i32
  }
  func.func @transform_3(%arg0: i32) -> (i32, i32) {
    %c0_i32 = arith.constant 0 : i32
    %c0_i32_0 = arith.constant 0 : i32
    %c0_i32_1 = arith.constant 0 : i32
    return %c0_i32, %c0_i32_0 : i32, i32
  }
  func.func @transform_4(%arg0: i32) -> (i32, i32, i32) {
    %c0_i32 = arith.constant 0 : i32
    %c0_i32_0 = arith.constant 0 : i32
    %c0_i32_1 = arith.constant 0 : i32
    return %arg0, %c0_i32, %c0_i32_0 : i32, i32, i32
  }
  func.func @transform_5(%arg0: i32) -> (i32, i32, i32) {
    %c0_i32 = arith.constant 0 : i32
    %c0_i32_0 = arith.constant 0 : i32
    %c0_i32_1 = arith.constant 0 : i32
    return %arg0, %c0_i32, %c0_i32_0 : i32, i32, i32
  }
}

module attributes {stable_mosaic.version = 11 : i64} {
  func.func @shortcut_conv_kernel(%arg0: i32, %arg1: memref<1x16x8x8xf32, #tpu.memory_space<vmem>>, %arg2: memref<4x16xbf16, #tpu.memory_space<vmem>>, %arg3: memref<1x64x16xbf16, #tpu.memory_space<vmem>>, %arg4: memref<1x8x16xf32, #tpu.memory_space<vmem>>) attributes {dimension_semantics = [#tpu.dimension_semantics<parallel>], iteration_bounds = array<i64: 2>, scalar_prefetch = 0 : i64, scratch_operands = 0 : i64, tpu.core_type = #tpu.core_type<tc>, window_params = [{transform_indices = @transform_0, window_bounds = array<i64: 1, 16, 8, 8>}, {pipeline_mode = #tpu.pipeline_mode<synchronous>, transform_indices = @transform_1, window_bounds = array<i64: 4, 16>}, {transform_indices = @transform_2, window_bounds = array<i64: 1, 64, 16>}, {transform_indices = @transform_3, window_bounds = array<i64: 1, 8, 16>}]} {
    %c0 = arith.constant 0 : index
    %c0_0 = arith.constant 0 : index
    %c0_1 = arith.constant 0 : index
    %c0_2 = arith.constant 0 : index
    %0 = vector.load %arg1[%c0, %c0_0, %c0_1, %c0_2] : memref<1x16x8x8xf32, #tpu.memory_space<vmem>>, vector<1x16x8x8xf32>
    %1 = vector.shape_cast %0 : vector<1x16x8x8xf32> to vector<16x8x8xf32>
    %2 = vector.shape_cast %1 : vector<16x8x8xf32> to vector<8x2x8x8xf32>
    %3 = vector.extract_strided_slice %2 {offsets = [0, 0, 0, 0], sizes = [8, 1, 8, 8], strides = [1, 1, 1, 1]} : vector<8x2x8x8xf32> to vector<8x1x8x8xf32>
    %4 = vector.shape_cast %3 : vector<8x1x8x8xf32> to vector<8x8x8xf32>
    %5 = vector.extract_strided_slice %4 {offsets = [0, 0, 0], sizes = [8, 8, 4], strides = [1, 1, 1]} : vector<8x8x8xf32> to vector<8x8x4xf32>
    %6 = vector.shape_cast %5 : vector<8x8x4xf32> to vector<64x4xf32>
    %7 = arith.truncf %6 : vector<64x4xf32> to vector<64x4xbf16>
    %c0_3 = arith.constant 0 : index
    %c0_4 = arith.constant 0 : index
    %8 = vector.load %arg2[%c0_3, %c0_4] : memref<4x16xbf16, #tpu.memory_space<vmem>>, vector<4x16xbf16>
    %cst = arith.constant dense<0.000000e+00> : vector<64x16xf32>
    %9 = tpu.matmul %7, %8, %cst {dimension_numbers = #tpu.dot_dimension_numbers<[1], [0], [0], [1], [0, 0, 1, 1], [], []>} : vector<64x4xbf16>, vector<4x16xbf16>, vector<64x16xf32> -> vector<64x16xf32>
    %10 = arith.truncf %9 : vector<64x16xf32> to vector<64x16xbf16>
    %c0_5 = arith.constant 0 : index
    %c0_6 = arith.constant 0 : index
    %c0_7 = arith.constant 0 : index
    %11 = vector.load %arg3[%c0_5, %c0_6, %c0_7] : memref<1x64x16xbf16, #tpu.memory_space<vmem>>, vector<1x64x16xbf16>
    %12 = vector.shape_cast %11 : vector<1x64x16xbf16> to vector<64x16xbf16>
    %13 = vector.shape_cast %10 : vector<64x16xbf16> to vector<1x64x16xbf16>
    tpu.vector_store %arg3[%c0_5, %c0_6, %c0_7], %13 {strides = array<i32>} : memref<1x64x16xbf16, #tpu.memory_space<vmem>>, vector<1x64x16xbf16>,
    %cst_8 = arith.constant dense<0.000000e+00> : vector<16xf32>
    %14 = vector.multi_reduction <add>, %9, %cst_8 [0] : vector<64x16xf32> to vector<16xf32>
    %15 = vector.shape_cast %14 : vector<16xf32> to vector<1x16xf32>
    %16 = arith.mulf %9, %9 : vector<64x16xf32>
    %cst_9 = arith.constant dense<0.000000e+00> : vector<16xf32>
    %17 = vector.multi_reduction <add>, %16, %cst_9 [0] : vector<64x16xf32> to vector<16xf32>
    %18 = vector.shape_cast %17 : vector<16xf32> to vector<1x16xf32>
    %cst_10 = arith.constant 0.000000e+00 : f32
    %19 = vector.broadcast %cst_10 : f32 to vector<6x16xf32>
    %20 = tpu.concatenate %15, %18, %19 in 0 : vector<1x16xf32>, vector<1x16xf32>, vector<6x16xf32> -> vector<8x16xf32>
    %c0_11 = arith.constant 0 : index
    %c0_12 = arith.constant 0 : index
    %c0_13 = arith.constant 0 : index
    %21 = vector.load %arg4[%c0_11, %c0_12, %c0_13] : memref<1x8x16xf32, #tpu.memory_space<vmem>>, vector<1x8x16xf32>
    %22 = vector.shape_cast %21 : vector<1x8x16xf32> to vector<8x16xf32>
    %23 = vector.shape_cast %20 : vector<8x16xf32> to vector<1x8x16xf32>
    tpu.vector_store %arg4[%c0_11, %c0_12, %c0_13], %23 {strides = array<i32>} : memref<1x8x16xf32, #tpu.memory_space<vmem>>, vector<1x8x16xf32>,
    return
  }
  func.func @transform_0(%arg0: i32) -> (i32, i32, i32, i32) {
    %c0_i32 = arith.constant 0 : i32
    %c0_i32_0 = arith.constant 0 : i32
    %c0_i32_1 = arith.constant 0 : i32
    %c0_i32_2 = arith.constant 0 : i32
    return %arg0, %c0_i32, %c0_i32_0, %c0_i32_1 : i32, i32, i32, i32
  }
  func.func @transform_1(%arg0: i32) -> (i32, i32) {
    %c0_i32 = arith.constant 0 : i32
    %c0_i32_0 = arith.constant 0 : i32
    %c0_i32_1 = arith.constant 0 : i32
    return %c0_i32, %c0_i32_0 : i32, i32
  }
  func.func @transform_2(%arg0: i32) -> (i32, i32, i32) {
    %c0_i32 = arith.constant 0 : i32
    %c0_i32_0 = arith.constant 0 : i32
    %c0_i32_1 = arith.constant 0 : i32
    return %arg0, %c0_i32, %c0_i32_0 : i32, i32, i32
  }
  func.func @transform_3(%arg0: i32) -> (i32, i32, i32) {
    %c0_i32 = arith.constant 0 : i32
    %c0_i32_0 = arith.constant 0 : i32
    %c0_i32_1 = arith.constant 0 : i32
    return %arg0, %c0_i32, %c0_i32_0 : i32, i32, i32
  }
}

module attributes {stable_mosaic.version = 11 : i64} {
  func.func @bn_residual_lrelu_kernel(%arg0: i32, %arg1: memref<128x16xbf16, #tpu.memory_space<vmem>>, %arg2: memref<128x16xbf16, #tpu.memory_space<vmem>>, %arg3: memref<1x16xf32, #tpu.memory_space<vmem>>, %arg4: memref<1x16xf32, #tpu.memory_space<vmem>>, %arg5: memref<1x16xf32, #tpu.memory_space<vmem>>, %arg6: memref<1x16xf32, #tpu.memory_space<vmem>>, %arg7: memref<128x16xf32, #tpu.memory_space<vmem>>) attributes {dimension_semantics = [#tpu.dimension_semantics<parallel>], iteration_bounds = array<i64: 1>, scalar_prefetch = 0 : i64, scratch_operands = 0 : i64, tpu.core_type = #tpu.core_type<tc>, window_params = [{transform_indices = @transform_0, window_bounds = array<i64: 128, 16>}, {transform_indices = @transform_1, window_bounds = array<i64: 128, 16>}, {pipeline_mode = #tpu.pipeline_mode<synchronous>, transform_indices = @transform_2, window_bounds = array<i64: 1, 16>}, {pipeline_mode = #tpu.pipeline_mode<synchronous>, transform_indices = @transform_3, window_bounds = array<i64: 1, 16>}, {pipeline_mode = #tpu.pipeline_mode<synchronous>, transform_indices = @transform_4, window_bounds = array<i64: 1, 16>}, {pipeline_mode = #tpu.pipeline_mode<synchronous>, transform_indices = @transform_5, window_bounds = array<i64: 1, 16>}, {transform_indices = @transform_6, window_bounds = array<i64: 128, 16>}]} {
    %c0 = arith.constant 0 : index
    %c0_0 = arith.constant 0 : index
    %0 = vector.load %arg1[%c0, %c0_0] : memref<128x16xbf16, #tpu.memory_space<vmem>>, vector<128x16xbf16>
    %1 = arith.extf %0 : vector<128x16xbf16> to vector<128x16xf32>
    %c0_1 = arith.constant 0 : index
    %c0_2 = arith.constant 0 : index
    %2 = vector.load %arg3[%c0_1, %c0_2] : memref<1x16xf32, #tpu.memory_space<vmem>>, vector<1x16xf32>
    %3 = vector.broadcast %2 : vector<1x16xf32> to vector<128x16xf32>
    %4 = arith.mulf %1, %3 : vector<128x16xf32>
    %c0_3 = arith.constant 0 : index
    %c0_4 = arith.constant 0 : index
    %5 = vector.load %arg4[%c0_3, %c0_4] : memref<1x16xf32, #tpu.memory_space<vmem>>, vector<1x16xf32>
    %6 = vector.broadcast %5 : vector<1x16xf32> to vector<128x16xf32>
    %7 = arith.addf %4, %6 : vector<128x16xf32>
    %c0_5 = arith.constant 0 : index
    %c0_6 = arith.constant 0 : index
    %8 = vector.load %arg2[%c0_5, %c0_6] : memref<128x16xbf16, #tpu.memory_space<vmem>>, vector<128x16xbf16>
    %9 = arith.extf %8 : vector<128x16xbf16> to vector<128x16xf32>
    %c0_7 = arith.constant 0 : index
    %c0_8 = arith.constant 0 : index
    %10 = vector.load %arg5[%c0_7, %c0_8] : memref<1x16xf32, #tpu.memory_space<vmem>>, vector<1x16xf32>
    %11 = vector.broadcast %10 : vector<1x16xf32> to vector<128x16xf32>
    %12 = arith.mulf %9, %11 : vector<128x16xf32>
    %c0_9 = arith.constant 0 : index
    %c0_10 = arith.constant 0 : index
    %13 = vector.load %arg6[%c0_9, %c0_10] : memref<1x16xf32, #tpu.memory_space<vmem>>, vector<1x16xf32>
    %14 = vector.broadcast %13 : vector<1x16xf32> to vector<128x16xf32>
    %15 = arith.addf %12, %14 : vector<128x16xf32>
    %16 = arith.addf %7, %15 : vector<128x16xf32>
    %cst = arith.constant 0.000000e+00 : f32
    %17 = vector.broadcast %cst : f32 to vector<128x16xf32>
    %18 = arith.cmpf oge, %16, %17 : vector<128x16xf32>
    %cst_11 = arith.constant 0.00999999977 : f32
    %19 = vector.broadcast %cst_11 : f32 to vector<128x16xf32>
    %20 = arith.mulf %19, %16 : vector<128x16xf32>
    %21 = arith.select %18, %16, %20 : vector<128x16xi1>, vector<128x16xf32>
    %c0_12 = arith.constant 0 : index
    %c0_13 = arith.constant 0 : index
    %22 = vector.load %arg7[%c0_12, %c0_13] : memref<128x16xf32, #tpu.memory_space<vmem>>, vector<128x16xf32>
    tpu.vector_store %arg7[%c0_12, %c0_13], %21 {strides = array<i32>} : memref<128x16xf32, #tpu.memory_space<vmem>>, vector<128x16xf32>,
    return
  }
  func.func @transform_0(%arg0: i32) -> (i32, i32) {
    %c0_i32 = arith.constant 0 : i32
    %c0_i32_0 = arith.constant 0 : i32
    return %arg0, %c0_i32 : i32, i32
  }
  func.func @transform_1(%arg0: i32) -> (i32, i32) {
    %c0_i32 = arith.constant 0 : i32
    %c0_i32_0 = arith.constant 0 : i32
    return %arg0, %c0_i32 : i32, i32
  }
  func.func @transform_2(%arg0: i32) -> (i32, i32) {
    %c0_i32 = arith.constant 0 : i32
    %c0_i32_0 = arith.constant 0 : i32
    %c0_i32_1 = arith.constant 0 : i32
    return %c0_i32, %c0_i32_0 : i32, i32
  }
  func.func @transform_3(%arg0: i32) -> (i32, i32) {
    %c0_i32 = arith.constant 0 : i32
    %c0_i32_0 = arith.constant 0 : i32
    %c0_i32_1 = arith.constant 0 : i32
    return %c0_i32, %c0_i32_0 : i32, i32
  }
  func.func @transform_4(%arg0: i32) -> (i32, i32) {
    %c0_i32 = arith.constant 0 : i32
    %c0_i32_0 = arith.constant 0 : i32
    %c0_i32_1 = arith.constant 0 : i32
    return %c0_i32, %c0_i32_0 : i32, i32
  }
  func.func @transform_5(%arg0: i32) -> (i32, i32) {
    %c0_i32 = arith.constant 0 : i32
    %c0_i32_0 = arith.constant 0 : i32
    %c0_i32_1 = arith.constant 0 : i32
    return %c0_i32, %c0_i32_0 : i32, i32
  }
  func.func @transform_6(%arg0: i32) -> (i32, i32) {
    %c0_i32 = arith.constant 0 : i32
    %c0_i32_0 = arith.constant 0 : i32
    return %arg0, %c0_i32 : i32, i32
  }
}

</mosaic_0001>

<bundles_post_ra>
// kernel: bottleneck_forward.7
= control target key start
LH: loop header
LB: loop body
LE: loop exit
PB: predicated region body
PF: predicated region fallthrough
CT: control target
= control target key end

     0   :  { %vm174_vm0 = vcmask 1041408   ;;  %vm149_vm1 = vcmask 31744   ;;  %s645_s1 = inlined_call_operand.vmem [shape: bf16[4,16], index: 1, kind: input, shape index: {}]   ;;  %s646_s0 = inlined_call_operand.vmem [shape: bf16[128,4], index: 0, kind: input, shape index: {}]   ;;  %s647_s2 = inlined_call_operand.vmem [shape: f32[1,4], index: 2, kind: input, shape index: {}]   ;;  %s648_s3 = inlined_call_operand.vmem [shape: f32[1,4], index: 3, kind: input, shape index: {}]   ;;  %s649_s4 = inlined_call_operand.vmem [shape: bf16[128,16], index: 4, kind: output, shape index: {0}]   ;;  %s650_s5 = inlined_call_operand.vmem [shape: f32[1,8,16], index: 5, kind: output, shape index: {1}]  }
   0x1   :  { %v148_v0 = vld [vmem:[%s645_s1] sm:$0x3]  ;;  %v404_v6 = vld [vmem:[%s646_s0 + $0x10] sm:$0xff]   ;;  %v403_v40 = vld [vmem:[%s646_s0 + $0x8] sm:$0xff]  }
   0x2   :  { %v372_v1 = vld [vmem:[%s646_s0] sm:$0xff]   ;;  %v176_v2 = vsel %vm174_vm0, %v148_v0, 0  ;;  %v381_v8 = vunpack.c.l.bf16 %v404_v6  ;;  %v382_v9 = vunpack.c.h.bf16 %v404_v6  ;;  %v408_v11 = vld [vmem:[%s646_s0 + $0x30] sm:$0xff]   ;;  %v405_v41 = vld [vmem:[%s646_s0 + $0x18] sm:$0xff]   ;;  %v377_v48 = vunpack.c.l.bf16 %v403_v40 }
   0x3   :  { %v373_v3 = vunpack.c.l.bf16 %v372_v1  ;;  %v374_v4 = vunpack.c.h.bf16 %v372_v1  ;;  %v455_v5 = vld [vmem:[%s647_s2] ss:$0 sm:$0xff]  ;;  %185 = vmatpush.bf16.msra.mxu0 %v176_v2  ;;  %410 = vmatpush.bf16.msra.mxu1 %v176_v2  ;;  %v397_v18 = vunpack.c.l.bf16 %v408_v11  ;;  %v398_v19 = vunpack.c.h.bf16 %v408_v11  ;;  %v407_v51 = vld [vmem:[%s646_s0 + $0x28] sm:$0xff]   ;;  %v409_v59 = vld [vmem:[%s646_s0 + $0x38] sm:$0xff]  }
   0x4   :  { %v463_v7 = vld [vmem:[%s648_s3] ss:$0 sm:$0xff]  ;;  %411 = vmatpush.bf16.msra.mxu2 %v176_v2  ;;  %412 = vmatpush.bf16.msra.mxu3 %v176_v2  ;;  %v60_v16 = vmul.f32 %v455_v5, %v381_v8  ;;  %v61_v17 = vmul.f32 %v455_v5, %v382_v9  ;;  %v378_v49 = vunpack.c.h.bf16 %v403_v40  ;;  %v385_v50 = vunpack.c.l.bf16 %v405_v41 }
   0x5   :  { %v406_v10 = vld [vmem:[%s646_s0 + $0x20] sm:$0xff]   ;;  %v56_v12 = vmul.f32 %v455_v5, %v373_v3  ;;  %v57_v13 = vmul.f32 %v455_v5, %v374_v4  ;;  %v68_v26 = vmul.f32 %v455_v5, %v397_v18  ;;  %v69_v27 = vmul.f32 %v455_v5, %v398_v19 }
   0x6   :  { %v389_v14 = vunpack.c.l.bf16 %v406_v10  ;;  %v390_v15 = vunpack.c.h.bf16 %v406_v10  ;;  %v80_v24 = vadd.f32 %v463_v7, %v60_v16  ;;  %v81_v25 = vadd.f32 %v463_v7, %v61_v17 }
   0x7   :  { %v76_v20 = vadd.f32 %v463_v7, %v56_v12  ;;  %v77_v21 = vadd.f32 %v463_v7, %v57_v13  ;;  %v88_v39 = vadd.f32 %v463_v7, %v68_v26  ;;  %v89_v45 = vadd.f32 %v463_v7, %v69_v27 }
   0x8   :  { %v64_v22 = vmul.f32 %v455_v5, %v389_v14  ;;  %v65_v23 = vmul.f32 %v455_v5, %v390_v15  ;;  %vm96_vm4 = vcmp.ge.f32.partialorder %v80_v24, 0.0  ;;  %vm97_vm5 = vcmp.ge.f32.partialorder %v81_v25, 0.0 }
   0x9   :  { %vm92_vm2 = vcmp.ge.f32.partialorder %v76_v20, 0.0  ;;  %vm93_vm3 = vcmp.ge.f32.partialorder %v77_v21, 0.0  ;;  %v108_v28 = vmul.f32 0.01, %v76_v20  ;;  %v109_v29 = vmul.f32 0.01, %v77_v21 }
   0xa   :  { %v112_v30 = vmul.f32 0.01, %v80_v24  ;;  %v113_v31 = vmul.f32 0.01, %v81_v25  ;;  %v84_v34 = vadd.f32 %v463_v7, %v64_v22  ;;  %v85_v35 = vadd.f32 %v463_v7, %v65_v23 }
   0xb   :  { %v124_v32 = vsel %vm92_vm2, %v76_v20, %v108_v28  ;;  %v125_v33 = vsel %vm93_vm3, %v77_v21, %v109_v29  ;;  %vm104_vm8 = vcmp.ge.f32.partialorder %v88_v39, 0.0  ;;  %v120_v46 = vmul.f32 0.01, %v88_v39 }
   0xc   :  { %v140_v36 = vpack.c.bf16 %v125_v33, %v124_v32  ;;  %v128_v37 = vsel %vm96_vm4, %v80_v24, %v112_v30  ;;  %v129_v38 = vsel %vm97_vm5, %v81_v25, %v113_v31  ;;  %vm100_vm6 = vcmp.ge.f32.partialorder %v84_v34, 0.0 }
   0xd   :  { %v142_v42 = vpack.c.bf16 %v129_v38, %v128_v37  ;;  %vm101_vm7 = vcmp.ge.f32.partialorder %v85_v35, 0.0  ;;  %v116_v43 = vmul.f32 0.01, %v84_v34  ;;  %v117_v44 = vmul.f32 0.01, %v85_v35 }
   0xe   :  { %363 = vmatmul.msk.bf16.vlgmr.msra.gmra.mxu0 %vm149_vm1, %v140_v36  ;;  %vm105_vm9 = vcmp.ge.f32.partialorder %v89_v45, 0.0  ;;  %v121_v53 = vmul.f32 0.01, %v89_v45  ;;  %v136_v54 = vsel %vm104_vm8, %v88_v39, %v120_v46  ;;  %v58_v56 = vmul.f32 %v455_v5, %v377_v48 }
   0xf   :  { %365 = vmatmul.msk.bf16.vlgmr.msra.gmra.mxu1 %vm149_vm1, %v142_v42  ;;  %v132_v47 = vsel %vm100_vm6, %v84_v34, %v116_v43  ;;  %v133_v52 = vsel %vm101_vm7, %v85_v35, %v117_v44  ;;  %v59_v57 = vmul.f32 %v455_v5, %v378_v49  ;;  %v386_v58 = vunpack.c.h.bf16 %v405_v41 }
  0x10   :  { %v144_v55 = vpack.c.bf16 %v133_v52, %v132_v47  ;;  %v137_v60 = vsel %vm105_vm9, %v89_v45, %v121_v53  ;;  %v62_v61 = vmul.f32 %v455_v5, %v385_v50  ;;  %v393_v62 = vunpack.c.l.bf16 %v407_v51 }
  0x11   :  { %v394_v63 = vunpack.c.h.bf16 %v407_v51  ;;  %v146_v0 = vpack.c.bf16 %v137_v60, %v136_v54  ;;  %v78_v1 = vadd.f32 %v463_v7, %v58_v56  ;;  %v79_v2 = vadd.f32 %v463_v7, %v59_v57 }
  0x12   :  { %367 = vmatmul.msk.bf16.vlgmr.msra.gmra.mxu2 %vm149_vm1, %v144_v55  ;;  %v63_v3 = vmul.f32 %v455_v5, %v386_v58  ;;  %v82_v4 = vadd.f32 %v463_v7, %v62_v61  ;;  %v66_v6 = vmul.f32 %v455_v5, %v393_v62  ;;  %v401_v9 = vunpack.c.l.bf16 %v409_v59 }
  0x13   :  { %v67_v8 = vmul.f32 %v455_v5, %v394_v63  ;;  %369 = vmatmul.msk.bf16.vlgmr.msra.gmra.mxu3 %vm149_vm1, %v146_v0  ;;  %vm94_vm10 = vcmp.ge.f32.partialorder %v78_v1, 0.0  ;;  %vm95_vm11 = vcmp.ge.f32.partialorder %v79_v2, 0.0  ;;  %v110_v10 = vmul.f32 0.01, %v78_v1 }
  0x14   :  { %v111_v11 = vmul.f32 0.01, %v79_v2  ;;  %v83_v12 = vadd.f32 %v463_v7, %v63_v3  ;;  %vm98_vm12 = vcmp.ge.f32.partialorder %v82_v4, 0.0  ;;  %v114_v13 = vmul.f32 0.01, %v82_v4 }
  0x15   :  { %v86_v14 = vadd.f32 %v463_v7, %v66_v6  ;;  %v126_v15 = vsel %vm94_vm10, %v78_v1, %v110_v10  ;;  %v87_v17 = vadd.f32 %v463_v7, %v67_v8  ;;  %v402_v18 = vunpack.c.h.bf16 %v409_v59 }
  0x16   :  { %v127_v16 = vsel %vm95_vm11, %v79_v2, %v111_v11  ;;  %vm99_vm13 = vcmp.ge.f32.partialorder %v83_v12, 0.0  ;;  %v115_v19 = vmul.f32 0.01, %v83_v12  ;;  %v130_v20 = vsel %vm98_vm12, %v82_v4, %v114_v13 }
  0x17   :  { %vm102_vm14 = vcmp.ge.f32.partialorder %v86_v14, 0.0  ;;  %vm103_vm15 = vcmp.ge.f32.partialorder %v87_v17, 0.0  ;;  %v118_v21 = vmul.f32 0.01, %v86_v14  ;;  %v119_v22 = vmul.f32 0.01, %v87_v17 }
  0x18   :  { %v141_v23 = vpack.c.bf16 %v127_v16, %v126_v15  ;;  %v131_v24 = vsel %vm99_vm13, %v83_v12, %v115_v19  ;;  %v70_v25 = vmul.f32 %v455_v5, %v401_v9  ;;  %v71_v26 = vmul.f32 %v455_v5, %v402_v18 }
  0x19   :  { %v143_v27 = vpack.c.bf16 %v131_v24, %v130_v20  ;;  %v134_v28 = vsel %vm102_vm14, %v86_v14, %v118_v21  ;;  %v135_v29 = vsel %vm103_vm15, %v87_v17, %v119_v22  ;;  %vm243_vm4 = vcmask 125952  }
  0x1a   :  { %v90_v30 = vadd.f32 %v463_v7, %v70_v25  ;;  %v91_v31 = vadd.f32 %v463_v7, %v71_v26  ;;  %v145_v34 = vpack.c.bf16 %v135_v29, %v134_v28  ;;  %vm351_vm5 = vcmask 1040384  }
  0x1c   :  { %vm106_vm2 = vcmp.ge.f32.partialorder %v90_v30, 0.0  ;;  %vm107_vm3 = vcmp.ge.f32.partialorder %v91_v31, 0.0  ;;  %v122_v32 = vmul.f32 0.01, %v90_v30  ;;  %v123_v33 = vmul.f32 0.01, %v91_v31 }
  0x1e   :  { %364 = vmatmul.msk.bf16.gmra.mxu0 %vm149_vm1, %v141_v23  ;;  %v138_v35 = vsel %vm106_vm2, %v90_v30, %v122_v32  ;;  %v139_v36 = vsel %vm107_vm3, %v91_v31, %v123_v33 }
  0x1f   :  { %366 = vmatmul.msk.bf16.gmra.mxu1 %vm149_vm1, %v143_v27  ;;  %v147_v37 = vpack.c.bf16 %v139_v36, %v138_v35 }
  0x22   :  { %368 = vmatmul.msk.bf16.gmra.mxu2 %vm149_vm1, %v145_v34 }
  0x23   :  { %370 = vmatmul.msk.bf16.gmra.mxu3 %vm149_vm1, %v147_v37  ;;  %vm260_vm1 = vcmask 130048  }
  0x8b   :  { %v187_v5 = vpop.f32.mrf.mxu0 }
  0x8c   :  { %v227_v38 = vpack.c.bf16 %v187_v5, %v187_v5  ;;  %v197_v7 = vpop.f32.mrf.mxu1  ;;  %v298_v53 = vmul.f32 %v187_v5, %v187_v5  ;;  %v261_v58 = vsel %vm260_vm1, %v187_v5, 0.0 }
  0x8d   :  { %v231_v39 = vpack.c.bf16 %v197_v7, %v197_v7  ;;  %v302_v6 = vmul.f32 %v197_v7, %v197_v7  ;;  %v268_v15 = vsel %vm260_vm1, %v197_v7, 0.0 }
  0x8e   :  { %244 = vst.msk [vmem:[%s649_s4] sm:$0xf] %vm243_vm4, %v227_v38  ;;  %v314_v0 = vsel %vm260_vm1, %v298_v53, 0.0 }
  0x8f   :  { %248 = vst.msk [vmem:[%s649_s4 + $0x10] sm:$0xf] %vm243_vm4, %v231_v39  ;;  %v321_v22 = vsel %vm260_vm1, %v302_v6, 0.0 }
  0x93   :  { %v189_v40 = vpop.f32.mrf.mxu0 }
  0x94   :  { %v228_v41 = vpack.c.bf16 %v189_v40, %v189_v40  ;;  %v199_v42 = vpop.f32.mrf.mxu1  ;;  %v299_v49 = vmul.f32 %v189_v40, %v189_v40  ;;  %v262_v54 = vsel %vm260_vm1, %v189_v40, 0.0 }
  0x95   :  { %v232_v43 = vpack.c.bf16 %v199_v42, %v199_v42  ;;  %v535_v44 = vpop.f32.mrf.mxu2  ;;  %v263_v62 = vadd.f32 %v262_v54, %v261_v58  ;;  %v303_v16 = vmul.f32 %v199_v42, %v199_v42  ;;  %v270_v23 = vsel %vm260_vm1, %v199_v42, 0.0 }
  0x96   :  { %245 = vst.msk [vmem:[%s649_s4 + $0x4] sm:$0xf] %vm243_vm4, %v228_v41  ;;  %v235_v45 = vpack.c.bf16 %v535_v44, %v535_v44  ;;  %v543_v46 = vpop.f32.mrf.mxu3  ;;  %v315_v59 = vsel %vm260_vm1, %v299_v49, 0.0  ;;  %v306_v34 = vmul.f32 %v535_v44, %v535_v44  ;;  %v276_v38 = vsel %vm260_vm1, %v535_v44, 0.0 }
  0x97   :  { %249 = vst.msk [vmem:[%s649_s4 + $0x14] sm:$0xf] %vm243_vm4, %v232_v43  ;;  %v239_v47 = vpack.c.bf16 %v543_v46, %v543_v46  ;;  %v316_v2 = vadd.f32 %v315_v59, %v314_v0  ;;  %v323_v29 = vsel %vm260_vm1, %v303_v16, 0.0 }
  0x98   :  { %252 = vst.msk [vmem:[%s649_s4 + $0x20] sm:$0xf] %vm243_vm4, %v235_v45  ;;  %v329_v45 = vsel %vm260_vm1, %v306_v34, 0.0 }
  0x99   :  { %256 = vst.msk [vmem:[%s649_s4 + $0x30] sm:$0xf] %vm243_vm4, %v239_v47 }
  0x9b   :  { %v192_v48 = vpop.f32.mrf.mxu0 }
  0x9c   :  { %v229_v50 = vpack.c.bf16 %v192_v48, %v192_v48  ;;  %v202_v51 = vpop.f32.mrf.mxu1  ;;  %v300_v55 = vmul.f32 %v192_v48, %v192_v48  ;;  %v264_v60 = vsel %vm260_vm1, %v192_v48, 0.0 }
  0x9d   :  { %v233_v52 = vpack.c.bf16 %v202_v51, %v202_v51  ;;  %v209_v56 = vpop.f32.mrf.mxu2  ;;  %v265_v3 = vadd.f32 %v264_v60, %v263_v62  ;;  %v304_v24 = vmul.f32 %v202_v51, %v202_v51  ;;  %v272_v30 = vsel %vm260_vm1, %v202_v51, 0.0 }
  0x9e   :  { %246 = vst.msk [vmem:[%s649_s4 + $0x8] sm:$0xf] %vm243_vm4, %v229_v50  ;;  %v236_v57 = vpack.c.bf16 %v209_v56, %v209_v56  ;;  %v567_v61 = vpop.f32.mrf.mxu3  ;;  %v317_v1 = vsel %vm260_vm1, %v300_v55, 0.0  ;;  %v307_v7 = vmul.f32 %v209_v56, %v209_v56  ;;  %v278_v47 = vsel %vm260_vm1, %v209_v56, 0.0 }
  0x9f   :  { %250 = vst.msk [vmem:[%s649_s4 + $0x18] sm:$0xf] %vm243_vm4, %v233_v52  ;;  %v240_v63 = vpack.c.bf16 %v567_v61, %v567_v61  ;;  %v318_v12 = vadd.f32 %v317_v1, %v316_v2  ;;  %v325_v35 = vsel %vm260_vm1, %v304_v24, 0.0  ;;  %v310_v56 = vmul.f32 %v543_v46, %v543_v46 }
  0xa0   :  { %253 = vst.msk [vmem:[%s649_s4 + $0x24] sm:$0xf] %vm243_vm4, %v236_v57  ;;  %v331_v52 = vsel %vm260_vm1, %v307_v7, 0.0  ;;  %v311_v0 = vmul.f32 %v567_v61, %v567_v61  ;;  %v286_v6 = vsel %vm260_vm1, %v567_v61, 0.0 }
  0xa1   :  { %257 = vst.msk [vmem:[%s649_s4 + $0x34] sm:$0xf] %vm243_vm4, %v240_v63  ;;  %v284_v63 = vsel %vm260_vm1, %v543_v46, 0.0 }
  0xa3   :  { %v194_v4 = vpop.f32.mrf.mxu0 }
  0xa4   :  { %v230_v8 = vpack.c.bf16 %v194_v4, %v194_v4  ;;  %v266_v9 = vsel %vm260_vm1, %v194_v4, 0.0  ;;  %v301_v10 = vmul.f32 %v194_v4, %v194_v4  ;;  %v204_v11 = vpop.f32.mrf.mxu1  ;;  %v337_v4 = vsel %vm260_vm1, %v310_v56, 0.0 }
  0xa5   :  { %v267_v13 = vadd.f32 %v266_v9, %v265_v3  ;;  %v234_v14 = vpack.c.bf16 %v204_v11, %v204_v11  ;;  %v212_v18 = vpop.f32.mrf.mxu2  ;;  %v305_v31 = vmul.f32 %v204_v11, %v204_v11  ;;  %v274_v36 = vsel %vm260_vm1, %v204_v11, 0.0 }
  0xa6   :  { %247 = vst.msk [vmem:[%s649_s4 + $0xc] sm:$0xf] %vm243_vm4, %v230_v8  ;;  %v319_v17 = vsel %vm260_vm1, %v301_v10, 0.0  ;;  %v237_v21 = vpack.c.bf16 %v212_v18, %v212_v18  ;;  %v222_v25 = vpop.f32.mrf.mxu3  ;;  %v308_v48 = vmul.f32 %v212_v18, %v212_v18  ;;  %v280_v53 = vsel %vm260_vm1, %v212_v18, 0.0 }
  0xa7   :  { %v269_v19 = vadd.f32 %v268_v15, %v267_v13  ;;  %v320_v20 = vadd.f32 %v319_v17, %v318_v12  ;;  %251 = vst.msk [vmem:[%s649_s4 + $0x1c] sm:$0xf] %vm243_vm4, %v234_v14  ;;  %v241_v28 = vpack.c.bf16 %v222_v25, %v222_v25  ;;  %v327_v39 = vsel %vm260_vm1, %v305_v31, 0.0 }
  0xa8   :  { %254 = vst.msk [vmem:[%s649_s4 + $0x28] sm:$0xf] %vm243_vm4, %v237_v21  ;;  %v333_v58 = vsel %vm260_vm1, %v308_v48, 0.0  ;;  %v312_v8 = vmul.f32 %v222_v25, %v222_v25  ;;  %v339_v11 = vsel %vm260_vm1, %v311_v0, 0.0  ;;  %v288_v12 = vsel %vm260_vm1, %v222_v25, 0.0 }
  0xa9   :  { %v322_v26 = vadd.f32 %v321_v22, %v320_v20  ;;  %v271_v27 = vadd.f32 %v270_v23, %v269_v19  ;;  %258 = vst.msk [vmem:[%s649_s4 + $0x38] sm:$0xf] %vm243_vm4, %v241_v28 }
  0xaa   :  { %v341_v15 = vsel %vm260_vm1, %v312_v8, 0.0 }
  0xab   :  { %v273_v32 = vadd.f32 %v272_v30, %v271_v27  ;;  %v324_v33 = vadd.f32 %v323_v29, %v322_v26 }
  0xad   :  { %v275_v37 = vadd.f32 %v274_v36, %v273_v32  ;;  %v326_v5 = vadd.f32 %v325_v35, %v324_v33  ;;  %v214_v40 = vpop.f32.mrf.mxu2 }
  0xae   :  { %v238_v43 = vpack.c.bf16 %v214_v40, %v214_v40  ;;  %v224_v49 = vpop.f32.mrf.mxu3  ;;  %v309_v54 = vmul.f32 %v214_v40, %v214_v40  ;;  %v282_v59 = vsel %vm260_vm1, %v214_v40, 0.0 }
  0xaf   :  { %v277_v41 = vadd.f32 %v276_v38, %v275_v37  ;;  %v328_v42 = vadd.f32 %v327_v39, %v326_v5  ;;  %v242_v44 = vpack.c.bf16 %v224_v49, %v224_v49  ;;  %v313_v46 = vmul.f32 %v224_v49, %v224_v49 }
  0xb0   :  { %255 = vst.msk [vmem:[%s649_s4 + $0x2c] sm:$0xf] %vm243_vm4, %v238_v43  ;;  %v335_v1 = vsel %vm260_vm1, %v309_v54, 0.0  ;;  %v290_v16 = vsel %vm260_vm1, %v224_v49, 0.0 }
  0xb1   :  { %v330_v50 = vadd.f32 %v329_v45, %v328_v42  ;;  %v279_v51 = vadd.f32 %v278_v47, %v277_v41  ;;  %259 = vst.msk [vmem:[%s649_s4 + $0x3c] sm:$0xf] %vm243_vm4, %v242_v44  ;;  %v343_v19 = vsel %vm260_vm1, %v313_v46, 0.0 }
  0xb3   :  { %v281_v55 = vadd.f32 %v280_v53, %v279_v51  ;;  %v332_v57 = vadd.f32 %v331_v52, %v330_v50 }
  0xb5   :  { %v334_v60 = vadd.f32 %v333_v58, %v332_v57  ;;  %v283_v62 = vadd.f32 %v282_v59, %v281_v55 }
  0xb7   :  { %v285_v2 = vadd.f32 %v284_v63, %v283_v62  ;;  %v336_v3 = vadd.f32 %v335_v1, %v334_v60 }
  0xb9   :  { %v338_v9 = vadd.f32 %v337_v4, %v336_v3  ;;  %v287_v10 = vadd.f32 %v286_v6, %v285_v2 }
  0xbb   :  { %v289_v13 = vadd.f32 %v288_v12, %v287_v10  ;;  %v340_v14 = vadd.f32 %v339_v11, %v338_v9 }
  0xbd   :  { %v342_v17 = vadd.f32 %v341_v15, %v340_v14  ;;  %v291_v18 = vadd.f32 %v290_v16, %v289_v13 }
  0xbf   :  { %v292_v20 = vrot.slane %v291_v18, 4  ;;  %v344_v61 = vadd.f32 %v343_v19, %v342_v17 }
  0xc1   :  { %v293_v21 = vadd.f32 %v292_v20, %v291_v18  ;;  %v345_v22 = vrot.slane %v344_v61, 4 }
  0xc3   :  { %v294_v23 = vrot.slane %v293_v21, 2  ;;  %v346_v24 = vadd.f32 %v345_v22, %v344_v61 }
  0xc5   :  { %v295_v26 = vadd.f32 %v294_v23, %v293_v21  ;;  %v347_v27 = vrot.slane %v346_v24, 2 }
  0xc7   :  { %v296_v25 = vrot.slane %v295_v26, 1  ;;  %v348_v28 = vadd.f32 %v347_v27, %v346_v24 }
  0xc9   :  { %v349_v29 = vrot.slane %v348_v28, 1  ;;  %v297_v30 = vadd.f32 %v296_v25, %v295_v26 }
  0xcb   :  { %v350_v31 = vadd.f32 %v349_v29, %v348_v28 }
  0xcd   :  { %v352_v32 = vsel %vm351_vm5, %v297_v30, %v350_v31 }
  0xce   :  { %v353_v33 = vsel %vm174_vm0, %v352_v32, 0.0 }
  0xcf   :  { %354 = vst.msk [vmem:[%s650_s5] sm:$0xff] %vm260_vm1, %v353_v33 }

// kernel: bottleneck_forward.5
= control target key start
LH: loop header
LB: loop body
LE: loop exit
PB: predicated region body
PF: predicated region fallthrough
CT: control target
= control target key end

     0   :  { %vm214_vm0 = vcmask 1041408   ;;  %vm117_vm1 = vcmask 31744   ;;  %vm451_vm2 = vcmask 27648   ;;  %vm846_vm3 = vcmask 1040384   ;;  %s1924_s1 = inlined_call_operand.vmem [shape: bf16[4,4], index: 1, kind: input, shape index: {}]   ;;  %s1925_s2 = inlined_call_operand.vmem [shape: f32[1,4], index: 2, kind: input, shape index: {}]   ;;  %s1926_s3 = inlined_call_operand.vmem [shape: f32[1,4], index: 3, kind: input, shape index: {}]   ;;  %s1927_s0 = inlined_call_operand.vmem [shape: f32[512,4], index: 0, kind: input, shape index: {}]   ;;  %s1928_s4 = inlined_call_operand.vmem [shape: bf16[512,4], index: 4, kind: output, shape index: {0}]   ;;  %s1929_s5 = inlined_call_operand.vmem [shape: f32[1,8,4], index: 5, kind: output, shape index: {1}]  }
   0x1   :  { %v116_v0 = vld [vmem:[%s1924_s1] sm:$0x3]  ;;  %v21_v2 = vld [vmem:[%s1927_s0 + $0x8] sm:$0xff]  ;;  %v22_v8 = vld [vmem:[%s1927_s0 + $0x10] sm:$0xff] }
   0x2   :  { %v20_v1 = vld [vmem:[%s1927_s0] sm:$0xff]  ;;  %v216_v3 = vsel %vm214_vm0, %v116_v0, 0  ;;  %v37_v6 = vld [vmem:[%s1927_s0 + $0x88] sm:$0xff]  ;;  %v23_v9 = vld [vmem:[%s1927_s0 + $0x18] sm:$0xff] }
   0x3   :  { %v84_v4 = vpack.c.bf16 %v21_v2, %v20_v1  ;;  %v36_v5 = vld [vmem:[%s1927_s0 + $0x80] sm:$0xff]  ;;  %225 = vmatpush.bf16.msra.mxu0 %v216_v3  ;;  %890 = vmatpush.bf16.msra.mxu1 %v216_v3  ;;  %v38_v10 = vld [vmem:[%s1927_s0 + $0x90] sm:$0xff]  ;;  %v39_v11 = vld [vmem:[%s1927_s0 + $0x98] sm:$0xff]  ;;  %v85_v12 = vpack.c.bf16 %v23_v9, %v22_v8 }
   0x4   :  { %v92_v7 = vpack.c.bf16 %v37_v6, %v36_v5  ;;  %891 = vmatpush.bf16.msra.mxu2 %v216_v3  ;;  %892 = vmatpush.bf16.msra.mxu3 %v216_v3  ;;  %v93_v13 = vpack.c.bf16 %v39_v11, %v38_v10  ;;  %v52_v14 = vld [vmem:[%s1927_s0 + $0x100] sm:$0xff]  ;;  %v53_v15 = vld [vmem:[%s1927_s0 + $0x108] sm:$0xff]  ;;  %v54_v23 = vld [vmem:[%s1927_s0 + $0x110] sm:$0xff] }
   0x5   :  { %v100_v16 = vpack.c.bf16 %v53_v15, %v52_v14  ;;  %v24_v17 = vld [vmem:[%s1927_s0 + $0x20] sm:$0xff]  ;;  %v25_v18 = vld [vmem:[%s1927_s0 + $0x28] sm:$0xff]  ;;  %v55_v24 = vld [vmem:[%s1927_s0 + $0x118] sm:$0xff] }
   0x6   :  { %858 = vmatmul.msk.bf16.vlgmr.msra.gmra.mxu0 %vm117_vm1, %v84_v4  ;;  %866 = vmatmul.msk.bf16.vlgmr.msra.gmra.mxu1 %vm117_vm1, %v92_v7  ;;  %v40_v19 = vld [vmem:[%s1927_s0 + $0xa0] sm:$0xff]  ;;  %v41_v20 = vld [vmem:[%s1927_s0 + $0xa8] sm:$0xff]  ;;  %v86_v21 = vpack.c.bf16 %v25_v18, %v24_v17  ;;  %v101_v25 = vpack.c.bf16 %v55_v24, %v54_v23  ;;  %v26_v26 = vld [vmem:[%s1927_s0 + $0x30] sm:$0xff] }
   0x7   :  { %874 = vmatmul.msk.bf16.vlgmr.msra.gmra.mxu2 %vm117_vm1, %v100_v16  ;;  %v94_v22 = vpack.c.bf16 %v41_v20, %v40_v19  ;;  %v27_v27 = vld [vmem:[%s1927_s0 + $0x38] sm:$0xff]  ;;  %v42_v28 = vld [vmem:[%s1927_s0 + $0xb0] sm:$0xff]  ;;  %v56_v32 = vld [vmem:[%s1927_s0 + $0x120] sm:$0xff] }
   0x8   :  { %v43_v29 = vld [vmem:[%s1927_s0 + $0xb8] sm:$0xff]  ;;  %v87_v30 = vpack.c.bf16 %v27_v27, %v26_v26  ;;  %v57_v33 = vld [vmem:[%s1927_s0 + $0x128] sm:$0xff]  ;;  %v68_v34 = vld [vmem:[%s1927_s0 + $0x180] sm:$0xff] }
   0x9   :  { %v95_v31 = vpack.c.bf16 %v43_v29, %v42_v28  ;;  %v102_v35 = vpack.c.bf16 %v57_v33, %v56_v32  ;;  %v69_v36 = vld [vmem:[%s1927_s0 + $0x188] sm:$0xff]  ;;  %v28_v38 = vld [vmem:[%s1927_s0 + $0x40] sm:$0xff]  ;;  %v58_v44 = vld [vmem:[%s1927_s0 + $0x130] sm:$0xff] }
   0xa   :  { %v108_v37 = vpack.c.bf16 %v69_v36, %v68_v34  ;;  %v29_v39 = vld [vmem:[%s1927_s0 + $0x48] sm:$0xff]  ;;  %v44_v40 = vld [vmem:[%s1927_s0 + $0xc0] sm:$0xff]  ;;  %v59_v45 = vld [vmem:[%s1927_s0 + $0x138] sm:$0xff] }
   0xb   :  { %v45_v41 = vld [vmem:[%s1927_s0 + $0xc8] sm:$0xff]  ;;  %v88_v42 = vpack.c.bf16 %v29_v39, %v28_v38  ;;  %v70_v46 = vld [vmem:[%s1927_s0 + $0x190] sm:$0xff]  ;;  %v103_v47 = vpack.c.bf16 %v59_v45, %v58_v44  ;;  %v71_v48 = vld [vmem:[%s1927_s0 + $0x198] sm:$0xff] }
   0xc   :  { %882 = vmatmul.msk.bf16.vlgmr.msra.gmra.mxu3 %vm117_vm1, %v108_v37  ;;  %v96_v43 = vpack.c.bf16 %v45_v41, %v44_v40  ;;  %v109_v49 = vpack.c.bf16 %v71_v48, %v70_v46  ;;  %v30_v50 = vld [vmem:[%s1927_s0 + $0x50] sm:$0xff]  ;;  %v31_v51 = vld [vmem:[%s1927_s0 + $0x58] sm:$0xff]  ;;  %v60_v56 = vld [vmem:[%s1927_s0 + $0x140] sm:$0xff] }
   0xd   :  { %v46_v52 = vld [vmem:[%s1927_s0 + $0xd0] sm:$0xff]  ;;  %v47_v53 = vld [vmem:[%s1927_s0 + $0xd8] sm:$0xff]  ;;  %v89_v54 = vpack.c.bf16 %v31_v51, %v30_v50  ;;  %v61_v57 = vld [vmem:[%s1927_s0 + $0x148] sm:$0xff] }
   0xe   :  { %v97_v55 = vpack.c.bf16 %v47_v53, %v46_v52  ;;  %v72_v58 = vld [vmem:[%s1927_s0 + $0x1a0] sm:$0xff]  ;;  %v104_v59 = vpack.c.bf16 %v61_v57, %v60_v56  ;;  %v73_v60 = vld [vmem:[%s1927_s0 + $0x1a8] sm:$0xff]  ;;  %v62_v4 = vld [vmem:[%s1927_s0 + $0x150] sm:$0xff] }
   0xf   :  { %v110_v61 = vpack.c.bf16 %v73_v60, %v72_v58  ;;  %v32_v62 = vld [vmem:[%s1927_s0 + $0x60] sm:$0xff]  ;;  %v33_v63 = vld [vmem:[%s1927_s0 + $0x68] sm:$0xff]  ;;  %v63_v5 = vld [vmem:[%s1927_s0 + $0x158] sm:$0xff] }
  0x10   :  { %v48_v0 = vld [vmem:[%s1927_s0 + $0xe0] sm:$0xff]  ;;  %v49_v1 = vld [vmem:[%s1927_s0 + $0xe8] sm:$0xff]  ;;  %v90_v2 = vpack.c.bf16 %v33_v63, %v32_v62  ;;  %v74_v6 = vld [vmem:[%s1927_s0 + $0x1b0] sm:$0xff]  ;;  %v105_v7 = vpack.c.bf16 %v63_v5, %v62_v4 }
  0x11   :  { %v98_v3 = vpack.c.bf16 %v49_v1, %v48_v0  ;;  %v75_v8 = vld [vmem:[%s1927_s0 + $0x1b8] sm:$0xff]  ;;  %v34_v10 = vld [vmem:[%s1927_s0 + $0x70] sm:$0xff]  ;;  %v64_v16 = vld [vmem:[%s1927_s0 + $0x160] sm:$0xff] }
  0x12   :  { %v111_v9 = vpack.c.bf16 %v75_v8, %v74_v6  ;;  %v35_v11 = vld [vmem:[%s1927_s0 + $0x78] sm:$0xff]  ;;  %v65_v17 = vld [vmem:[%s1927_s0 + $0x168] sm:$0xff]  ;;  %v76_v18 = vld [vmem:[%s1927_s0 + $0x1c0] sm:$0xff] }
  0x13   :  { %v91_v14 = vpack.c.bf16 %v35_v11, %v34_v10  ;;  %v106_v19 = vpack.c.bf16 %v65_v17, %v64_v16  ;;  %v77_v20 = vld [vmem:[%s1927_s0 + $0x1c8] sm:$0xff]  ;;  %v66_v26 = vld [vmem:[%s1927_s0 + $0x170] sm:$0xff]  ;;  %v67_v27 = vld [vmem:[%s1927_s0 + $0x178] sm:$0xff] }
  0x14   :  { %v78_v28 = vld [vmem:[%s1927_s0 + $0x1d0] sm:$0xff]  ;;  %v107_v29 = vpack.c.bf16 %v67_v27, %v66_v26  ;;  %v80_v51 = vld [vmem:[%s1927_s0 + $0x1e0] sm:$0xff]  ;;  %v81_v52 = vld [vmem:[%s1927_s0 + $0x1e8] sm:$0xff] }
  0x16   :  { %859 = vmatmul.msk.bf16.gmra.mxu0 %vm117_vm1, %v85_v12  ;;  %867 = vmatmul.msk.bf16.gmra.mxu1 %vm117_vm1, %v93_v13  ;;  %v50_v12 = vld [vmem:[%s1927_s0 + $0xf0] sm:$0xff]  ;;  %v51_v13 = vld [vmem:[%s1927_s0 + $0xf8] sm:$0xff] }
  0x17   :  { %875 = vmatmul.msk.bf16.gmra.mxu2 %vm117_vm1, %v101_v25  ;;  %v99_v15 = vpack.c.bf16 %v51_v13, %v50_v12  ;;  %v82_v12 = vld [vmem:[%s1927_s0 + $0x1f0] sm:$0xff]  ;;  %v83_v13 = vld [vmem:[%s1927_s0 + $0x1f8] sm:$0xff] }
  0x1c   :  { %883 = vmatmul.msk.bf16.gmra.mxu3 %vm117_vm1, %v109_v49 }
  0x26   :  { %860 = vmatmul.msk.bf16.gmra.mxu0 %vm117_vm1, %v86_v21  ;;  %868 = vmatmul.msk.bf16.gmra.mxu1 %vm117_vm1, %v94_v22  ;;  %v112_v21 = vpack.c.bf16 %v77_v20, %v76_v18 }
  0x27   :  { %876 = vmatmul.msk.bf16.gmra.mxu2 %vm117_vm1, %v102_v35 }
  0x2c   :  { %884 = vmatmul.msk.bf16.gmra.mxu3 %vm117_vm1, %v110_v61 }
  0x36   :  { %861 = vmatmul.msk.bf16.gmra.mxu0 %vm117_vm1, %v87_v30  ;;  %869 = vmatmul.msk.bf16.gmra.mxu1 %vm117_vm1, %v95_v31  ;;  %v79_v30 = vld [vmem:[%s1927_s0 + $0x1d8] sm:$0xff] }
  0x37   :  { %877 = vmatmul.msk.bf16.gmra.mxu2 %vm117_vm1, %v103_v47  ;;  %v113_v31 = vpack.c.bf16 %v79_v30, %v78_v28 }
  0x3c   :  { %885 = vmatmul.msk.bf16.gmra.mxu3 %vm117_vm1, %v111_v9 }
  0x46   :  { %862 = vmatmul.msk.bf16.gmra.mxu0 %vm117_vm1, %v88_v42  ;;  %870 = vmatmul.msk.bf16.gmra.mxu1 %vm117_vm1, %v96_v43 }
  0x47   :  { %878 = vmatmul.msk.bf16.gmra.mxu2 %vm117_vm1, %v104_v59 }
  0x4c   :  { %886 = vmatmul.msk.bf16.gmra.mxu3 %vm117_vm1, %v112_v21 }
  0x56   :  { %863 = vmatmul.msk.bf16.gmra.mxu0 %vm117_vm1, %v89_v54  ;;  %871 = vmatmul.msk.bf16.gmra.mxu1 %vm117_vm1, %v97_v55  ;;  %v114_v54 = vpack.c.bf16 %v81_v52, %v80_v51 }
  0x57   :  { %879 = vmatmul.msk.bf16.gmra.mxu2 %vm117_vm1, %v105_v7 }
  0x5c   :  { %887 = vmatmul.msk.bf16.gmra.mxu3 %vm117_vm1, %v113_v31 }
  0x66   :  { %864 = vmatmul.msk.bf16.gmra.mxu0 %vm117_vm1, %v90_v2  ;;  %872 = vmatmul.msk.bf16.gmra.mxu1 %vm117_vm1, %v98_v3 }
  0x67   :  { %880 = vmatmul.msk.bf16.gmra.mxu2 %vm117_vm1, %v106_v19 }
  0x6c   :  { %888 = vmatmul.msk.bf16.gmra.mxu3 %vm117_vm1, %v114_v54 }
  0x76   :  { %865 = vmatmul.msk.bf16.gmra.mxu0 %vm117_vm1, %v91_v14  ;;  %873 = vmatmul.msk.bf16.gmra.mxu1 %vm117_vm1, %v99_v15  ;;  %v115_v15 = vpack.c.bf16 %v83_v13, %v82_v12 }
  0x77   :  { %881 = vmatmul.msk.bf16.gmra.mxu2 %vm117_vm1, %v107_v29 }
  0x7c   :  { %889 = vmatmul.msk.bf16.gmra.mxu3 %vm117_vm1, %v115_v15 }
  0x83   :  { %v227_v22 = vpop.f32.mrf.mxu0  ;;  %v1123_v23 = vpop.f32.mrf.mxu1 }
  0x84   :  { %v387_v24 = vpack.c.bf16 %v227_v22, %v227_v22  ;;  %v403_v25 = vpack.c.bf16 %v1123_v23, %v1123_v23  ;;  %v649_v32 = vmul.f32 %v227_v22, %v227_v22  ;;  %v516_v33 = vsel %vm117_vm1, %v227_v22, 0.0 }
  0x86   :  { %452 = vst.msk [vmem:[%s1928_s4] sm:$0xf] %vm451_vm2, %v387_v24  ;;  %v713_v41 = vsel %vm117_vm1, %v649_v32, 0.0 }
  0x87   :  { %468 = vst.msk [vmem:[%s1928_s4 + $0x40] sm:$0xf] %vm451_vm2, %v403_v25 }
  0x8a   :  { %v1191_v62 = vpop.f32.mrf.mxu2 }
  0x8b   :  { %v229_v34 = vpop.f32.mrf.mxu0  ;;  %v1150_v35 = vpop.f32.mrf.mxu1  ;;  %v419_v2 = vpack.c.bf16 %v1191_v62, %v1191_v62 }
  0x8c   :  { %v388_v36 = vpack.c.bf16 %v229_v34, %v229_v34  ;;  %v517_v37 = vsel %vm117_vm1, %v229_v34, 0.0  ;;  %v650_v38 = vmul.f32 %v229_v34, %v229_v34  ;;  %v404_v39 = vpack.c.bf16 %v1150_v35, %v1150_v35 }
  0x8d   :  { %v518_v40 = vadd.f32 %v517_v37, %v516_v33  ;;  %484 = vst.msk [vmem:[%s1928_s4 + $0x80] sm:$0xf] %vm451_vm2, %v419_v2 }
  0x8e   :  { %453 = vst.msk [vmem:[%s1928_s4 + $0x4] sm:$0xf] %vm451_vm2, %v388_v36  ;;  %v714_v42 = vsel %vm117_vm1, %v650_v38, 0.0 }
  0x8f   :  { %v715_v43 = vadd.f32 %v714_v42, %v713_v41  ;;  %469 = vst.msk [vmem:[%s1928_s4 + $0x44] sm:$0xf] %vm451_vm2, %v404_v39  ;;  %v1299_v36 = vpop.f32.mrf.mxu3 }
  0x90   :  { %v435_v38 = vpack.c.bf16 %v1299_v36, %v1299_v36 }
  0x92   :  { %v1213_v9 = vpop.f32.mrf.mxu2  ;;  %500 = vst.msk [vmem:[%s1928_s4 + $0xc0] sm:$0xf] %vm451_vm2, %v435_v38 }
  0x93   :  { %v232_v44 = vpop.f32.mrf.mxu0  ;;  %v1165_v45 = vpop.f32.mrf.mxu1  ;;  %v420_v11 = vpack.c.bf16 %v1213_v9, %v1213_v9 }
  0x94   :  { %v389_v46 = vpack.c.bf16 %v232_v44, %v232_v44  ;;  %v519_v47 = vsel %vm117_vm1, %v232_v44, 0.0  ;;  %v651_v48 = vmul.f32 %v232_v44, %v232_v44  ;;  %v405_v49 = vpack.c.bf16 %v1165_v45, %v1165_v45 }
  0x95   :  { %v520_v50 = vadd.f32 %v519_v47, %v518_v40  ;;  %485 = vst.msk [vmem:[%s1928_s4 + $0x84] sm:$0xf] %vm451_vm2, %v420_v11 }
  0x96   :  { %454 = vst.msk [vmem:[%s1928_s4 + $0x8] sm:$0xf] %vm451_vm2, %v389_v46  ;;  %v716_v53 = vsel %vm117_vm1, %v651_v48, 0.0 }
  0x97   :  { %v717_v55 = vadd.f32 %v716_v53, %v715_v43  ;;  %470 = vst.msk [vmem:[%s1928_s4 + $0x48] sm:$0xf] %vm451_vm2, %v405_v49  ;;  %v1331_v44 = vpop.f32.mrf.mxu3 }
  0x98   :  { %v436_v47 = vpack.c.bf16 %v1331_v44, %v1331_v44 }
  0x9a   :  { %v1249_v21 = vpop.f32.mrf.mxu2  ;;  %501 = vst.msk [vmem:[%s1928_s4 + $0xc4] sm:$0xf] %vm451_vm2, %v436_v47 }
  0x9b   :  { %v234_v56 = vpop.f32.mrf.mxu0  ;;  %v1186_v57 = vpop.f32.mrf.mxu1  ;;  %v421_v22 = vpack.c.bf16 %v1249_v21, %v1249_v21 }
  0x9c   :  { %v390_v58 = vpack.c.bf16 %v234_v56, %v234_v56  ;;  %v521_v59 = vsel %vm117_vm1, %v234_v56, 0.0  ;;  %v652_v60 = vmul.f32 %v234_v56, %v234_v56  ;;  %v406_v61 = vpack.c.bf16 %v1186_v57, %v1186_v57 }
  0x9d   :  { %v522_v63 = vadd.f32 %v521_v59, %v520_v50  ;;  %486 = vst.msk [vmem:[%s1928_s4 + $0x88] sm:$0xf] %vm451_vm2, %v421_v22 }
  0x9e   :  { %455 = vst.msk [vmem:[%s1928_s4 + $0xc] sm:$0xf] %vm451_vm2, %v390_v58  ;;  %v718_v0 = vsel %vm117_vm1, %v652_v60, 0.0 }
  0x9f   :  { %v719_v1 = vadd.f32 %v718_v0, %v717_v55  ;;  %471 = vst.msk [vmem:[%s1928_s4 + $0x4c] sm:$0xf] %vm451_vm2, %v406_v61  ;;  %v1363_v53 = vpop.f32.mrf.mxu3 }
  0xa0   :  { %v437_v55 = vpack.c.bf16 %v1363_v53, %v1363_v53 }
  0xa2   :  { %v1273_v28 = vpop.f32.mrf.mxu2  ;;  %502 = vst.msk [vmem:[%s1928_s4 + $0xc8] sm:$0xf] %vm451_vm2, %v437_v55 }
  0xa3   :  { %v237_v3 = vpop.f32.mrf.mxu0  ;;  %v1208_v4 = vpop.f32.mrf.mxu1  ;;  %v422_v29 = vpack.c.bf16 %v1273_v28, %v1273_v28 }
  0xa4   :  { %v391_v5 = vpack.c.bf16 %v237_v3, %v237_v3  ;;  %v523_v6 = vsel %vm117_vm1, %v237_v3, 0.0  ;;  %v653_v7 = vmul.f32 %v237_v3, %v237_v3  ;;  %v407_v8 = vpack.c.bf16 %v1208_v4, %v1208_v4 }
  0xa5   :  { %v1215_v10 = vadd.f32 %v523_v6, %v522_v63  ;;  %487 = vst.msk [vmem:[%s1928_s4 + $0x8c] sm:$0xf] %vm451_vm2, %v422_v29 }
  0xa6   :  { %456 = vst.msk [vmem:[%s1928_s4 + $0x10] sm:$0xf] %vm451_vm2, %v391_v5  ;;  %v720_v14 = vsel %vm117_vm1, %v653_v7, 0.0 }
  0xa7   :  { %v1230_v16 = vadd.f32 %v720_v14, %v719_v1  ;;  %472 = vst.msk [vmem:[%s1928_s4 + $0x50] sm:$0xf] %vm451_vm2, %v407_v8  ;;  %v1395_v63 = vpop.f32.mrf.mxu3 }
  0xa8   :  { %v438_v1 = vpack.c.bf16 %v1395_v63, %v1395_v63 }
  0xaa   :  { %v1297_v34 = vpop.f32.mrf.mxu2  ;;  %503 = vst.msk [vmem:[%s1928_s4 + $0xcc] sm:$0xf] %vm451_vm2, %v438_v1 }
  0xab   :  { %v1241_v17 = vpop.f32.mrf.mxu0  ;;  %v1243_v18 = vpop.f32.mrf.mxu1  ;;  %v423_v37 = vpack.c.bf16 %v1297_v34, %v1297_v34 }
  0xac   :  { %v392_v19 = vpack.c.bf16 %v1241_v17, %v1241_v17  ;;  %v408_v20 = vpack.c.bf16 %v1243_v18, %v1243_v18  ;;  %v654_v13 = vmul.f32 %v1241_v17, %v1241_v17 }
  0xad   :  { %488 = vst.msk [vmem:[%s1928_s4 + $0x90] sm:$0xf] %vm451_vm2, %v423_v37 }
  0xae   :  { %457 = vst.msk [vmem:[%s1928_s4 + $0x14] sm:$0xf] %vm451_vm2, %v392_v19 }
  0xaf   :  { %473 = vst.msk [vmem:[%s1928_s4 + $0x54] sm:$0xf] %vm451_vm2, %v408_v20  ;;  %v1423_v8 = vpop.f32.mrf.mxu3 }
  0xb0   :  { %v439_v29 = vpack.c.bf16 %v1423_v8, %v1423_v8 }
  0xb2   :  { %v1329_v43 = vpop.f32.mrf.mxu2  ;;  %504 = vst.msk [vmem:[%s1928_s4 + $0xd0] sm:$0xf] %vm451_vm2, %v439_v29 }
  0xb3   :  { %v1265_v24 = vpop.f32.mrf.mxu0  ;;  %v1267_v25 = vpop.f32.mrf.mxu1  ;;  %v424_v46 = vpack.c.bf16 %v1329_v43, %v1329_v43 }
  0xb4   :  { %v393_v26 = vpack.c.bf16 %v1265_v24, %v1265_v24  ;;  %v409_v27 = vpack.c.bf16 %v1267_v25, %v1267_v25 }
  0xb5   :  { %489 = vst.msk [vmem:[%s1928_s4 + $0x94] sm:$0xf] %vm451_vm2, %v424_v46 }
  0xb6   :  { %458 = vst.msk [vmem:[%s1928_s4 + $0x18] sm:$0xf] %vm451_vm2, %v393_v26  ;;  %v525_v26 = vsel %vm117_vm1, %v1241_v17, 0.0  ;;  %v722_v17 = vsel %vm117_vm1, %v654_v13, 0.0 }
  0xb7   :  { %474 = vst.msk [vmem:[%s1928_s4 + $0x58] sm:$0xf] %vm451_vm2, %v409_v27  ;;  %v1441_v20 = vpop.f32.mrf.mxu3  ;;  %v655_v27 = vmul.f32 %v1265_v24, %v1265_v24  ;;  %v526_v38 = vadd.f32 %v525_v26, %v1215_v10  ;;  %v723_v10 = vadd.f32 %v722_v17, %v1230_v16 }
  0xba   :  { %v1361_v52 = vpop.f32.mrf.mxu2 }
  0xbb   :  { %v1289_v30 = vpop.f32.mrf.mxu0  ;;  %v1291_v31 = vpop.f32.mrf.mxu1  ;;  %v425_v54 = vpack.c.bf16 %v1361_v52, %v1361_v52 }
  0xbc   :  { %v394_v32 = vpack.c.bf16 %v1289_v30, %v1289_v30  ;;  %v410_v33 = vpack.c.bf16 %v1291_v31, %v1291_v31 }
  0xbd   :  { %490 = vst.msk [vmem:[%s1928_s4 + $0x98] sm:$0xf] %vm451_vm2, %v425_v54 }
  0xbe   :  { %459 = vst.msk [vmem:[%s1928_s4 + $0x1c] sm:$0xf] %vm451_vm2, %v394_v32  ;;  %v656_v32 = vmul.f32 %v1289_v30, %v1289_v30 }
  0xbf   :  { %475 = vst.msk [vmem:[%s1928_s4 + $0x5c] sm:$0xf] %vm451_vm2, %v410_v33  ;;  %v527_v33 = vsel %vm117_vm1, %v1265_v24, 0.0  ;;  %v724_v24 = vsel %vm117_vm1, %v655_v27, 0.0 }
  0xc0   :  { %v528_v47 = vadd.f32 %v527_v33, %v526_v38  ;;  %v725_v1 = vadd.f32 %v724_v24, %v723_v10 }
  0xc2   :  { %v1393_v61 = vpop.f32.mrf.mxu2 }
  0xc3   :  { %v1321_v39 = vpop.f32.mrf.mxu0  ;;  %v1323_v40 = vpop.f32.mrf.mxu1  ;;  %v426_v0 = vpack.c.bf16 %v1393_v61, %v1393_v61 }
  0xc4   :  { %v395_v41 = vpack.c.bf16 %v1321_v39, %v1321_v39  ;;  %v411_v42 = vpack.c.bf16 %v1323_v40, %v1323_v40  ;;  %v657_v46 = vmul.f32 %v1321_v39, %v1321_v39 }
  0xc5   :  { %491 = vst.msk [vmem:[%s1928_s4 + $0x9c] sm:$0xf] %vm451_vm2, %v426_v0  ;;  %v1502_v0 = vpop.f32.mrf.mxu3 }
  0xc6   :  { %460 = vst.msk [vmem:[%s1928_s4 + $0x20] sm:$0xf] %vm451_vm2, %v395_v41  ;;  %v440_v41 = vpack.c.bf16 %v1441_v20, %v1441_v20 }
  0xc7   :  { %476 = vst.msk [vmem:[%s1928_s4 + $0x60] sm:$0xf] %vm451_vm2, %v411_v42  ;;  %v529_v42 = vsel %vm117_vm1, %v1289_v30, 0.0  ;;  %v531_v30 = vsel %vm117_vm1, %v1321_v39, 0.0 }
  0xc8   :  { %505 = vst.msk [vmem:[%s1928_s4 + $0xd4] sm:$0xf] %vm451_vm2, %v440_v41 }
  0xca   :  { %v1421_v7 = vpop.f32.mrf.mxu2 }
  0xcb   :  { %v1353_v48 = vpop.f32.mrf.mxu0  ;;  %v1355_v49 = vpop.f32.mrf.mxu1  ;;  %v427_v22 = vpack.c.bf16 %v1421_v7, %v1421_v7 }
  0xcc   :  { %v396_v50 = vpack.c.bf16 %v1353_v48, %v1353_v48  ;;  %v412_v51 = vpack.c.bf16 %v1355_v49, %v1355_v49  ;;  %v658_v55 = vmul.f32 %v1353_v48, %v1353_v48  ;;  %v533_v13 = vsel %vm117_vm1, %v1353_v48, 0.0 }
  0xcd   :  { %492 = vst.msk [vmem:[%s1928_s4 + $0xa0] sm:$0xf] %vm451_vm2, %v427_v22 }
  0xce   :  { %461 = vst.msk [vmem:[%s1928_s4 + $0x24] sm:$0xf] %vm451_vm2, %v396_v50  ;;  %v726_v50 = vsel %vm117_vm1, %v656_v32, 0.0  ;;  %v730_v26 = vsel %vm117_vm1, %v658_v55, 0.0 }
  0xcf   :  { %477 = vst.msk [vmem:[%s1928_s4 + $0x64] sm:$0xf] %vm451_vm2, %v412_v51 }
  0xd2   :  { %v1439_v19 = vpop.f32.mrf.mxu2 }
  0xd3   :  { %v1385_v56 = vpop.f32.mrf.mxu0  ;;  %v1387_v58 = vpop.f32.mrf.mxu1  ;;  %v428_v37 = vpack.c.bf16 %v1439_v19, %v1439_v19 }
  0xd4   :  { %v397_v59 = vpack.c.bf16 %v1385_v56, %v1385_v56  ;;  %v413_v60 = vpack.c.bf16 %v1387_v58, %v1387_v58  ;;  %v659_v39 = vmul.f32 %v1385_v56, %v1385_v56  ;;  %v535_v48 = vsel %vm117_vm1, %v1385_v56, 0.0 }
  0xd5   :  { %493 = vst.msk [vmem:[%s1928_s4 + $0xa4] sm:$0xf] %vm451_vm2, %v428_v37 }
  0xd6   :  { %462 = vst.msk [vmem:[%s1928_s4 + $0x28] sm:$0xf] %vm451_vm2, %v397_v59  ;;  %v732_v32 = vsel %vm117_vm1, %v659_v39, 0.0 }
  0xd7   :  { %478 = vst.msk [vmem:[%s1928_s4 + $0x68] sm:$0xf] %vm451_vm2, %v413_v60 }
  0xda   :  { %v1500_v60 = vpop.f32.mrf.mxu2 }
  0xdb   :  { %v254_v2 = vpop.f32.mrf.mxu0  ;;  %v1417_v3 = vpop.f32.mrf.mxu1 }
  0xdc   :  { %v398_v5 = vpack.c.bf16 %v254_v2, %v254_v2  ;;  %v414_v6 = vpack.c.bf16 %v1417_v3, %v1417_v3  ;;  %v660_v22 = vmul.f32 %v254_v2, %v254_v2  ;;  %v537_v17 = vsel %vm117_vm1, %v254_v2, 0.0 }
  0xde   :  { %463 = vst.msk [vmem:[%s1928_s4 + $0x2c] sm:$0xf] %vm451_vm2, %v398_v5  ;;  %v530_v5 = vadd.f32 %v529_v42, %v528_v47  ;;  %v734_v41 = vsel %vm117_vm1, %v660_v22, 0.0 }
  0xdf   :  { %479 = vst.msk [vmem:[%s1928_s4 + $0x6c] sm:$0xf] %vm451_vm2, %v414_v6  ;;  %v728_v6 = vsel %vm117_vm1, %v657_v46, 0.0 }
  0xe3   :  { %v257_v11 = vpop.f32.mrf.mxu0  ;;  %v1433_v12 = vpop.f32.mrf.mxu1 }
  0xe4   :  { %v399_v14 = vpack.c.bf16 %v257_v11, %v257_v11  ;;  %v415_v15 = vpack.c.bf16 %v1433_v12, %v1433_v12  ;;  %v661_v33 = vmul.f32 %v257_v11, %v257_v11  ;;  %v539_v46 = vsel %vm117_vm1, %v257_v11, 0.0 }
  0xe6   :  { %464 = vst.msk [vmem:[%s1928_s4 + $0x30] sm:$0xf] %vm451_vm2, %v399_v14  ;;  %v727_v14 = vadd.f32 %v726_v50, %v725_v1  ;;  %v1528_v50 = vpop.f32.mrf.mxu2 }
  0xe7   :  { %480 = vst.msk [vmem:[%s1928_s4 + $0x70] sm:$0xf] %vm451_vm2, %v415_v15  ;;  %v532_v15 = vadd.f32 %v531_v30, %v530_v5  ;;  %v1530_v30 = vpop.f32.mrf.mxu3  ;;  %v441_v5 = vpack.c.bf16 %v1502_v0, %v1502_v0 }
  0xe8   :  { %v729_v27 = vadd.f32 %v728_v6, %v727_v14  ;;  %v430_v14 = vpack.c.bf16 %v1528_v50, %v1528_v50 }
  0xe9   :  { %v534_v29 = vadd.f32 %v533_v13, %v532_v15  ;;  %506 = vst.msk [vmem:[%s1928_s4 + $0xd8] sm:$0xf] %vm451_vm2, %v441_v5  ;;  %v549_v5 = vsel %vm117_vm1, %v1150_v35, 0.0 }
  0xea   :  { %v731_v37 = vadd.f32 %v730_v26, %v729_v27  ;;  %v442_v26 = vpack.c.bf16 %v1530_v30, %v1530_v30  ;;  %495 = vst.msk [vmem:[%s1928_s4 + $0xac] sm:$0xf] %vm451_vm2, %v430_v14  ;;  %v665_v27 = vmul.f32 %v1123_v23, %v1123_v23  ;;  %v668_v14 = vmul.f32 %v1186_v57, %v1186_v57 }
  0xeb   :  { %v259_v51 = vpop.f32.mrf.mxu0  ;;  %v1488_v54 = vpop.f32.mrf.mxu1  ;;  %v536_v38 = vadd.f32 %v535_v48, %v534_v29 }
  0xec   :  { %v400_v59 = vpack.c.bf16 %v259_v51, %v259_v51  ;;  %v416_v16 = vpack.c.bf16 %v1488_v54, %v1488_v54  ;;  %v662_v10 = vmul.f32 %v259_v51, %v259_v51  ;;  %v733_v2 = vadd.f32 %v732_v32, %v731_v37  ;;  %507 = vst.msk [vmem:[%s1928_s4 + $0xdc] sm:$0xf] %vm451_vm2, %v442_v26 }
  0xed   :  { %v538_v55 = vadd.f32 %v537_v17, %v536_v38  ;;  %v541_v1 = vsel %vm117_vm1, %v259_v51, 0.0 }
  0xee   :  { %465 = vst.msk [vmem:[%s1928_s4 + $0x34] sm:$0xf] %vm451_vm2, %v400_v59  ;;  %v429_v59 = vpack.c.bf16 %v1500_v60, %v1500_v60  ;;  %v735_v6 = vadd.f32 %v734_v41, %v733_v2  ;;  %v738_v39 = vsel %vm117_vm1, %v662_v10, 0.0  ;;  %v547_v2 = vsel %vm117_vm1, %v1123_v23, 0.0 }
  0xef   :  { %481 = vst.msk [vmem:[%s1928_s4 + $0x74] sm:$0xf] %vm451_vm2, %v416_v16  ;;  %v736_v16 = vsel %vm117_vm1, %v661_v33, 0.0  ;;  %v540_v13 = vadd.f32 %v539_v46, %v538_v55  ;;  %v1576_v46 = vpop.f32.mrf.mxu2  ;;  %v1578_v10 = vpop.f32.mrf.mxu3  ;;  %v666_v55 = vmul.f32 %v1150_v35, %v1150_v35  ;;  %v744_v23 = vsel %vm117_vm1, %v665_v27, 0.0 }
  0xf0   :  { %494 = vst.msk [vmem:[%s1928_s4 + $0xa8] sm:$0xf] %vm451_vm2, %v429_v59  ;;  %v737_v15 = vadd.f32 %v736_v16, %v735_v6  ;;  %v667_v16 = vmul.f32 %v1165_v45, %v1165_v45  ;;  %v669_v35 = vmul.f32 %v1208_v4, %v1208_v4  ;;  %v431_v27 = vpack.c.bf16 %v1576_v46, %v1576_v46 }
  0xf1   :  { %v542_v22 = vadd.f32 %v541_v1, %v540_v13 }
  0xf2   :  { %v739_v29 = vadd.f32 %v738_v39, %v737_v15  ;;  %v746_v39 = vsel %vm117_vm1, %v666_v55, 0.0  ;;  %v748_v15 = vsel %vm117_vm1, %v667_v16, 0.0  ;;  %496 = vst.msk [vmem:[%s1928_s4 + $0xb0] sm:$0xf] %vm451_vm2, %v431_v27  ;;  %v557_v55 = vsel %vm117_vm1, %v1243_v18, 0.0 }
  0xf3   :  { %v262_v24 = vpop.f32.mrf.mxu0  ;;  %v1523_v42 = vpop.f32.mrf.mxu1 }
  0xf4   :  { %v401_v47 = vpack.c.bf16 %v262_v24, %v262_v24  ;;  %v417_v56 = vpack.c.bf16 %v1523_v42, %v1523_v42  ;;  %v663_v11 = vmul.f32 %v262_v24, %v262_v24  ;;  %v543_v51 = vsel %vm117_vm1, %v262_v24, 0.0 }
  0xf5   :  { %v544_v32 = vadd.f32 %v543_v51, %v542_v22  ;;  %v551_v51 = vsel %vm117_vm1, %v1165_v45, 0.0 }
  0xf6   :  { %466 = vst.msk [vmem:[%s1928_s4 + $0x38] sm:$0xf] %vm451_vm2, %v401_v47  ;;  %v740_v48 = vsel %vm117_vm1, %v663_v11, 0.0 }
  0xf7   :  { %482 = vst.msk [vmem:[%s1928_s4 + $0x78] sm:$0xf] %vm451_vm2, %v417_v56  ;;  %v741_v47 = vadd.f32 %v740_v48, %v739_v29  ;;  %v553_v48 = vsel %vm117_vm1, %v1186_v57, 0.0  ;;  %v443_v29 = vpack.c.bf16 %v1578_v10, %v1578_v10  ;;  %v1612_v45 = vpop.f32.mrf.mxu2  ;;  %v555_v57 = vsel %vm117_vm1, %v1208_v4, 0.0 }
  0xf9   :  { %508 = vst.msk [vmem:[%s1928_s4 + $0xe0] sm:$0xf] %vm451_vm2, %v443_v29 }
  0xfb   :  { %v264_v17 = vpop.f32.mrf.mxu0  ;;  %v1567_v33 = vpop.f32.mrf.mxu1 }
  0xfc   :  { %v402_v37 = vpack.c.bf16 %v264_v17, %v264_v17  ;;  %v545_v38 = vsel %vm117_vm1, %v264_v17, 0.0  ;;  %v664_v41 = vmul.f32 %v264_v17, %v264_v17  ;;  %v418_v24 = vpack.c.bf16 %v1567_v33, %v1567_v33 }
  0xfd   :  { %v546_v56 = vadd.f32 %v545_v38, %v544_v32  ;;  %v1614_v32 = vpop.f32.mrf.mxu3  ;;  %v750_v38 = vsel %vm117_vm1, %v668_v14, 0.0 }
  0xfe   :  { %467 = vst.msk [vmem:[%s1928_s4 + $0x3c] sm:$0xf] %vm451_vm2, %v402_v37  ;;  %v742_v59 = vsel %vm117_vm1, %v664_v41, 0.0  ;;  %v670_v41 = vmul.f32 %v1243_v18, %v1243_v18  ;;  %v444_v4 = vpack.c.bf16 %v1614_v32, %v1614_v32  ;;  %v559_v18 = vsel %vm117_vm1, %v1267_v25, 0.0 }
  0xff   :  { %v548_v1 = vadd.f32 %v547_v2, %v546_v56  ;;  %v743_v11 = vadd.f32 %v742_v59, %v741_v47  ;;  %483 = vst.msk [vmem:[%s1928_s4 + $0x7c] sm:$0xf] %vm451_vm2, %v418_v24  ;;  %v432_v24 = vpack.c.bf16 %v1612_v45, %v1612_v45  ;;  %v752_v2 = vsel %vm117_vm1, %v669_v35, 0.0  ;;  %v1656_v14 = vpop.f32.mrf.mxu2 }
 0x100   :  { %v671_v59 = vmul.f32 %v1267_v25, %v1267_v25  ;;  %509 = vst.msk [vmem:[%s1928_s4 + $0xe4] sm:$0xf] %vm451_vm2, %v444_v4  ;;  %v674_v35 = vmul.f32 %v1355_v49, %v1355_v49 }
 0x101   :  { %v550_v6 = vadd.f32 %v549_v5, %v548_v1  ;;  %v745_v13 = vadd.f32 %v744_v23, %v743_v11  ;;  %497 = vst.msk [vmem:[%s1928_s4 + $0xb4] sm:$0xf] %vm451_vm2, %v432_v24  ;;  %v754_v11 = vsel %vm117_vm1, %v670_v41, 0.0  ;;  %v672_v23 = vmul.f32 %v1291_v31, %v1291_v31 }
 0x102   :  { %v762_v41 = vsel %vm117_vm1, %v674_v35, 0.0  ;;  %v676_v24 = vmul.f32 %v1417_v3, %v1417_v3  ;;  %v680_v35 = vmul.f32 %v1567_v33, %v1567_v33 }
 0x103   :  { %v552_v22 = vadd.f32 %v551_v51, %v550_v6  ;;  %v747_v26 = vadd.f32 %v746_v39, %v745_v13  ;;  %v756_v13 = vsel %vm117_vm1, %v671_v59, 0.0  ;;  %v561_v39 = vsel %vm117_vm1, %v1291_v31, 0.0 }
 0x104   :  { %v673_v51 = vmul.f32 %v1323_v40, %v1323_v40  ;;  %v758_v25 = vsel %vm117_vm1, %v672_v23, 0.0  ;;  %v675_v31 = vmul.f32 %v1387_v58, %v1387_v58  ;;  %v678_v23 = vmul.f32 %v1488_v54, %v1488_v54 }
 0x105   :  { %v554_v17 = vadd.f32 %v553_v48, %v552_v22  ;;  %v749_v37 = vadd.f32 %v748_v15, %v747_v26  ;;  %v1658_v15 = vpop.f32.mrf.mxu3  ;;  %v563_v48 = vsel %vm117_vm1, %v1323_v40, 0.0  ;;  %v567_v40 = vsel %vm117_vm1, %v1387_v58, 0.0 }
 0x106   :  { %v445_v59 = vpack.c.bf16 %v1658_v15, %v1658_v15 }
 0x107   :  { %v556_v47 = vadd.f32 %v555_v57, %v554_v17  ;;  %v751_v56 = vadd.f32 %v750_v38, %v749_v37  ;;  %v760_v17 = vsel %vm117_vm1, %v673_v51, 0.0  ;;  %v565_v37 = vsel %vm117_vm1, %v1355_v49, 0.0  ;;  %v1684_v58 = vpop.f32.mrf.mxu2 }
 0x108   :  { %v677_v49 = vmul.f32 %v1433_v12, %v1433_v12  ;;  %510 = vst.msk [vmem:[%s1928_s4 + $0xe8] sm:$0xf] %vm451_vm2, %v445_v59  ;;  %v573_v51 = vsel %vm117_vm1, %v1488_v54, 0.0  ;;  %v575_v54 = vsel %vm117_vm1, %v1523_v42, 0.0 }
 0x109   :  { %v558_v16 = vadd.f32 %v557_v55, %v556_v47  ;;  %v753_v1 = vadd.f32 %v752_v2, %v751_v56  ;;  %v764_v47 = vsel %vm117_vm1, %v675_v31, 0.0  ;;  %v569_v2 = vsel %vm117_vm1, %v1417_v3, 0.0 }
 0x10a   :  { %v433_v55 = vpack.c.bf16 %v1656_v14, %v1656_v14  ;;  %v571_v3 = vsel %vm117_vm1, %v1433_v12, 0.0 }
 0x10b   :  { %v755_v5 = vadd.f32 %v754_v11, %v753_v1  ;;  %v560_v6 = vadd.f32 %v559_v18, %v558_v16  ;;  %v766_v18 = vsel %vm117_vm1, %v676_v24, 0.0  ;;  %v774_v24 = vsel %vm117_vm1, %v680_v35, 0.0 }
 0x10c   :  { %498 = vst.msk [vmem:[%s1928_s4 + $0xb8] sm:$0xf] %vm451_vm2, %v433_v55 }
 0x10d   :  { %v562_v22 = vadd.f32 %v561_v39, %v560_v6  ;;  %v757_v26 = vadd.f32 %v756_v13, %v755_v5  ;;  %v1686_v16 = vpop.f32.mrf.mxu3  ;;  %v434_v5 = vpack.c.bf16 %v1684_v58, %v1684_v58  ;;  %v768_v39 = vsel %vm117_vm1, %v677_v49, 0.0 }
 0x10e   :  { %v446_v12 = vpack.c.bf16 %v1686_v16, %v1686_v16 }
 0x10f   :  { %v564_v27 = vadd.f32 %v563_v48, %v562_v22  ;;  %v759_v29 = vadd.f32 %v758_v25, %v757_v26  ;;  %v679_v22 = vmul.f32 %v1523_v42, %v1523_v42  ;;  %499 = vst.msk [vmem:[%s1928_s4 + $0xbc] sm:$0xf] %vm451_vm2, %v434_v5  ;;  %v770_v48 = vsel %vm117_vm1, %v678_v23, 0.0 }
 0x110   :  { %511 = vst.msk [vmem:[%s1928_s4 + $0xec] sm:$0xf] %vm451_vm2, %v446_v12  ;;  %v579_v42 = vsel %vm117_vm1, %v1191_v62, 0.0  ;;  %v685_v23 = vmul.f32 %v1297_v34, %v1297_v34 }
 0x111   :  { %v566_v38 = vadd.f32 %v565_v37, %v564_v27  ;;  %v761_v57 = vadd.f32 %v760_v17, %v759_v29  ;;  %v681_v29 = vmul.f32 %v1191_v62, %v1191_v62  ;;  %v772_v17 = vsel %vm117_vm1, %v679_v22, 0.0 }
 0x112   :  { %v577_v37 = vsel %vm117_vm1, %v1567_v33, 0.0  ;;  %v683_v33 = vmul.f32 %v1249_v21, %v1249_v21  ;;  %v583_v62 = vsel %vm117_vm1, %v1249_v21, 0.0 }
 0x113   :  { %v568_v56 = vadd.f32 %v567_v40, %v566_v38  ;;  %v763_v4 = vadd.f32 %v762_v41, %v761_v57  ;;  %v682_v40 = vmul.f32 %v1213_v9, %v1213_v9 }
 0x115   :  { %v570_v1 = vadd.f32 %v569_v2, %v568_v56  ;;  %v765_v11 = vadd.f32 %v764_v47, %v763_v4  ;;  %v1728_v38 = vpop.f32.mrf.mxu3  ;;  %v776_v4 = vsel %vm117_vm1, %v681_v29, 0.0  ;;  %v581_v2 = vsel %vm117_vm1, %v1213_v9, 0.0 }
 0x116   :  { %v778_v59 = vsel %vm117_vm1, %v682_v40, 0.0  ;;  %v585_v9 = vsel %vm117_vm1, %v1273_v28, 0.0  ;;  %v447_v5 = vpack.c.bf16 %v1728_v38, %v1728_v38  ;;  %v688_v29 = vmul.f32 %v1393_v61, %v1393_v61 }
 0x117   :  { %v572_v6 = vadd.f32 %v571_v3, %v570_v1  ;;  %v767_v13 = vadd.f32 %v766_v18, %v765_v11  ;;  %v684_v1 = vmul.f32 %v1273_v28, %v1273_v28  ;;  %v780_v3 = vsel %vm117_vm1, %v683_v33, 0.0 }
 0x118   :  { %v686_v28 = vmul.f32 %v1329_v43, %v1329_v43  ;;  %512 = vst.msk [vmem:[%s1928_s4 + $0xf0] sm:$0xf] %vm451_vm2, %v447_v5 }
 0x119   :  { %v769_v26 = vadd.f32 %v768_v39, %v767_v13  ;;  %v574_v25 = vadd.f32 %v573_v51, %v572_v6  ;;  %v782_v39 = vsel %vm117_vm1, %v684_v1, 0.0  ;;  %v587_v51 = vsel %vm117_vm1, %v1297_v34, 0.0 }
 0x11a   :  { %v589_v34 = vsel %vm117_vm1, %v1329_v43, 0.0  ;;  %v593_v43 = vsel %vm117_vm1, %v1393_v61, 0.0  ;;  %v597_v61 = vsel %vm117_vm1, %v1439_v19, 0.0  ;;  %v692_v1 = vmul.f32 %v1528_v50, %v1528_v50 }
 0x11b   :  { %v771_v31 = vadd.f32 %v770_v48, %v769_v26  ;;  %v576_v27 = vadd.f32 %v575_v54, %v574_v25  ;;  %v784_v25 = vsel %vm117_vm1, %v685_v23, 0.0  ;;  %v687_v48 = vmul.f32 %v1361_v52, %v1361_v52 }
 0x11d   :  { %v773_v57 = vadd.f32 %v772_v17, %v771_v31  ;;  %v578_v41 = vadd.f32 %v577_v37, %v576_v27  ;;  %v1752_v6 = vpop.f32.mrf.mxu3  ;;  %v786_v31 = vsel %vm117_vm1, %v686_v28, 0.0  ;;  %v591_v27 = vsel %vm117_vm1, %v1361_v52, 0.0 }
 0x11e   :  { %v448_v12 = vpack.c.bf16 %v1752_v6, %v1752_v6  ;;  %v595_v52 = vsel %vm117_vm1, %v1421_v7, 0.0 }
 0x11f   :  { %v580_v47 = vadd.f32 %v579_v42, %v578_v41  ;;  %v775_v56 = vadd.f32 %v774_v24, %v773_v57  ;;  %v788_v57 = vsel %vm117_vm1, %v687_v48, 0.0  ;;  %v689_v41 = vmul.f32 %v1421_v7, %v1421_v7 }
 0x120   :  { %513 = vst.msk [vmem:[%s1928_s4 + $0xf4] sm:$0xf] %vm451_vm2, %v448_v12  ;;  %v599_v7 = vsel %vm117_vm1, %v1500_v60, 0.0  ;;  %v798_v12 = vsel %vm117_vm1, %v692_v1, 0.0 }
 0x121   :  { %v582_v49 = vadd.f32 %v581_v2, %v580_v47  ;;  %v777_v55 = vadd.f32 %v776_v4, %v775_v56  ;;  %v790_v47 = vsel %vm117_vm1, %v688_v29, 0.0  ;;  %v690_v56 = vmul.f32 %v1439_v19, %v1439_v19 }
 0x122   :  { %v792_v33 = vsel %vm117_vm1, %v689_v41, 0.0  ;;  %v601_v19 = vsel %vm117_vm1, %v1528_v50, 0.0  ;;  %v694_v50 = vmul.f32 %v1612_v45, %v1612_v45  ;;  %v697_v29 = vmul.f32 %v1299_v36, %v1299_v36 }
 0x123   :  { %v584_v11 = vadd.f32 %v583_v62, %v582_v49  ;;  %v779_v18 = vadd.f32 %v778_v59, %v777_v55  ;;  %v691_v49 = vmul.f32 %v1500_v60, %v1500_v60  ;;  %v794_v62 = vsel %vm117_vm1, %v690_v56, 0.0 }
 0x124   :  { %v802_v48 = vsel %vm117_vm1, %v694_v50, 0.0 }
 0x125   :  { %v586_v13 = vadd.f32 %v585_v9, %v584_v11  ;;  %v781_v21 = vadd.f32 %v780_v3, %v779_v18  ;;  %v1784_v42 = vpop.f32.mrf.mxu3  ;;  %v796_v3 = vsel %vm117_vm1, %v691_v49, 0.0  ;;  %v693_v9 = vmul.f32 %v1576_v46, %v1576_v46 }
 0x126   :  { %v449_v23 = vpack.c.bf16 %v1784_v42, %v1784_v42 }
 0x127   :  { %v588_v22 = vadd.f32 %v587_v51, %v586_v13  ;;  %v783_v26 = vadd.f32 %v782_v39, %v781_v21  ;;  %v603_v39 = vsel %vm117_vm1, %v1576_v46, 0.0  ;;  %v605_v46 = vsel %vm117_vm1, %v1612_v45, 0.0 }
 0x128   :  { %514 = vst.msk [vmem:[%s1928_s4 + $0xf8] sm:$0xf] %vm451_vm2, %v449_v23 }
 0x129   :  { %v590_v54 = vadd.f32 %v589_v34, %v588_v22  ;;  %v785_v35 = vadd.f32 %v784_v25, %v783_v26  ;;  %v800_v22 = vsel %vm117_vm1, %v693_v9, 0.0  ;;  %v695_v26 = vmul.f32 %v1656_v14, %v1656_v14 }
 0x12a   :  { %v703_v9 = vmul.f32 %v1502_v0, %v1502_v0 }
 0x12b   :  { %v787_v17 = vadd.f32 %v786_v31, %v785_v35  ;;  %v592_v37 = vadd.f32 %v591_v27, %v590_v54  ;;  %v607_v54 = vsel %vm117_vm1, %v1656_v14, 0.0  ;;  %v696_v35 = vmul.f32 %v1684_v58, %v1684_v58 }
 0x12c   :  { %v804_v45 = vsel %vm117_vm1, %v695_v26, 0.0  ;;  %v698_v14 = vmul.f32 %v1331_v44, %v1331_v44  ;;  %v820_v50 = vsel %vm117_vm1, %v703_v9, 0.0  ;;  %v706_v26 = vmul.f32 %v1614_v32, %v1614_v32 }
 0x12d   :  { %v594_v40 = vadd.f32 %v593_v43, %v592_v37  ;;  %v789_v24 = vadd.f32 %v788_v57, %v787_v17  ;;  %v1808_v5 = vpop.f32.mrf.mxu3  ;;  %v609_v17 = vsel %vm117_vm1, %v1684_v58, 0.0  ;;  %v611_v43 = vsel %vm117_vm1, %v1299_v36, 0.0 }
 0x12e   :  { %v450_v21 = vpack.c.bf16 %v1808_v5, %v1808_v5  ;;  %v806_v41 = vsel %vm117_vm1, %v696_v35, 0.0  ;;  %v699_v58 = vmul.f32 %v1363_v53, %v1363_v53  ;;  %v615_v36 = vsel %vm117_vm1, %v1363_v53, 0.0 }
 0x12f   :  { %v596_v4 = vadd.f32 %v595_v52, %v594_v40  ;;  %v791_v2 = vadd.f32 %v790_v47, %v789_v24  ;;  %v808_v47 = vsel %vm117_vm1, %v697_v29, 0.0  ;;  %v613_v52 = vsel %vm117_vm1, %v1331_v44, 0.0 }
 0x130   :  { %515 = vst.msk [vmem:[%s1928_s4 + $0xfc] sm:$0xf] %vm451_vm2, %v450_v21  ;;  %v617_v44 = vsel %vm117_vm1, %v1395_v63, 0.0  ;;  %v619_v53 = vsel %vm117_vm1, %v1423_v8, 0.0  ;;  %v704_v21 = vmul.f32 %v1530_v30, %v1530_v30  ;;  %v708_v29 = vmul.f32 %v1686_v16, %v1686_v16 }
 0x131   :  { %v598_v55 = vadd.f32 %v597_v61, %v596_v4  ;;  %v793_v59 = vadd.f32 %v792_v33, %v791_v2  ;;  %v810_v2 = vsel %vm117_vm1, %v698_v14, 0.0  ;;  %v700_v33 = vmul.f32 %v1395_v63, %v1395_v63 }
 0x132   :  { %v621_v63 = vsel %vm117_vm1, %v1441_v20, 0.0 }
 0x133   :  { %v600_v11 = vadd.f32 %v599_v7, %v598_v55  ;;  %v795_v18 = vadd.f32 %v794_v62, %v793_v59  ;;  %v812_v55 = vsel %vm117_vm1, %v699_v58, 0.0  ;;  %v701_v59 = vmul.f32 %v1423_v8, %v1423_v8 }
 0x134   :  { %v814_v1 = vsel %vm117_vm1, %v700_v33, 0.0  ;;  %v623_v8 = vsel %vm117_vm1, %v1502_v0, 0.0  ;;  %v627_v0 = vsel %vm117_vm1, %v1578_v10, 0.0  ;;  %v711_v58 = vmul.f32 %v1784_v42, %v1784_v42 }
 0x135   :  { %v602_v13 = vadd.f32 %v601_v19, %v600_v11  ;;  %v797_v60 = vadd.f32 %v796_v3, %v795_v18  ;;  %v702_v11 = vmul.f32 %v1441_v20, %v1441_v20  ;;  %v816_v19 = vsel %vm117_vm1, %v701_v59, 0.0 }
 0x136   :  { %v625_v20 = vsel %vm117_vm1, %v1530_v30, 0.0  ;;  %v629_v30 = vsel %vm117_vm1, %v1614_v32, 0.0  ;;  %v633_v32 = vsel %vm117_vm1, %v1686_v16, 0.0  ;;  %v637_v16 = vsel %vm117_vm1, %v1752_v6, 0.0 }
 0x137   :  { %v799_v51 = vadd.f32 %v798_v12, %v797_v60  ;;  %v604_v28 = vadd.f32 %v603_v39, %v602_v13  ;;  %v818_v60 = vsel %vm117_vm1, %v702_v11, 0.0 }
 0x139   :  { %v801_v25 = vadd.f32 %v800_v22, %v799_v51  ;;  %v606_v34 = vadd.f32 %v605_v46, %v604_v28  ;;  %v705_v51 = vmul.f32 %v1578_v10, %v1578_v10  ;;  %v822_v46 = vsel %vm117_vm1, %v704_v21, 0.0 }
 0x13a   :  { %v631_v10 = vsel %vm117_vm1, %v1658_v15, 0.0 }
 0x13b   :  { %v803_v31 = vadd.f32 %v802_v48, %v801_v25  ;;  %v608_v27 = vadd.f32 %v607_v54, %v606_v34  ;;  %v824_v48 = vsel %vm117_vm1, %v705_v51, 0.0  ;;  %v707_v54 = vmul.f32 %v1658_v15, %v1658_v15 }
 0x13c   :  { %v635_v15 = vsel %vm117_vm1, %v1728_v38, 0.0 }
 0x13d   :  { %v805_v37 = vadd.f32 %v804_v45, %v803_v31  ;;  %v610_v57 = vadd.f32 %v609_v17, %v608_v27  ;;  %v826_v27 = vsel %vm117_vm1, %v706_v26, 0.0 }
 0x13f   :  { %v612_v40 = vadd.f32 %v611_v43, %v610_v57  ;;  %v807_v24 = vadd.f32 %v806_v41, %v805_v37  ;;  %v828_v37 = vsel %vm117_vm1, %v707_v54, 0.0  ;;  %v709_v57 = vmul.f32 %v1728_v38, %v1728_v38 }
 0x140   :  { %v830_v41 = vsel %vm117_vm1, %v708_v29, 0.0  ;;  %v639_v38 = vsel %vm117_vm1, %v1784_v42, 0.0 }
 0x141   :  { %v614_v56 = vadd.f32 %v613_v52, %v612_v40  ;;  %v809_v4 = vadd.f32 %v808_v47, %v807_v24  ;;  %v710_v40 = vmul.f32 %v1752_v6, %v1752_v6  ;;  %v832_v52 = vsel %vm117_vm1, %v709_v57, 0.0 }
 0x142   :  { %v641_v6 = vsel %vm117_vm1, %v1808_v5, 0.0 }
 0x143   :  { %v616_v61 = vadd.f32 %v615_v36, %v614_v56  ;;  %v811_v49 = vadd.f32 %v810_v2, %v809_v4  ;;  %v834_v2 = vsel %vm117_vm1, %v710_v40, 0.0  ;;  %v712_v36 = vmul.f32 %v1808_v5, %v1808_v5 }
 0x145   :  { %v618_v62 = vadd.f32 %v617_v44, %v616_v61  ;;  %v813_v7 = vadd.f32 %v812_v55, %v811_v49  ;;  %v836_v49 = vsel %vm117_vm1, %v711_v58, 0.0  ;;  %v838_v59 = vsel %vm117_vm1, %v712_v36, 0.0 }
 0x147   :  { %v620_v18 = vadd.f32 %v619_v53, %v618_v62  ;;  %v815_v3 = vadd.f32 %v814_v1, %v813_v7 }
 0x149   :  { %v622_v23 = vadd.f32 %v621_v63, %v620_v18  ;;  %v817_v13 = vadd.f32 %v816_v19, %v815_v3 }
 0x14b   :  { %v819_v12 = vadd.f32 %v818_v60, %v817_v13  ;;  %v624_v39 = vadd.f32 %v623_v8, %v622_v23 }
 0x14d   :  { %v626_v28 = vadd.f32 %v625_v20, %v624_v39  ;;  %v821_v22 = vadd.f32 %v820_v50, %v819_v12 }
 0x14f   :  { %v628_v25 = vadd.f32 %v627_v0, %v626_v28  ;;  %v823_v34 = vadd.f32 %v822_v46, %v821_v22 }
 0x151   :  { %v630_v35 = vadd.f32 %v629_v30, %v628_v25  ;;  %v825_v31 = vadd.f32 %v824_v48, %v823_v34 }
 0x153   :  { %v632_v45 = vadd.f32 %v631_v10, %v630_v35  ;;  %v827_v17 = vadd.f32 %v826_v27, %v825_v31 }
 0x155   :  { %v634_v43 = vadd.f32 %v633_v32, %v632_v45  ;;  %v829_v14 = vadd.f32 %v828_v37, %v827_v17 }
 0x157   :  { %v831_v24 = vadd.f32 %v830_v41, %v829_v14  ;;  %v636_v47 = vadd.f32 %v635_v15, %v634_v43 }
 0x159   :  { %v833_v56 = vadd.f32 %v832_v52, %v831_v24  ;;  %v638_v4 = vadd.f32 %v637_v16, %v636_v47 }
 0x15b   :  { %v835_v33 = vadd.f32 %v834_v2, %v833_v56  ;;  %v640_v61 = vadd.f32 %v639_v38, %v638_v4 }
 0x15d   :  { %v837_v55 = vadd.f32 %v836_v49, %v835_v33  ;;  %v642_v44 = vadd.f32 %v641_v6, %v640_v61 }
 0x15f   :  { %v643_v62 = vrot.slane %v642_v44, 4  ;;  %v839_v7 = vadd.f32 %v838_v59, %v837_v55 }
 0x161   :  { %v644_v1 = vadd.f32 %v643_v62, %v642_v44  ;;  %v840_v53 = vrot.slane %v839_v7, 4 }
 0x163   :  { %v645_v11 = vrot.slane %v644_v1, 2  ;;  %v841_v42 = vadd.f32 %v840_v53, %v839_v7 }
 0x165   :  { %v646_v18 = vadd.f32 %v645_v11, %v644_v1  ;;  %v842_v3 = vrot.slane %v841_v42, 2 }
 0x167   :  { %v647_v19 = vrot.slane %v646_v18, 1  ;;  %v843_v63 = vadd.f32 %v842_v3, %v841_v42 }
 0x169   :  { %v844_v9 = vrot.slane %v843_v63, 1  ;;  %v648_v23 = vadd.f32 %v647_v19, %v646_v18 }
 0x16b   :  { %v845_v13 = vadd.f32 %v844_v9, %v843_v63 }
 0x16d   :  { %v847_v60 = vsel %vm846_vm3, %v648_v23, %v845_v13 }
 0x16e   :  { %v848_v5 = vsel %vm214_vm0, %v847_v60, 0.0 }
 0x16f   :  { %849 = vst.msk [vmem:[%s1929_s5] sm:$0xff] %vm117_vm1, %v848_v5 }

// kernel: bottleneck_forward.8
= control target key start
LH: loop header
LB: loop body
LE: loop exit
PB: predicated region body
PF: predicated region fallthrough
CT: control target
= control target key end

     0   :  { %s457_s12 = smov 0   ;;  %s522_s0 = inlined_call_operand.vmem [shape: f32[2,16,8,8], index: 0, kind: input, shape index: {}]   ;;  %s523_s1 = inlined_call_operand.vmem [shape: bf16[4,16], index: 1, kind: input, shape index: {}]   ;;  %s524_s2 = inlined_call_operand.vmem [shape: bf16[2,64,16], index: 2, kind: output, shape index: {0}]   ;;  %s525_s3 = inlined_call_operand.vmem [shape: f32[2,8,16], index: 3, kind: output, shape index: {1}]  }
   0x1 LB: > { %s400_s13 = sadd.s32 4294967295, %s435_s12   ;;  %p404_p0 = scmp.ge.s32.totalorder %s435_s12, 1  ;;  %s435_s12 = sphi %s457_s12, %s14_s12  }
   0x2   : > { %p140_p1 = scmp.lt.s32.totalorder %s435_s12, 3 }
   0x4   : > { %p141_p2 = pnand %p404_p0, %p140_p1 }
   0x5   : > { %p168_p3 = scmp.lt.s32.totalorder (!%p141_p2), %s400_s13, 1 }
   0x6   : > { %144 = sbr.rel (%p141_p2) target bundleno = 183 (0xb7), region = 28 }
   0xb   : > { %v195_v0 = vld [vmem:[%s523_s1] sm:$0x3]  ;;  %vm209_vm0 = vcmask 1041408   ;;  %s527_s13 = smov (!%p168_p3, %s400_s13), 1  ;;  %vm196_vm1 = vcmask 31744   ;;  %vm250_vm2 = vcmask 125952  }
   0xc   : > { %v211_v1 = vsel %vm209_vm0, %v195_v0, 0  ;;  %s416_s16 = sshll.u32 %s527_s13, 7  ;;  %s417_s20 = sshll.u32 %s527_s13, 5  ;;  %vm259_vm3 = vcmask 130048   ;;  %vm310_vm4 = vcmask 1040384  }
   0xd   : > { %220 = vmatpush.bf16.msra.mxu0 %v211_v1  ;;  %418 = vmatpush.bf16.msra.mxu1 %v211_v1  ;;  %s172_s19 = scalar_lea.vmem %s522_s0, %s416_s16  ;;  %s479_s23 = scalar_lea.vmem %s524_s2, %s417_s20 }
   0xe   : > { %419 = vmatpush.bf16.msra.mxu2 %v211_v1  ;;  %420 = vmatpush.bf16.msra.mxu3 %v211_v1  ;;  %v183_v2 = vld [vmem:[%s172_s19] sm:$0xff]  ;;  %v184_v3 = vld [vmem:[%s172_s19 + $0x10] sm:$0xff]  ;;  %s409_s24 = sshll.u32 %s527_s13, 3 }
   0xf   : > { %v185_v4 = vld [vmem:[%s172_s19 + $0x20] sm:$0xff]  ;;  %v191_v5 = vpack.c.bf16 %v184_v3, %v183_v2  ;;  %v186_v6 = vld [vmem:[%s172_s19 + $0x30] sm:$0xff]  ;;  %s181_s27 = scalar_lea.vmem %s525_s3, %s409_s24 }
  0x10   : > { %v187_v7 = vld [vmem:[%s172_s19 + $0x40] sm:$0xff]  ;;  %v188_v8 = vld [vmem:[%s172_s19 + $0x50] sm:$0xff]  ;;  %v192_v9 = vpack.c.bf16 %v186_v6, %v185_v4 }
  0x11   : > { %v193_v10 = vpack.c.bf16 %v188_v8, %v187_v7  ;;  %v189_v11 = vld [vmem:[%s172_s19 + $0x60] sm:$0xff]  ;;  %v190_v12 = vld [vmem:[%s172_s19 + $0x70] sm:$0xff]  ;;  %410 = vmatmul.msk.bf16.vlgmr.msra.gmra.mxu0 %vm196_vm1, %v191_v5 }
  0x12   : > { %v194_v13 = vpack.c.bf16 %v190_v12, %v189_v11  ;;  %411 = vmatmul.msk.bf16.vlgmr.msra.gmra.mxu1 %vm196_vm1, %v192_v9 }
  0x13   : > { %412 = vmatmul.msk.bf16.vlgmr.msra.gmra.mxu2 %vm196_vm1, %v193_v10 }
  0x14   : > { %413 = vmatmul.msk.bf16.vlgmr.msra.gmra.mxu3 %vm196_vm1, %v194_v13 }
  0x8e   : > { %v222_v14 = vpop.f32.mrf.mxu0 }
  0x8f   : > { %v242_v15 = vpack.c.bf16 %v222_v14, %v222_v14  ;;  %v227_v16 = vpop.f32.mrf.mxu1  ;;  %v281_v19 = vmul.f32 %v222_v14, %v222_v14  ;;  %v260_v23 = vsel %vm259_vm3, %v222_v14, 0.0 }
  0x90   : > { %v244_v17 = vpack.c.bf16 %v227_v16, %v227_v16  ;;  %v283_v27 = vmul.f32 %v227_v16, %v227_v16  ;;  %v263_v33 = vsel %vm259_vm3, %v227_v16, 0.0 }
  0x91   : > { %251 = vst.msk [vmem:[%s479_s23] sm:$0xf] %vm250_vm2, %v242_v15  ;;  %v289_v32 = vsel %vm259_vm3, %v281_v19, 0.0 }
  0x92   : > { %253 = vst.msk [vmem:[%s479_s23 + $0x8] sm:$0xf] %vm250_vm2, %v244_v17  ;;  %v292_v38 = vsel %vm259_vm3, %v283_v27, 0.0 }
  0x96   : > { %v232_v18 = vpop.f32.mrf.mxu2  ;;  %v224_v22 = vpop.f32.mrf.mxu0 }
  0x97   : > { %v246_v20 = vpack.c.bf16 %v232_v18, %v232_v18  ;;  %v237_v21 = vpop.f32.mrf.mxu3  ;;  %v243_v25 = vpack.c.bf16 %v224_v22, %v224_v22  ;;  %v229_v26 = vpop.f32.mrf.mxu1  ;;  %v261_v28 = vsel %vm259_vm3, %v224_v22, 0.0  ;;  %v282_v29 = vmul.f32 %v224_v22, %v224_v22 }
  0x98   : > { %v248_v24 = vpack.c.bf16 %v237_v21, %v237_v21  ;;  %v245_v30 = vpack.c.bf16 %v229_v26, %v229_v26  ;;  %v262_v31 = vadd.f32 %v261_v28, %v260_v23  ;;  %v284_v35 = vmul.f32 %v229_v26, %v229_v26 }
  0x99   : > { %255 = vst.msk [vmem:[%s479_s23 + $0x10] sm:$0xf] %vm250_vm2, %v246_v20  ;;  %v290_v34 = vsel %vm259_vm3, %v282_v29, 0.0  ;;  %v285_v39 = vmul.f32 %v232_v18, %v232_v18  ;;  %v265_v40 = vsel %vm259_vm3, %v229_v26, 0.0  ;;  %v267_v44 = vsel %vm259_vm3, %v232_v18, 0.0 }
  0x9a   : > { %257 = vst.msk [vmem:[%s479_s23 + $0x18] sm:$0xf] %vm250_vm2, %v248_v24  ;;  %v291_v36 = vadd.f32 %v290_v34, %v289_v32  ;;  %v264_v37 = vadd.f32 %v263_v33, %v262_v31  ;;  %v294_v45 = vsel %vm259_vm3, %v284_v35, 0.0  ;;  %v287_v53 = vmul.f32 %v237_v21, %v237_v21 }
  0x9b   : > { %252 = vst.msk [vmem:[%s479_s23 + $0x4] sm:$0xf] %vm250_vm2, %v243_v25  ;;  %v296_v52 = vsel %vm259_vm3, %v285_v39, 0.0  ;;  %v271_v57 = vsel %vm259_vm3, %v237_v21, 0.0 }
  0x9c   : > { %254 = vst.msk [vmem:[%s479_s23 + $0xc] sm:$0xf] %vm250_vm2, %v245_v30  ;;  %v266_v41 = vadd.f32 %v265_v40, %v264_v37  ;;  %v293_v42 = vadd.f32 %v292_v38, %v291_v36  ;;  %v300_v62 = vsel %vm259_vm3, %v287_v53, 0.0 }
  0x9e   : > { %v234_v43 = vpop.f32.mrf.mxu2  ;;  %v295_v49 = vadd.f32 %v294_v45, %v293_v42  ;;  %v268_v50 = vadd.f32 %v267_v44, %v266_v41 }
  0x9f   : > { %v247_v46 = vpack.c.bf16 %v234_v43, %v234_v43  ;;  %v286_v47 = vmul.f32 %v234_v43, %v234_v43  ;;  %v239_v48 = vpop.f32.mrf.mxu3  ;;  %v269_v54 = vsel %vm259_vm3, %v234_v43, 0.0 }
  0xa0   : > { %v249_v51 = vpack.c.bf16 %v239_v48, %v239_v48  ;;  %v270_v55 = vadd.f32 %v269_v54, %v268_v50  ;;  %v297_v56 = vadd.f32 %v296_v52, %v295_v49  ;;  %v288_v59 = vmul.f32 %v239_v48, %v239_v48 }
  0xa1   : > { %256 = vst.msk [vmem:[%s479_s23 + $0x14] sm:$0xf] %vm250_vm2, %v247_v46  ;;  %v298_v58 = vsel %vm259_vm3, %v286_v47, 0.0  ;;  %v273_v63 = vsel %vm259_vm3, %v239_v48, 0.0 }
  0xa2   : > { %258 = vst.msk [vmem:[%s479_s23 + $0x1c] sm:$0xf] %vm250_vm2, %v249_v51  ;;  %v299_v60 = vadd.f32 %v298_v58, %v297_v56  ;;  %v272_v61 = vadd.f32 %v271_v57, %v270_v55  ;;  %v302_v2 = vsel %vm259_vm3, %v288_v59, 0.0 }
  0xa4   : > { %v274_v0 = vadd.f32 %v273_v63, %v272_v61  ;;  %v301_v1 = vadd.f32 %v300_v62, %v299_v60 }
  0xa6   : > { %v275_v3 = vrot.slane %v274_v0, 4  ;;  %v303_v4 = vadd.f32 %v302_v2, %v301_v1 }
  0xa8   : > { %v276_v5 = vadd.f32 %v275_v3, %v274_v0  ;;  %v304_v6 = vrot.slane %v303_v4, 4 }
  0xaa   : > { %v277_v7 = vrot.slane %v276_v5, 2  ;;  %v305_v8 = vadd.f32 %v304_v6, %v303_v4 }
  0xac   : > { %v278_v9 = vadd.f32 %v277_v7, %v276_v5  ;;  %v306_v10 = vrot.slane %v305_v8, 2 }
  0xae   : > { %v279_v11 = vrot.slane %v278_v9, 1  ;;  %v307_v12 = vadd.f32 %v306_v10, %v305_v8 }
  0xb0   : > { %v308_v13 = vrot.slane %v307_v12, 1  ;;  %v280_v14 = vadd.f32 %v279_v11, %v278_v9 }
  0xb2   : > { %v309_v15 = vadd.f32 %v308_v13, %v307_v12 }
  0xb4   : > { %v311_v16 = vsel %vm310_vm4, %v280_v14, %v309_v15 }
  0xb5   : > { %v312_v17 = vsel %vm209_vm0, %v311_v16, 0.0 }
  0xb6   : > { %313 = vst.msk [vmem:[%s181_s27] sm:$0xff] %vm259_vm3, %v312_v17 }
  0xb7 PF: > { %s14_s12 = sadd.s32 1, %s435_s12  }
  0xb8   : > { %p11_p4 = scmp.ge.s32.totalorder %s14_s12, 4  }
  0xba   :  { %13 = sbr.rel (!%p11_p4) target bundleno = 1 (0x1), region = 70 }

// kernel: bottleneck_forward.6
= control target key start
LH: loop header
LB: loop body
LE: loop exit
PB: predicated region body
PF: predicated region fallthrough
CT: control target
= control target key end

     0   :  { %s1694_s18 = smov 0   ;;  %s2173_s0 = inlined_call_operand.vmem [shape: bf16[2,16,8,8], index: 0, kind: input, shape index: {}]   ;;  %s2174_s1 = inlined_call_operand.vmem [shape: bf16[3,2,8,4], index: 1, kind: input, shape index: {}]   ;;  %s2175_s2 = inlined_call_operand.vmem [shape: f32[1,8], index: 2, kind: input, shape index: {}]   ;;  %s2176_s3 = inlined_call_operand.vmem [shape: f32[1,8], index: 3, kind: input, shape index: {}]   ;;  %s2177_s4 = inlined_call_operand.vmem [shape: bf16[2,64,4], index: 4, kind: output, shape index: {0}]   ;;  %s2178_s5 = inlined_call_operand.vmem [shape: f32[2,8,4], index: 5, kind: output, shape index: {1}]  }
   0x1 LB: > { %s1561_s19 = sadd.s32 4294967295, %s1659_s18   ;;  %p1565_p0 = scmp.ge.s32.totalorder %s1659_s18, 1  ;;  %s1659_s18 = sphi %s1694_s18, %s16_s18  }
   0x2   : > { %p190_p1 = scmp.lt.s32.totalorder %s1659_s18, 3 }
   0x4   : > { %p191_p2 = pnand %p1565_p0, %p190_p1 }
   0x5   : > { %p222_p3 = scmp.lt.s32.totalorder (!%p191_p2), %s1561_s19, 1  ;;  %s1661_s28 = smov (!%p191_p2), 4  }
   0x6   : > { %194 = sbr.rel (%p191_p2) target bundleno = 426 (0x1aa), region = 36  ;;  %s1662_s29 = smov (!%p191_p2), 124  }
   0xb   : > { %s2184_s19 = smov (!%p222_p3, %s1561_s19), 1  ;;  %v1713_v0 = vld [vmem:[%s2175_s2] ss:$0 sm:$0xff]  ;;  %vm600_vm0 = vcmask 1043456  }
   0xc   : > { %s1597_s20 = sshll.u32 %s2184_s19, 6  ;;  %v1718_v1 = vld [vmem:[%s2176_s3] ss:$0 sm:$0xff]  ;;  %s1598_s17 = sshll.u32 %s2184_s19, 5 }
   0xd   : > { %s1708_s23 = scalar_lea.vmem %s2173_s0, %s1597_s20  ;;  %s2119_s22 = scalar_lea.vmem %s2177_s4, %s1598_s17 }
   0xe   : > { %v1721_v2 = vld [vmem:[%s1708_s23 + $0x18] sm:$0xff]   ;;  %v1724_v3 = vld [vmem:[%s1708_s23] sm:$0xff]   ;;  %v1732_v7 = vld [vmem:[%s1708_s23 + $0x30] sm:$0xff]  }
   0xf   : > { %v1727_v4 = vld [vmem:[%s1708_s23 + $0x20] sm:$0xff]   ;;  %v1614_v5 = vunpack.c.h.bf16 %v1721_v2  ;;  %v1602_v6 = vunpack.c.h.bf16 %v1724_v3  ;;  %v1735_v8 = vld [vmem:[%s1708_s23 + $0x8] sm:$0xff]   ;;  %v1626_v11 = vunpack.c.h.bf16 %v1732_v7  ;;  %v1757_v37 = vld [vmem:[%s1708_s23 + $0x10] sm:$0xff]   ;;  %v1613_v59 = vunpack.c.l.bf16 %v1721_v2 }
  0x10   : > { %v1738_v9 = vld [vmem:[%s1708_s23 + $0x28] sm:$0xff]   ;;  %v1618_v10 = vunpack.c.h.bf16 %v1727_v4  ;;  %v1606_v12 = vunpack.c.h.bf16 %v1735_v8  ;;  %v1610_v48 = vunpack.c.h.bf16 %v1757_v37 }
  0x11   : > { %v1622_v13 = vunpack.c.h.bf16 %v1738_v9  ;;  %v280_v14 = vmul.f32 %v1713_v0, %v1614_v5  ;;  %v274_v15 = vmul.f32 %v1713_v0, %v1602_v6  ;;  %v286_v17 = vmul.f32 %v1713_v0, %v1626_v11 }
  0x12   : > { %v282_v16 = vmul.f32 %v1713_v0, %v1618_v10  ;;  %v276_v18 = vmul.f32 %v1713_v0, %v1606_v12  ;;  %v278_v62 = vmul.f32 %v1713_v0, %v1610_v48 }
  0x13   : > { %v284_v19 = vmul.f32 %v1713_v0, %v1622_v13  ;;  %v300_v20 = vadd.f32 %v1718_v1, %v280_v14  ;;  %v294_v21 = vadd.f32 %v1718_v1, %v274_v15  ;;  %v306_v23 = vadd.f32 %v1718_v1, %v286_v17 }
  0x14   : > { %v302_v22 = vadd.f32 %v1718_v1, %v282_v16  ;;  %v296_v24 = vadd.f32 %v1718_v1, %v276_v18 }
  0x15   : > { %v304_v25 = vadd.f32 %v1718_v1, %v284_v19  ;;  %vm316_vm1 = vcmp.ge.f32.partialorder %v300_v20, 0.0  ;;  %v332_v26 = vmul.f32 0.01, %v300_v20  ;;  %vm310_vm2 = vcmp.ge.f32.partialorder %v294_v21, 0.0 }
  0x16   : > { %v326_v27 = vmul.f32 0.01, %v294_v21  ;;  %vm318_vm3 = vcmp.ge.f32.partialorder %v302_v22, 0.0  ;;  %v334_v28 = vmul.f32 0.01, %v302_v22  ;;  %vm322_vm4 = vcmp.ge.f32.partialorder %v306_v23, 0.0 }
  0x17   : > { %v338_v29 = vmul.f32 0.01, %v306_v23  ;;  %v348_v30 = vsel %vm316_vm1, %v300_v20, %v332_v26  ;;  %vm312_vm5 = vcmp.ge.f32.partialorder %v296_v24, 0.0  ;;  %v328_v32 = vmul.f32 0.01, %v296_v24 }
  0x18   : > { %v342_v31 = vsel %vm310_vm2, %v294_v21, %v326_v27  ;;  %v364_v33 = vpack.c.bf16 %v348_v30, %v348_v30  ;;  %v350_v35 = vsel %vm318_vm3, %v302_v22, %v334_v28  ;;  %v336_v51 = vmul.f32 0.01, %v304_v25 }
  0x19   : > { %v358_v34 = vpack.c.bf16 %v342_v31, %v342_v31  ;;  %v354_v36 = vsel %vm322_vm4, %v306_v23, %v338_v29  ;;  %v366_v38 = vpack.c.bf16 %v350_v35, %v350_v35  ;;  %v344_v40 = vsel %vm312_vm5, %v296_v24, %v328_v32 }
  0x1a   : > { %v1759_v39 = vpack.c.bf16 %v354_v36, %v354_v36  ;;  %v617_v41 = vsel %vm600_vm0, %v364_v33, 0  ;;  %v396_v42 = vunpack.c.l.b16 %v364_v33  ;;  %v1766_v47 = vpack.c.bf16 %v344_v40, %v344_v40 }
  0x1b   : > { %v605_v43 = vsel %vm600_vm0, %v358_v34, 0  ;;  %v390_v44 = vunpack.c.l.b16 %v358_v34  ;;  %664 = vrot.lane.b32.xlu1 %v617_v41, %s1661_s28  ;;  %v398_v45 = vunpack.c.l.b16 %v366_v38  ;;  %vm320_vm6 = vcmp.ge.f32.partialorder %v304_v25, 0.0 }
  0x1c   : > { %652 = vrot.lane.b32.xlu2 %v605_v43, %s1661_s28  ;;  %v402_v46 = vunpack.c.l.b16 %v1759_v39  ;;  %v412_v49 = vpack.c.b16 %v396_v42, %v396_v42  ;;  %v392_v54 = vunpack.c.l.b16 %v1766_v47  ;;  %v621_v63 = vsel %vm600_vm0, %v366_v38, 0 }
  0x1d   : > { %v406_v50 = vpack.c.b16 %v390_v44, %v390_v44  ;;  %v414_v52 = vpack.c.b16 %v398_v45, %v398_v45  ;;  %v352_v10 = vsel %vm320_vm6, %v304_v25, %v336_v51  ;;  %v298_v19 = vadd.f32 %v1718_v1, %v278_v62 }
  0x1e   : > { %v418_v53 = vpack.c.b16 %v402_v46, %v402_v46  ;;  %v471_v55 = vshrl.u32 %v412_v49, 16  ;;  %v474_v56 = vshll.u32 %v412_v49, 16  ;;  %v368_v12 = vpack.c.bf16 %v352_v10, %v352_v10 }
  0x1f   : > { %v429_v57 = vshrl.u32 %v406_v50, 16  ;;  %v432_v58 = vshll.u32 %v406_v50, 16  ;;  %v485_v61 = vshrl.u32 %v414_v52, 16  ;;  %v488_v15 = vshll.u32 %v414_v52, 16 }
  0x20   : > { %v513_v60 = vshrl.u32 %v418_v53, 16  ;;  %v473_v5 = vrot.slane %v471_v55, 7  ;;  %v516_v11 = vshll.u32 %v418_v53, 16  ;;  %v408_v16 = vpack.c.b16 %v392_v54, %v392_v54 }
  0x21   : > { %v431_v6 = vrot.slane %v429_v57, 7  ;;  %v487_v18 = vrot.slane %v485_v61, 7  ;;  %v400_v2 = vunpack.c.l.b16 %v368_v12  ;;  %v279_v20 = vmul.f32 %v1713_v0, %v1613_v59 }
  0x22   : > { %v476_v13 = vor.u32 %v474_v56, %v473_v5  ;;  %v515_v17 = vrot.slane %v513_v60, 7  ;;  %v1601_v21 = vunpack.c.l.bf16 %v1724_v3  ;;  %v1617_v22 = vunpack.c.l.bf16 %v1727_v4 }
  0x23   : > { %v434_v14 = vor.u32 %v432_v58, %v431_v6  ;;  %668 = vrot.lane.b32.xlu1 %v621_v63, %s1661_s28  ;;  %v416_v23 = vpack.c.b16 %v400_v2, %v400_v2  ;;  %vm314_vm7 = vcmp.ge.f32.partialorder %v298_v19, 0.0  ;;  %v330_v24 = vmul.f32 0.01, %v298_v19 }
  0x24   : > { %547 = vrot.lane.b32.xlu0 %v476_v13, %s1662_s29  ;;  %v443_v25 = vshrl.u32 %v408_v16, 16  ;;  %v1609_v26 = vunpack.c.l.bf16 %v1757_v37  ;;  %v273_v27 = vmul.f32 %v1713_v0, %v1601_v21  ;;  %v1605_v28 = vunpack.c.l.bf16 %v1735_v8 }
  0x25   : > { %535 = vrot.lane.b32.xlu2 %v434_v14, %s1662_s29  ;;  %v518_v29 = vor.u32 %v516_v11, %v515_v17  ;;  %v490_v30 = vor.u32 %v488_v15, %v487_v18  ;;  %v499_v31 = vshrl.u32 %v416_v23, 16  ;;  %v346_v32 = vsel %vm314_vm7, %v298_v19, %v330_v24  ;;  %v1637_v14 = vld [vmem:[%s1708_s23 + $0x38] sm:$0xff]   ;;  %s1570_s23 = sshll.u32 %s2184_s19, 3 }
  0x26   : > { %v362_v33 = vpack.c.bf16 %v346_v32, %v346_v32  ;;  %v293_v34 = vadd.f32 %v1718_v1, %v273_v27  ;;  %v275_v3 = vmul.f32 %v1713_v0, %v1605_v28  ;;  %v299_v4 = vadd.f32 %v1718_v1, %v279_v20  ;;  %s235_s26 = scalar_lea.vmem %s2178_s5, %s1570_s23 }
  0x27   : > { %v281_v35 = vmul.f32 %v1713_v0, %v1617_v22  ;;  %v625_v36 = vsel %vm600_vm0, %v368_v12, 0  ;;  %v277_v37 = vmul.f32 %v1713_v0, %v1609_v26  ;;  %v445_v40 = vrot.slane %v443_v25, 7 }
  0x28   : > { %v394_v38 = vunpack.c.l.b16 %v362_v33  ;;  %vm309_vm8 = vcmp.ge.f32.partialorder %v293_v34, 0.0  ;;  %v325_v8 = vmul.f32 0.01, %v293_v34  ;;  %v446_v41 = vshll.u32 %v408_v16, 16 }
  0x29   : > { %v502_v42 = vshll.u32 %v416_v23, 16  ;;  %v295_v43 = vadd.f32 %v1718_v1, %v275_v3  ;;  %v501_v44 = vrot.slane %v499_v31, 7  ;;  %v331_v48 = vmul.f32 0.01, %v299_v4 }
  0x2a   : > { %v410_v45 = vpack.c.b16 %v394_v38, %v394_v38  ;;  %v341_v46 = vsel %vm309_vm8, %v293_v34, %v325_v8  ;;  %vm315_vm9 = vcmp.ge.f32.partialorder %v299_v4, 0.0  ;;  %v448_v53 = vor.u32 %v446_v41, %v445_v40 }
  0x2b   : > { %559 = vrot.lane.b32.xlu1 %v518_v29, %s1662_s29  ;;  %v357_v49 = vpack.c.bf16 %v341_v46, %v341_v46  ;;  %v327_v50 = vmul.f32 0.01, %v295_v43  ;;  %vm311_vm10 = vcmp.ge.f32.partialorder %v295_v43, 0.0  ;;  %v297_v55 = vadd.f32 %v1718_v1, %v277_v37 }
  0x2c   : > { %551 = vrot.lane.b32.xlu0 %v490_v30, %s1662_s29  ;;  %v457_v51 = vshrl.u32 %v410_v45, 16  ;;  %v460_v52 = vshll.u32 %v410_v45, 16  ;;  %v504_v56 = vor.u32 %v502_v42, %v501_v44  ;;  %v347_v58 = vsel %vm315_vm9, %v299_v4, %v331_v48 }
  0x2d   : > { %672 = vrot.lane.b32.xlu2 %v625_v36, %s1661_s28  ;;  %v389_v54 = vunpack.c.l.b16 %v357_v49  ;;  %v301_v59 = vadd.f32 %v1718_v1, %v281_v35  ;;  %v343_v61 = vsel %vm311_vm10, %v295_v43, %v327_v50  ;;  %vm313_vm11 = vcmp.ge.f32.partialorder %v297_v55, 0.0 }
  0x2e   : > { %v459_v57 = vrot.slane %v457_v51, 7  ;;  %v329_v63 = vmul.f32 0.01, %v297_v55  ;;  %v1796_v5 = vpack.c.bf16 %v347_v58, %v347_v58  ;;  %v359_v6 = vpack.c.bf16 %v343_v61, %v343_v61 }
  0x2f   : > { %v405_v60 = vpack.c.b16 %v389_v54, %v389_v54  ;;  %v333_v12 = vmul.f32 0.01, %v301_v59  ;;  %vm317_vm12 = vcmp.ge.f32.partialorder %v301_v59, 0.0  ;;  %v613_v15 = vsel %vm600_vm0, %v362_v33, 0 }
  0x30   : > { %v462_v62 = vor.u32 %v460_v52, %v459_v57  ;;  %v345_v16 = vsel %vm313_vm11, %v297_v55, %v329_v63  ;;  %v395_v17 = vunpack.c.l.b16 %v1796_v5  ;;  %v1629_v18 = vunpack.c.l.bf16 %v1637_v14 }
  0x31   : > { %v422_v10 = vshrl.u32 %v405_v60, 16  ;;  %v425_v11 = vshll.u32 %v405_v60, 16  ;;  %v391_v2 = vunpack.c.l.b16 %v359_v6  ;;  %v349_v20 = vsel %vm317_vm12, %v301_v59, %v333_v12 }
  0x32   : > { %v1621_v21 = vunpack.c.l.bf16 %v1738_v9  ;;  %v629_v22 = vsel %vm600_vm0, %v1759_v39, 0  ;;  %v287_v23 = vmul.f32 %v1713_v0, %v1629_v18  ;;  %v361_v24 = vpack.c.bf16 %v345_v16, %v345_v16 }
  0x33   : > { %539 = vrot.lane.b32.xlu1 %v448_v53, %s1662_s29  ;;  %v424_v13 = vrot.slane %v422_v10, 7  ;;  %v411_v25 = vpack.c.b16 %v395_v17, %v395_v17  ;;  %v1808_v26 = vpack.c.bf16 %v349_v20, %v349_v20  ;;  %v407_v28 = vpack.c.b16 %v391_v2, %v391_v2 }
  0x34   : > { %555 = vrot.lane.b32.xlu0 %v504_v56, %s1662_s29  ;;  %v307_v27 = vadd.f32 %v1718_v1, %v287_v23  ;;  %v283_v9 = vmul.f32 %v1713_v0, %v1621_v21  ;;  %v393_v29 = vunpack.c.l.b16 %v361_v24  ;;  %v1630_v31 = vunpack.c.h.bf16 %v1637_v14 }
  0x35   : > { %543 = vrot.lane.b32.xlu2 %v462_v62, %s1662_s29  ;;  %v427_v19 = vor.u32 %v425_v11, %v424_v13  ;;  %v464_v30 = vshrl.u32 %v411_v25, 16  ;;  %v397_v39 = vunpack.c.l.b16 %v1808_v26  ;;  %v603_v32 = vsel %vm600_vm0, %v357_v49, 0 }
  0x36   : > { %v436_v33 = vshrl.u32 %v407_v28, 16  ;;  %v303_v34 = vadd.f32 %v1718_v1, %v283_v9  ;;  %v609_v3 = vsel %vm600_vm0, %v1766_v47, 0  ;;  %v1625_v4 = vunpack.c.l.bf16 %v1732_v7 }
  0x37   : > { %v288_v35 = vmul.f32 %v1713_v0, %v1630_v31  ;;  %v409_v36 = vpack.c.b16 %v393_v29, %v393_v29  ;;  %v467_v37 = vshll.u32 %v411_v25, 16  ;;  %v466_v38 = vrot.slane %v464_v30, 7 }
  0x38   : > { %v413_v8 = vpack.c.b16 %v397_v39, %v397_v39  ;;  %v285_v40 = vmul.f32 %v1713_v0, %v1625_v4  ;;  %v438_v42 = vrot.slane %v436_v33, 7  ;;  %v439_v43 = vshll.u32 %v407_v28, 16  ;;  %v732_v4 = vld [vmem:[%s2174_s1 + $0x4] sm:$0xf] }
  0x39   : > { %v308_v41 = vadd.f32 %v1718_v1, %v288_v35  ;;  %v335_v44 = vmul.f32 0.01, %v303_v34  ;;  %v607_v47 = vsel %vm600_vm0, %v359_v6, 0  ;;  %vm319_vm13 = vcmp.ge.f32.partialorder %v303_v34, 0.0  ;;  %v731_v35 = vld [vmem:[%s2174_s1] sm:$0xf] }
  0x3a   : > { %v305_v7 = vadd.f32 %v1718_v1, %v285_v40  ;;  %v469_v45 = vor.u32 %v467_v37, %v466_v38  ;;  %v478_v46 = vshrl.u32 %v413_v8, 16  ;;  %v441_v48 = vor.u32 %v439_v43, %v438_v42 }
  0x3b   : > { %660 = vrot.lane.b32.xlu1 %v613_v15, %s1661_s28  ;;  %v450_v49 = vshrl.u32 %v409_v36, 16  ;;  %v351_v50 = vsel %vm319_vm13, %v303_v34, %v335_v44  ;;  %v481_v51 = vshll.u32 %v413_v8, 16  ;;  %v453_v54 = vshll.u32 %v409_v36, 16 }
  0x3c   : > { %676 = vrot.lane.b32.xlu0 %v629_v22, %s1661_s28  ;;  %v480_v0 = vrot.slane %v478_v46, 7  ;;  %v367_v52 = vpack.c.bf16 %v351_v50, %v351_v50  ;;  %v339_v55 = vmul.f32 0.01, %v307_v27  ;;  %v611_v56 = vsel %vm600_vm0, %v361_v24, 0 }
  0x3d   : > { %533 = vrot.lane.b32.xlu2 %v427_v19, %s1662_s29  ;;  %v452_v53 = vrot.slane %v450_v49, 7  ;;  %vm323_vm14 = vcmp.ge.f32.partialorder %v307_v27, 0.0  ;;  %v337_v1 = vmul.f32 0.01, %v305_v7  ;;  %vm321_vm15 = vcmp.ge.f32.partialorder %v305_v7, 0.0 }
  0x3e   : > { %v399_v57 = vunpack.c.l.b16 %v367_v52  ;;  %v483_v58 = vor.u32 %v481_v51, %v480_v0  ;;  %v355_v60 = vsel %vm323_vm14, %v307_v27, %v339_v55  ;;  %v340_v10 = vmul.f32 0.01, %v308_v41 }
  0x3f   : > { %v455_v59 = vor.u32 %v453_v54, %v452_v53  ;;  %v353_v62 = vsel %vm321_vm15, %v305_v7, %v337_v1  ;;  %v371_v63 = vpack.c.bf16 %v355_v60, %v355_v60  ;;  %vm324_vm1 = vcmp.ge.f32.partialorder %v308_v41, 0.0 }
  0x40   : > { %v415_v61 = vpack.c.b16 %v399_v57, %v399_v57  ;;  %v369_v6 = vpack.c.bf16 %v353_v62, %v353_v62  ;;  %v623_v16 = vsel %vm600_vm0, %v367_v52, 0  ;;  %v615_v17 = vsel %vm600_vm0, %v1796_v5, 0 }
  0x41   : > { %v403_v14 = vunpack.c.l.b16 %v371_v63  ;;  %v356_v18 = vsel %vm324_vm1, %v308_v41, %v340_v10  ;;  %v619_v5 = vsel %vm600_vm0, %v1808_v26, 0  ;;  %v631_v34 = vsel %vm600_vm0, %v371_v63, 0 }
  0x42   : > { %v492_v11 = vshrl.u32 %v415_v61, 16  ;;  %v495_v12 = vshll.u32 %v415_v61, 16  ;;  %v401_v13 = vunpack.c.l.b16 %v369_v6  ;;  %v372_v21 = vpack.c.bf16 %v356_v18, %v356_v18 }
  0x43   : > { %650 = vrot.lane.b32.xlu1 %v603_v32, %s1661_s28  ;;  %v419_v20 = vpack.c.b16 %v403_v14, %v403_v14  ;;  %v627_v24 = vsel %vm600_vm0, %v369_v6, 0  ;;  %v918_v36 = vsel %vm600_vm0, %v732_v4, 0  ;;  %v966_v37 = vsel %vm600_vm0, %v731_v35, 0 }
  0x44   : > { %656 = vrot.lane.b32.xlu0 %v609_v3, %s1661_s28  ;;  %v494_v15 = vrot.slane %v492_v11, 7  ;;  %v417_v19 = vpack.c.b16 %v401_v13, %v401_v13  ;;  %v404_v25 = vunpack.c.l.b16 %v372_v21  ;;  %v633_v33 = vsel %vm600_vm0, %v372_v21, 0  ;;  %927 = vmatpush.bf16.msra.mxu0 %v918_v36 }
  0x45   : > { %654 = vrot.lane.b32.xlu2 %v607_v47, %s1661_s28  ;;  %v520_v23 = vshrl.u32 %v419_v20, 16  ;;  %v523_v30 = vshll.u32 %v419_v20, 16  ;;  %975 = vmatpush.bf16.msra.mxu1 %v966_v37  ;;  %v1663_v8 = vmov 0   ;;  %vm581_vm2 = vcmask 1040384  }
  0x46   : > { %v497_v2 = vor.u32 %v495_v12, %v494_v15  ;;  %v506_v22 = vshrl.u32 %v417_v19, 16  ;;  %v509_v28 = vshll.u32 %v417_v19, 16  ;;  %v420_v39 = vpack.c.b16 %v404_v25, %v404_v25  ;;  %1639 = vmatpush.bf16.msra.mxu3 %v966_v37  ;;  %1638 = vmatpush.bf16.msra.mxu2 %v918_v36 }
  0x47   : > { %v522_v29 = vrot.slane %v520_v23, 7  ;;  %v745_v40 = vunpack.c.l.b16 %v1663_v8  ;;  %vm582_vm3 = vsmask.f32 256  ;;  %v746_v47 = vunpack.c.h.b16 %v1663_v8  ;;  %v734_v23 = vld [vmem:[%s2174_s1 + $0xc] sm:$0xf] }
  0x48   : > { %v508_v27 = vrot.slane %v506_v22, 7  ;;  %v527_v32 = vshrl.u32 %v420_v39, 16  ;;  %v530_v3 = vshll.u32 %v420_v39, 16  ;;  %vm1861_vm4 = vmand %vm581_vm2, %vm582_vm3  ;;  %vm682_vm5 = vcmask 31744   ;;  %v733_v22 = vld [vmem:[%s2174_s1 + $0x8] sm:$0xf] }
  0x49   : > { %v525_v31 = vor.u32 %v523_v30, %v522_v29  ;;  %v761_v41 = vpack.c.b16 %v745_v40, %v745_v40  ;;  %vm777_vm6 = vsmask.f32 3328  ;;  %vm904_vm7 = vcmask 64512  }
  0x4a   : > { %v511_v9 = vor.u32 %v509_v28, %v508_v27  ;;  %v529_v26 = vrot.slane %v527_v32, 7  ;;  %vm778_vm8 = vsmask.f32 7440  ;;  %v1166_v27 = vsel %vm600_vm0, %v733_v22, 0 }
  0x4b   : > { %545 = vrot.lane.b32.xlu1 %v469_v45, %s1662_s29  ;;  %v781_v43 = vshrl.u32 %v761_v41, 16  ;;  %v784_v44 = vshll.u32 %v761_v41, 16  ;;  %vm1874_vm9 = vmor %vm777_vm6, %vm778_vm8  ;;  %v1230_v28 = vsel %vm600_vm0, %v734_v23, 0  ;;  %1175 = vmatpush.bf16.msrb.mxu2 %v1166_v27  ;;  %vm1472_vm10 = vcmask 1041408  }
  0x4c   : > { %537 = vrot.lane.b32.xlu0 %v441_v48, %s1662_s29  ;;  %v532_v38 = vor.u32 %v530_v3, %v529_v26  ;;  %v762_v48 = vpack.c.b16 %v746_v47, %v746_v47  ;;  %1239 = vmatpush.bf16.msrb.mxu3 %v1230_v28 }
  0x4d   : > { %658 = vrot.lane.b32.xlu2 %v611_v56, %s1661_s28  ;;  %v783_v45 = vrot.slane %v781_v43, 4  ;;  %v786_v46 = vrot.slane %v784_v44, 5  ;;  %v736_v43 = vld [vmem:[%s2174_s1 + $0x14] sm:$0xf] }
  0x4e   : > { %v790_v54 = vshll.u32 %v762_v48, 16 }
  0x4f   : > { %v787_v51 = vor.u32 %v786_v46, %v783_v45 }
  0x50   : > { %v792_v61 = vrot.slane %v790_v54, 5 }
  0x51   : > { %v788_v1 = vrot.slane %v787_v51, 4 }
  0x53   : > { %549 = vrot.lane.b32.xlu1 %v483_v58, %s1662_s29  ;;  %v793_v11 = vsel %vm1874_vm9, %v788_v1, %v792_v61 }
  0x54   : > { %541 = vrot.lane.b32.xlu0 %v455_v59, %s1662_s29  ;;  %v892_v14 = vunpack.c.l.b16 %v793_v11 }
  0x55   : > { %553 = vrot.lane.b32.xlu2 %v497_v2, %s1662_s29 }
  0x5b   : > { %670 = vrot.lane.b32.xlu1 %v623_v16, %s1661_s28 }
  0x5c   : > { %662 = vrot.lane.b32.xlu0 %v615_v17, %s1661_s28 }
  0x5d   : > { %557 = vrot.lane.b32.xlu2 %v511_v9, %s1662_s29 }
  0x63   : > { %674 = vrot.lane.b32.xlu1 %v627_v24, %s1661_s28 }
  0x64   : > { %666 = vrot.lane.b32.xlu0 %v619_v5, %s1661_s28 }
  0x65   : > { %678 = vrot.lane.b32.xlu2 %v631_v34, %s1661_s28 }
  0x6b   : > { %680 = vrot.lane.b32.xlu1 %v633_v33, %s1661_s28 }
  0x6c   : > { %561 = vrot.lane.b32.xlu0 %v525_v31, %s1662_s29 }
  0x74   : > { %563 = vrot.lane.b32.xlu0 %v532_v38, %s1662_s29 }
  0x76   : > { %v653_v42 = vpop.permute.xlu2 %652 }
  0x7f   : > { %v536_v49 = vpop.permute.xlu2 %535 }
  0x80   : > { %v585_v50 = vsel %vm1861_vm4, 0, %v536_v49 }
  0x81   : > { %v688_v0 = vsel %vm682_vm5, %v585_v50, %v653_v42  ;;  %v735_v42 = vld [vmem:[%s2174_s1 + $0x10] sm:$0xf] }
  0x82   : > { %v1868_v52 = vunpack.c.l.b16 %v688_v0  ;;  %v748_v53 = vunpack.c.h.b16 %v688_v0  ;;  %v1305_v50 = vsel %vm600_vm0, %v735_v42, 0  ;;  %v1362_v0 = vsel %vm600_vm0, %v736_v43, 0 }
  0x83   : > { %1314 = vmatpush.bf16.msrb.mxu0 %v1305_v50  ;;  %1371 = vmatpush.bf16.msrb.mxu1 %v1362_v0  ;;  %vm1409_vm0 = vcmask 27648  }
  0x84   : > { %v763_v55 = vpack.c.b16 %v1868_v52, %v1868_v52  ;;  %v764_v56 = vpack.c.b16 %v748_v53, %v748_v53  ;;  %v949_v57 = vpack.c.b16 %v1868_v52, %v745_v40 }
  0x86   : > { %v795_v58 = vshrl.u32 %v763_v55, 16  ;;  %v798_v59 = vshll.u32 %v763_v55, 16  ;;  %v804_v60 = vshll.u32 %v764_v56, 16  ;;  %1575 = vmatmul.msk.bf16.vlgmr.msra.gmra.mxu1 %vm904_vm7, %v949_v57 }
  0x87   : > { %v673_v25 = vpop.permute.xlu2 %672 }
  0x88   : > { %v797_v63 = vrot.slane %v795_v58, 4  ;;  %v800_v6 = vrot.slane %v798_v59, 5  ;;  %v806_v10 = vrot.slane %v804_v60, 5 }
  0x8a   : > { %v801_v12 = vor.u32 %v800_v6, %v797_v63 }
  0x8c   : > { %v802_v13 = vrot.slane %v801_v12, 4 }
  0x8d   : > { %v665_v15 = vpop.permute.xlu1 %664 }
  0x8e   : > { %v807_v16 = vsel %vm1874_vm9, %v802_v13, %v806_v10 }
  0x8f   : > { %v1882_v17 = vunpack.c.l.b16 %v807_v16  ;;  %v544_v40 = vpop.permute.xlu2 %543 }
  0x90   : > { %v589_v59 = vsel %vm1861_vm4, 0, %v544_v40 }
  0x91   : > { %v900_v18 = vpack.c.b16 %v1882_v17, %v892_v14 }
  0x93   : > { %1571 = vmatmul.msk.bf16.vlgmr.msra.gmra.mxu0 %vm904_vm7, %v900_v18 }
  0x95   : > { %v669_v2 = vpop.permute.xlu1 %668 }
  0x96   : > { %v548_v19 = vpop.permute.xlu0 %547 }
  0x97   : > { %v591_v20 = vsel %vm1861_vm4, 0, %v548_v19 }
  0x98   : > { %v706_v21 = vsel %vm682_vm5, %v591_v20, %v665_v15  ;;  %v534_v15 = vpop.permute.xlu2 %533 }
  0x99   : > { %v1895_v24 = vunpack.c.l.b16 %v706_v21  ;;  %v754_v9 = vunpack.c.h.b16 %v706_v21 }
  0x9b   : > { %v769_v5 = vpack.c.b16 %v1895_v24, %v1895_v24  ;;  %v770_v26 = vpack.c.b16 %v754_v9, %v754_v9 }
  0x9d   : > { %v837_v29 = vshrl.u32 %v769_v5, 16  ;;  %v840_v30 = vshll.u32 %v769_v5, 16  ;;  %v560_v39 = vpop.permute.xlu1 %559  ;;  %v846_v41 = vshll.u32 %v770_v26, 16 }
  0x9e   : > { %v552_v31 = vpop.permute.xlu0 %551  ;;  %v597_v20 = vsel %vm1861_vm4, 0, %v560_v39  ;;  %v584_v39 = vsel %vm1861_vm4, 0, %v534_v15 }
  0x9f   : > { %v839_v32 = vrot.slane %v837_v29, 4  ;;  %v842_v33 = vrot.slane %v840_v30, 5  ;;  %v593_v34 = vsel %vm1861_vm4, 0, %v552_v31  ;;  %v848_v55 = vrot.slane %v846_v41, 5 }
  0xa0   : > { %v712_v3 = vsel %vm682_vm5, %v593_v34, %v669_v2  ;;  %v655_v41 = vpop.permute.xlu2 %654 }
  0xa1   : > { %v1904_v4 = vunpack.c.l.b16 %v712_v3  ;;  %v756_v35 = vunpack.c.h.b16 %v712_v3  ;;  %v843_v36 = vor.u32 %v842_v33, %v839_v32 }
  0xa3   : > { %v771_v37 = vpack.c.b16 %v1904_v4, %v1904_v4  ;;  %v772_v38 = vpack.c.b16 %v756_v35, %v756_v35  ;;  %v951_v8 = vpack.c.b16 %v1904_v4, %v1895_v24  ;;  %v844_v49 = vrot.slane %v843_v36, 4 }
  0xa5   : > { %v851_v44 = vshrl.u32 %v771_v37, 16  ;;  %v854_v47 = vshll.u32 %v771_v37, 16  ;;  %1577 = vmatmul.msk.bf16.vlgmr.msra.gmra.mxu3 %vm904_vm7, %v951_v8  ;;  %v1917_v45 = vpop.permute.xlu1 %539  ;;  %v860_v46 = vshll.u32 %v772_v38, 16  ;;  %v849_v60 = vsel %vm1874_vm9, %v844_v49, %v848_v55 }
  0xa6   : > { %v556_v48 = vpop.permute.xlu0 %555  ;;  %v1937_v2 = vunpack.c.l.b16 %v849_v60  ;;  %v587_v36 = vsel %vm1861_vm4, 0, %v1917_v45 }
  0xa7   : > { %v853_v51 = vrot.slane %v851_v44, 4  ;;  %v856_v53 = vrot.slane %v854_v47, 5  ;;  %v595_v54 = vsel %vm1861_vm4, 0, %v556_v48  ;;  %v862_v58 = vrot.slane %v860_v46, 5 }
  0xa8   : > { %v718_v56 = vsel %vm682_vm5, %v595_v54, %v673_v25 }
  0xa9   : > { %v1924_v57 = vunpack.c.l.b16 %v718_v56  ;;  %v857_v1 = vor.u32 %v856_v53, %v853_v51  ;;  %v758_v61 = vunpack.c.h.b16 %v718_v56 }
  0xab   : > { %v773_v63 = vpack.c.b16 %v1924_v57, %v1924_v57  ;;  %v858_v6 = vrot.slane %v857_v1, 4  ;;  %v1290_v10 = vpack.c.b16 %v1924_v57, %v1904_v4  ;;  %v774_v21 = vpack.c.b16 %v758_v61, %v758_v61 }
  0xad   : > { %v865_v11 = vshrl.u32 %v773_v63, 16  ;;  %v868_v12 = vshll.u32 %v773_v63, 16  ;;  %v661_v13 = vpop.permute.xlu1 %660  ;;  %v863_v14 = vsel %vm1874_vm9, %v858_v6, %v862_v58  ;;  %v874_v26 = vshll.u32 %v774_v21, 16 }
  0xae   : > { %v700_v16 = vsel %vm682_vm5, %v589_v59, %v661_v13  ;;  %v677_v18 = vpop.permute.xlu0 %676  ;;  %v1939_v19 = vunpack.c.l.b16 %v863_v14 }
  0xaf   : > { %v1943_v22 = vunpack.c.l.b16 %v700_v16  ;;  %v867_v23 = vrot.slane %v865_v11, 4  ;;  %v870_v25 = vrot.slane %v868_v12, 5  ;;  %v724_v27 = vsel %vm682_vm5, %v597_v20, %v677_v18 }
  0xb0   : > { %v902_v28 = vpack.c.b16 %v1939_v19, %v1937_v2  ;;  %v752_v5 = vunpack.c.h.b16 %v700_v16  ;;  %v1950_v29 = vunpack.c.l.b16 %v724_v27  ;;  %v760_v30 = vunpack.c.h.b16 %v724_v27 }
  0xb1   : > { %v767_v9 = vpack.c.b16 %v1943_v22, %v1943_v22  ;;  %v871_v35 = vor.u32 %v870_v25, %v867_v23  ;;  %v876_v45 = vrot.slane %v874_v26, 5 }
  0xb2   : > { %1573 = vmatmul.msk.bf16.vlgmr.msra.gmra.mxu2 %vm904_vm7, %v902_v28  ;;  %v775_v33 = vpack.c.b16 %v1950_v29, %v1950_v29  ;;  %v776_v34 = vpack.c.b16 %v760_v30, %v760_v30  ;;  %v952_v3 = vpack.c.b16 %v1950_v29, %v1924_v57  ;;  %v768_v37 = vpack.c.b16 %v752_v5, %v752_v5 }
  0xb3   : > { %v823_v31 = vshrl.u32 %v767_v9, 16  ;;  %v826_v32 = vshll.u32 %v767_v9, 16  ;;  %v872_v54 = vrot.slane %v871_v35, 4 }
  0xb4   : > { %v879_v38 = vshrl.u32 %v775_v33, 16  ;;  %v882_v8 = vshll.u32 %v775_v33, 16  ;;  %v888_v44 = vshll.u32 %v776_v34, 16  ;;  %v832_v55 = vshll.u32 %v768_v37, 16  ;;  %v659_v33 = vpop.permute.xlu2 %658 }
  0xb5   : > { %v651_v40 = vpop.permute.xlu1 %650  ;;  %v825_v42 = vrot.slane %v823_v31, 4  ;;  %v828_v43 = vrot.slane %v826_v32, 5  ;;  %1578 = vmatmul.msk.bf16.gmra.mxu3 %vm904_vm7, %v952_v3  ;;  %v877_v16 = vsel %vm1874_vm9, %v872_v54, %v876_v45 }
  0xb6   : > { %v657_v47 = vpop.permute.xlu0 %656  ;;  %v685_v46 = vsel %vm682_vm5, %v584_v39, %v651_v40  ;;  %v881_v48 = vrot.slane %v879_v38, 4  ;;  %v884_v49 = vrot.slane %v882_v8, 5  ;;  %v890_v59 = vrot.slane %v888_v44, 5 }
  0xb7   : > { %v694_v50 = vsel %vm682_vm5, %v587_v36, %v657_v47  ;;  %v1965_v0 = vunpack.c.l.b16 %v685_v46  ;;  %v1006_v56 = vunpack.c.h.b16 %v685_v46  ;;  %v829_v63 = vor.u32 %v828_v43, %v825_v42 }
  0xb8   : > { %v1967_v51 = vunpack.c.l.b16 %v694_v50  ;;  %v750_v53 = vunpack.c.h.b16 %v694_v50  ;;  %v885_v58 = vor.u32 %v884_v49, %v881_v48  ;;  %v834_v18 = vrot.slane %v832_v55, 5 }
  0xb9   : > { %v1021_v1 = vpack.c.b16 %v1965_v0, %v1965_v0  ;;  %v1022_v21 = vpack.c.b16 %v1006_v56, %v1006_v56  ;;  %v1984_v31 = vunpack.c.l.b16 %v877_v16  ;;  %v830_v34 = vrot.slane %v829_v63, 4 }
  0xba   : > { %v765_v60 = vpack.c.b16 %v1967_v51, %v1967_v51  ;;  %v766_v61 = vpack.c.b16 %v750_v53, %v750_v53  ;;  %v950_v12 = vpack.c.b16 %v1943_v22, %v1967_v51  ;;  %v886_v13 = vrot.slane %v885_v58, 4 }
  0xbb   : > { %v1038_v6 = vshrl.u32 %v1021_v1, 16  ;;  %v1041_v11 = vshll.u32 %v1021_v1, 16  ;;  %v1047_v40 = vshll.u32 %v1022_v21, 16  ;;  %v835_v47 = vsel %vm1874_vm9, %v830_v34, %v834_v18 }
  0xbc   : > { %v809_v14 = vshrl.u32 %v765_v60, 16  ;;  %v812_v15 = vshll.u32 %v765_v60, 16  ;;  %v818_v20 = vshll.u32 %v766_v61, 16  ;;  %1576 = vmatmul.msk.bf16.gmra.mxu1 %vm904_vm7, %v950_v12  ;;  %v891_v23 = vsel %vm1874_vm9, %v886_v13, %v890_v59  ;;  %v554_v60 = vpop.permute.xlu2 %553 }
  0xbd   : > { %v1980_v25 = vpop.permute.xlu1 %545  ;;  %v1040_v5 = vrot.slane %v1038_v6, 4  ;;  %v1043_v9 = vrot.slane %v1041_v11, 5  ;;  %v1986_v32 = vunpack.c.l.b16 %v891_v23  ;;  %v1049_v53 = vrot.slane %v1047_v40, 5 }
  0xbe   : > { %v811_v27 = vrot.slane %v809_v14, 4  ;;  %v814_v28 = vrot.slane %v812_v15, 5  ;;  %v538_v30 = vpop.permute.xlu0 %537  ;;  %v820_v38 = vrot.slane %v818_v20, 5  ;;  %v1996_v56 = vunpack.c.l.b16 %v835_v47 }
  0xbf   : > { %v586_v39 = vsel %vm1861_vm4, 0, %v538_v30  ;;  %v903_v37 = vpack.c.b16 %v1986_v32, %v1984_v31  ;;  %v1044_v8 = vor.u32 %v1043_v9, %v1040_v5  ;;  %v594_v14 = vsel %vm1861_vm4, 0, %v554_v60 }
  0xc0   : > { %v691_v26 = vsel %vm682_vm5, %v586_v39, %v655_v41  ;;  %v815_v3 = vor.u32 %v814_v28, %v811_v27  ;;  %v590_v21 = vsel %vm1861_vm4, 0, %v1980_v25 }
  0xc1   : > { %v1007_v35 = vunpack.c.l.b16 %v691_v26  ;;  %v1008_v36 = vunpack.c.h.b16 %v691_v26  ;;  %v1045_v45 = vrot.slane %v1044_v8, 4 }
  0xc2   : > { %v816_v42 = vrot.slane %v815_v3, 4  ;;  %1574 = vmatmul.msk.bf16.gmra.mxu2 %vm904_vm7, %v903_v37 }
  0xc3   : > { %v1023_v43 = vpack.c.b16 %v1007_v35, %v1007_v35  ;;  %v1024_v44 = vpack.c.b16 %v1008_v36, %v1008_v36  ;;  %v1050_v12 = vsel %vm1874_vm9, %v1045_v45, %v1049_v53 }
  0xc4   : > { %v821_v41 = vsel %vm1874_vm9, %v816_v42, %v820_v38  ;;  %v1205_v9 = vunpack.c.l.b16 %v1050_v12  ;;  %v1149_v38 = vpack.c.b16 %v1007_v35, %v1965_v0 }
  0xc5   : > { %v1052_v46 = vshrl.u32 %v1023_v43, 16  ;;  %v1055_v48 = vshll.u32 %v1023_v43, 16  ;;  %v894_v49 = vunpack.c.l.b16 %v821_v41  ;;  %v550_v50 = vpop.permute.xlu1 %549  ;;  %v1061_v54 = vshll.u32 %v1024_v44, 16  ;;  %v558_v44 = vpop.permute.xlu2 %557 }
  0xc6   : > { %v542_v55 = vpop.permute.xlu0 %541 }
  0xc7   : > { %v1054_v1 = vrot.slane %v1052_v46, 4  ;;  %v1057_v58 = vrot.slane %v1055_v48, 5  ;;  %v588_v59 = vsel %vm1861_vm4, 0, %v542_v55  ;;  %v901_v63 = vpack.c.b16 %v1996_v56, %v894_v49 }
  0xc8   : > { %v697_v61 = vsel %vm682_vm5, %v588_v59, %v659_v33  ;;  %v1063_v13 = vrot.slane %v1061_v54, 5  ;;  %v1345_v20 = vpack.c.b16 %v894_v49, %v1882_v17  ;;  %v592_v48 = vsel %vm1861_vm4, 0, %v550_v50 }
  0xc9   : > { %v1058_v6 = vor.u32 %v1057_v58, %v1054_v1  ;;  %v2002_v11 = vunpack.c.l.b16 %v697_v61  ;;  %1572 = vmatmul.msk.bf16.gmra.mxu0 %vm904_vm7, %v901_v63  ;;  %v1010_v16 = vunpack.c.h.b16 %v697_v61  ;;  %v1288_v54 = vpack.c.b16 %v1967_v51, %v1868_v52 }
  0xca   : > { %v596_v52 = vsel %vm1861_vm4, 0, %v558_v44  ;;  %v1346_v51 = vpack.c.b16 %v1937_v2, %v1996_v56 }
  0xcb   : > { %v1059_v15 = vrot.slane %v1058_v6, 4  ;;  %v1025_v18 = vpack.c.b16 %v2002_v11, %v2002_v11  ;;  %v1026_v34 = vpack.c.b16 %v1010_v16, %v1010_v16 }
  0xcc   : > { %1591 = vmatmul.msk.bf16.vlgmr.msrb.gmra.mxu1 %vm904_vm7, %v1345_v20 }
  0xcd   : > { %v1064_v23 = vsel %vm1874_vm9, %v1059_v15, %v1063_v13  ;;  %v1066_v27 = vshrl.u32 %v1025_v18, 16  ;;  %v1069_v28 = vshll.u32 %v1025_v18, 16  ;;  %v671_v5 = vpop.permute.xlu1 %670  ;;  %v1075_v43 = vshll.u32 %v1026_v34, 16 }
  0xce   : > { %v1206_v30 = vunpack.c.l.b16 %v1064_v23  ;;  %v663_v39 = vpop.permute.xlu0 %662  ;;  %v715_v33 = vsel %vm682_vm5, %v594_v14, %v671_v5 }
  0xcf   : > { %v1068_v26 = vrot.slane %v1066_v27, 4  ;;  %v703_v17 = vsel %vm682_vm5, %v590_v21, %v663_v39  ;;  %v1071_v3 = vrot.slane %v1069_v28, 5  ;;  %v2023_v8 = vunpack.c.l.b16 %v715_v33 }
  0xd0   : > { %v2020_v36 = vunpack.c.l.b16 %v703_v17  ;;  %v1012_v25 = vunpack.c.h.b16 %v703_v17  ;;  %v1213_v37 = vpack.c.b16 %v1206_v30, %v1205_v9  ;;  %v1077_v55 = vrot.slane %v1075_v43, 5  ;;  %v679_v9 = vpop.permute.xlu2 %678 }
  0xd1   : > { %v1072_v47 = vor.u32 %v1071_v3, %v1068_v26  ;;  %v1031_v0 = vpack.c.b16 %v2023_v8, %v2023_v8  ;;  %v1016_v61 = vunpack.c.h.b16 %v715_v33 }
  0xd2   : > { %v1027_v40 = vpack.c.b16 %v2020_v36, %v2020_v36  ;;  %v1028_v42 = vpack.c.b16 %v1012_v25, %v1012_v25  ;;  %1583 = vmatmul.msk.bf16.vlgmr.msrb.gmra.mxu3 %vm904_vm7, %v1213_v37  ;;  %1579 = vmatmul.msk.bf16.vlgmr.msrb.gmra.mxu2 %vm904_vm7, %v1149_v38  ;;  %v1150_v38 = vpack.c.b16 %v2020_v36, %v2002_v11 }
  0xd3   : > { %v1073_v58 = vrot.slane %v1072_v47, 4  ;;  %v1108_v50 = vshrl.u32 %v1031_v0, 16  ;;  %v1111_v6 = vshll.u32 %v1031_v0, 16  ;;  %v1032_v20 = vpack.c.b16 %v1016_v61, %v1016_v61 }
  0xd4   : > { %v1080_v41 = vshrl.u32 %v1027_v40, 16  ;;  %v1083_v46 = vshll.u32 %v1027_v40, 16  ;;  %v1089_v49 = vshll.u32 %v1028_v42, 16 }
  0xd5   : > { %v675_v15 = vpop.permute.xlu1 %674  ;;  %v1078_v21 = vsel %vm1874_vm9, %v1073_v58, %v1077_v55  ;;  %v1110_v23 = vrot.slane %v1108_v50, 4  ;;  %v1113_v27 = vrot.slane %v1111_v6, 5  ;;  %v1117_v37 = vshll.u32 %v1032_v20, 16 }
  0xd6   : > { %v1082_v35 = vrot.slane %v1080_v41, 4  ;;  %v1085_v45 = vrot.slane %v1083_v46, 5  ;;  %v667_v53 = vpop.permute.xlu0 %666  ;;  %v1091_v63 = vrot.slane %v1089_v49, 5  ;;  %v721_v28 = vsel %vm682_vm5, %v596_v52, %v675_v15 }
  0xd7   : > { %v709_v1 = vsel %vm682_vm5, %v592_v48, %v667_v53  ;;  %v1207_v34 = vunpack.c.l.b16 %v1078_v21  ;;  %v2053_v17 = vunpack.c.l.b16 %v721_v28  ;;  %v1114_v25 = vor.u32 %v1113_v27, %v1110_v23 }
  0xd8   : > { %v1086_v59 = vor.u32 %v1085_v45, %v1082_v35  ;;  %v2036_v60 = vunpack.c.l.b16 %v709_v1  ;;  %v1014_v13 = vunpack.c.h.b16 %v709_v1  ;;  %v1119_v46 = vrot.slane %v1117_v37, 5 }
  0xd9   : > { %1587 = vmatmul.msk.bf16.vlgmr.msrb.gmra.mxu0 %vm904_vm7, %v1288_v54  ;;  %v1033_v47 = vpack.c.b16 %v2053_v17, %v2053_v17  ;;  %v1115_v41 = vrot.slane %v1114_v25, 4  ;;  %v1018_v45 = vunpack.c.h.b16 %v721_v28  ;;  %v1289_v55 = vpack.c.b16 %v1895_v24, %v1943_v22 }
  0xda   : > { %v1087_v12 = vrot.slane %v1086_v59, 4  ;;  %v1029_v14 = vpack.c.b16 %v2036_v60, %v2036_v60  ;;  %v1030_v30 = vpack.c.b16 %v1014_v13, %v1014_v13 }
  0xdb   : > { %v1122_v53 = vshrl.u32 %v1033_v47, 16  ;;  %v1125_v1 = vshll.u32 %v1033_v47, 16  ;;  %v1120_v61 = vsel %vm1874_vm9, %v1115_v41, %v1119_v46  ;;  %v1034_v24 = vpack.c.b16 %v1018_v45, %v1018_v45 }
  0xdc   : > { %v1094_v16 = vshrl.u32 %v1029_v14, 16  ;;  %v1097_v18 = vshll.u32 %v1029_v14, 16  ;;  %1592 = vmatmul.msk.bf16.gmra.mxu1 %vm904_vm7, %v1346_v51  ;;  %v1092_v5 = vsel %vm1874_vm9, %v1087_v12, %v1091_v63  ;;  %v1103_v43 = vshll.u32 %v1030_v30, 16 }
  0xdd   : > { %v1208_v26 = vunpack.c.l.b16 %v1092_v5  ;;  %v681_v48 = vpop.permute.xlu1 %680  ;;  %v1347_v14 = vpack.c.b16 %v1984_v31, %v1939_v19  ;;  %v1124_v22 = vrot.slane %v1122_v53, 4  ;;  %v1210_v52 = vunpack.c.l.b16 %v1120_v61 }
  0xde   : > { %v1096_v39 = vrot.slane %v1094_v16, 4  ;;  %v1099_v2 = vrot.slane %v1097_v18, 5  ;;  %v562_v56 = vpop.permute.xlu0 %561  ;;  %v1105_v0 = vrot.slane %v1103_v43, 5  ;;  %v1127_v20 = vrot.slane %v1125_v1, 5 }
  0xdf   : > { %v598_v33 = vsel %vm1861_vm4, 0, %v562_v56  ;;  %v1214_v40 = vpack.c.b16 %v1208_v26, %v1207_v34  ;;  %v1151_v19 = vpack.c.b16 %v2023_v8, %v2036_v60 }
  0xe0   : > { %v727_v3 = vsel %vm682_vm5, %v598_v33, %v679_v9  ;;  %v1100_v42 = vor.u32 %v1099_v2, %v1096_v39  ;;  %v1128_v39 = vor.u32 %v1127_v20, %v1124_v22  ;;  %v1131_v2 = vshll.u32 %v1034_v24, 16 }
  0xe1   : > { %v2058_v44 = vunpack.c.l.b16 %v727_v3  ;;  %v1020_v63 = vunpack.c.h.b16 %v727_v3 }
  0xe2   : > { %1580 = vmatmul.msk.bf16.gmra.mxu2 %vm904_vm7, %v1150_v38  ;;  %1584 = vmatmul.msk.bf16.gmra.mxu3 %vm904_vm7, %v1214_v40  ;;  %v1101_v49 = vrot.slane %v1100_v42, 4  ;;  %v1129_v3 = vrot.slane %v1128_v39, 4  ;;  %v1133_v25 = vrot.slane %v1131_v2, 5 }
  0xe3   : > { %v1035_v11 = vpack.c.b16 %v2058_v44, %v2058_v44  ;;  %v1036_v21 = vpack.c.b16 %v1020_v63, %v1020_v63  ;;  %v1152_v41 = vpack.c.b16 %v2058_v44, %v2053_v17 }
  0xe4   : > { %v1106_v7 = vsel %vm1874_vm9, %v1101_v49, %v1105_v0  ;;  %v1134_v8 = vsel %vm1874_vm9, %v1129_v3, %v1133_v25 }
  0xe5   : > { %v1136_v50 = vshrl.u32 %v1035_v11, 16  ;;  %v1139_v6 = vshll.u32 %v1035_v11, 16  ;;  %v1209_v18 = vunpack.c.l.b16 %v1106_v7  ;;  %v1145_v33 = vshll.u32 %v1036_v21, 16 }
  0xe6   : > { %v564_v35 = vpop.permute.xlu0 %563  ;;  %v1211_v43 = vunpack.c.l.b16 %v1134_v8 }
  0xe7   : > { %v599_v36 = vsel %vm1861_vm4, 0, %v564_v35  ;;  %v1138_v23 = vrot.slane %v1136_v50, 4  ;;  %v1141_v27 = vrot.slane %v1139_v6, 5  ;;  %v1215_v31 = vpack.c.b16 %v1210_v52, %v1209_v18 }
  0xe8   : > { %v730_v54 = vsel %vm682_vm5, %v599_v36, %v681_v48  ;;  %v1147_v38 = vrot.slane %v1145_v33, 5 }
  0xe9   : > { %v1270_v58 = vunpack.c.l.b16 %v730_v54  ;;  %v1271_v59 = vunpack.c.h.b16 %v730_v54  ;;  %1588 = vmatmul.msk.bf16.gmra.mxu0 %vm904_vm7, %v1289_v55  ;;  %v1142_v56 = vor.u32 %v1141_v27, %v1138_v23 }
  0xeb   : > { %v1272_v12 = vpack.c.b16 %v1270_v58, %v1270_v58  ;;  %v1273_v13 = vpack.c.b16 %v1271_v59, %v1271_v59  ;;  %v1143_v37 = vrot.slane %v1142_v56, 4  ;;  %v1291_v4 = vpack.c.b16 %v1270_v58, %v1950_v29 }
  0xec   : > { %1593 = vmatmul.msk.bf16.gmra.mxu1 %vm904_vm7, %v1347_v14 }
  0xed   : > { %v1275_v51 = vshrl.u32 %v1272_v12, 16  ;;  %v1278_v15 = vshll.u32 %v1272_v12, 16  ;;  %v1284_v16 = vshll.u32 %v1273_v13, 16  ;;  %v1148_v60 = vsel %vm1874_vm9, %v1143_v37, %v1147_v38 }
  0xee   : > { %v1212_v47 = vunpack.c.l.b16 %v1148_v60 }
  0xef   : > { %v1277_v28 = vrot.slane %v1275_v51, 4  ;;  %v1280_v5 = vrot.slane %v1278_v15, 5  ;;  %v1286_v30 = vrot.slane %v1284_v16, 5 }
  0xf0   : > { %v1216_v46 = vpack.c.b16 %v1212_v47, %v1211_v43 }
  0xf1   : > { %v1281_v9 = vor.u32 %v1280_v5, %v1277_v28 }
  0xf2   : > { %1581 = vmatmul.msk.bf16.gmra.mxu2 %vm904_vm7, %v1151_v19  ;;  %1585 = vmatmul.msk.bf16.gmra.mxu3 %vm904_vm7, %v1215_v31 }
  0xf3   : > { %v1282_v34 = vrot.slane %v1281_v9, 4 }
  0xf5   : > { %v1287_v26 = vsel %vm1874_vm9, %v1282_v34, %v1286_v30 }
  0xf6   : > { %v1344_v40 = vunpack.c.l.b16 %v1287_v26 }
  0xf8   : > { %v1348_v42 = vpack.c.b16 %v1344_v40, %v1986_v32 }
  0xf9   : > { %1589 = vmatmul.msk.bf16.gmra.mxu0 %vm904_vm7, %v1290_v10 }
  0xfc   : > { %1594 = vmatmul.msk.bf16.gmra.mxu1 %vm904_vm7, %v1348_v42 }
 0x102   : > { %1582 = vmatmul.msk.bf16.gmra.mxu2 %vm904_vm7, %v1152_v41  ;;  %1586 = vmatmul.msk.bf16.gmra.mxu3 %vm904_vm7, %v1216_v46 }
 0x103   : > { %v977_v62 = vpop.f32.mrf.mxu1 }
 0x109   : > { %1590 = vmatmul.msk.bf16.gmra.mxu0 %vm904_vm7, %v1291_v4 }
 0x10b   : > { %v979_v10 = vpop.f32.mrf.mxu1 }
 0x110   : > { %v929_v32 = vpop.f32.mrf.mxu0 }
 0x111   : > { %v978_v1 = vadd.f32 %v977_v62, %v929_v32 }
 0x118   : > { %v931_v17 = vpop.f32.mrf.mxu0 }
 0x119   : > { %v980_v12 = vadd.f32 %v979_v10, %v931_v17 }
 0x128   : > { %v987_v57 = vpop.f32.mrf.mxu3 }
 0x130   : > { %v2101_v49 = vpop.f32.mrf.mxu3 }
 0x135   : > { %v939_v48 = vpop.f32.mrf.mxu2 }
 0x136   : > { %v988_v38 = vadd.f32 %v987_v57, %v939_v48 }
 0x138   : > { %v2105_v44 = vpop.f32.mrf.mxu3 }
 0x139   : > { %v982_v0 = vpop.f32.mrf.mxu1 }
 0x13d   : > { %v2103_v35 = vpop.f32.mrf.mxu2 }
 0x13e   : > { %v990_v62 = vadd.f32 %v2101_v49, %v2103_v35 }
 0x140   : > { %v2109_v45 = vpop.f32.mrf.mxu3 }
 0x141   : > { %v984_v11 = vpop.f32.mrf.mxu1 }
 0x145   : > { %v2107_v36 = vpop.f32.mrf.mxu2 }
 0x146   : > { %v934_v29 = vpop.f32.mrf.mxu0 }
 0x147   : > { %v983_v20 = vadd.f32 %v982_v0, %v934_v29 }
 0x149   : > { %v1373_v53 = vpop.f32.mrf.mxu1 }
 0x14d   : > { %v2111_v54 = vpop.f32.mrf.mxu2 }
 0x14e   : > { %v936_v55 = vpop.f32.mrf.mxu0 }
 0x14f   : > { %v985_v39 = vadd.f32 %v984_v11, %v936_v55  ;;  %v993_v55 = vadd.f32 %v2105_v44, %v2107_v36 }
 0x151   : > { %v1375_v61 = vpop.f32.mrf.mxu1 }
 0x155   : > { %v1241_v58 = vpop.f32.mrf.mxu3  ;;  %v1177_v59 = vpop.f32.mrf.mxu2 }
 0x156   : > { %v1197_v63 = vadd.f32 %v1177_v59, %v978_v1  ;;  %v1316_v50 = vpop.f32.mrf.mxu0 }
 0x158   : > { %v1261_v6 = vadd.f32 %v1241_v58, %v1197_v63 }
 0x159   : > { %v1378_v15 = vpop.f32.mrf.mxu1 }
 0x15a   : > { %v1336_v7 = vadd.f32 %v1316_v50, %v1261_v6 }
 0x15c   : > { %v2114_v13 = vadd.f32 %v1373_v53, %v1336_v7 }
 0x15d   : > { %v1243_v14 = vpop.f32.mrf.mxu3  ;;  %v1179_v24 = vpop.f32.mrf.mxu2 }
 0x15e   : > { %v1401_v22 = vpack.c.bf16 %v2114_v13, %v2114_v13  ;;  %v1198_v52 = vadd.f32 %v1179_v24, %v980_v12  ;;  %v1318_v51 = vpop.f32.mrf.mxu0  ;;  %v1440_v63 = vmul.f32 %v2114_v13, %v2114_v13  ;;  %v1418_v44 = vsel %vm682_vm5, %v2114_v13, 0.0 }
 0x160   : > { %1410 = vst.msk [vmem:[%s2119_s22] sm:$0xf] %vm1409_vm0, %v1401_v22  ;;  %v1262_v16 = vadd.f32 %v1243_v14, %v1198_v52 }
 0x161   : > { %v1380_v19 = vpop.f32.mrf.mxu1 }
 0x162   : > { %v1337_v18 = vadd.f32 %v1318_v51, %v1262_v16  ;;  %v995_v51 = vadd.f32 %v2109_v45, %v2111_v54 }
 0x164   : > { %v1394_v21 = vadd.f32 %v1375_v61, %v1337_v18 }
 0x165   : > { %v1182_v23 = vpop.f32.mrf.mxu2  ;;  %v1246_v27 = vpop.f32.mrf.mxu3 }
 0x166   : > { %v1402_v28 = vpack.c.bf16 %v1394_v21, %v1394_v21  ;;  %v1199_v5 = vadd.f32 %v1182_v23, %v983_v20  ;;  %v1321_v9 = vpop.f32.mrf.mxu0  ;;  %v1441_v61 = vmul.f32 %v1394_v21, %v1394_v21  ;;  %v1419_v6 = vsel %vm682_vm5, %v1394_v21, 0.0 }
 0x167   : > { %v1420_v16 = vadd.f32 %v1419_v6, %v1418_v44 }
 0x168   : > { %1411 = vst.msk [vmem:[%s2119_s22 + $0x4] sm:$0xf] %vm1409_vm0, %v1402_v28  ;;  %v1263_v30 = vadd.f32 %v1246_v27, %v1199_v5  ;;  %v1449_v36 = vsel %vm682_vm5, %v1441_v61, 0.0 }
 0x169   : > { %v1383_v40 = vpop.f32.mrf.mxu1 }
 0x16a   : > { %v1338_v31 = vadd.f32 %v1321_v9, %v1263_v30 }
 0x16c   : > { %v1395_v2 = vadd.f32 %v1378_v15, %v1338_v31  ;;  %v1448_v15 = vsel %vm682_vm5, %v1440_v63, 0.0 }
 0x16d   : > { %v1184_v56 = vpop.f32.mrf.mxu2  ;;  %v1248_v33 = vpop.f32.mrf.mxu3  ;;  %v1450_v27 = vadd.f32 %v1449_v36, %v1448_v15 }
 0x16e   : > { %v1403_v34 = vpack.c.bf16 %v1395_v2, %v1395_v2  ;;  %v1200_v26 = vadd.f32 %v1184_v56, %v985_v39  ;;  %v1323_v3 = vpop.f32.mrf.mxu0  ;;  %v1442_v7 = vmul.f32 %v1395_v2, %v1395_v2  ;;  %v1421_v22 = vsel %vm682_vm5, %v1395_v2, 0.0 }
 0x16f   : > { %v1422_v13 = vadd.f32 %v1421_v22, %v1420_v16 }
 0x170   : > { %1412 = vst.msk [vmem:[%s2119_s22 + $0x8] sm:$0xf] %vm1409_vm0, %v1403_v34  ;;  %v1264_v25 = vadd.f32 %v1248_v33, %v1200_v26  ;;  %v1451_v18 = vsel %vm682_vm5, %v1442_v7, 0.0 }
 0x171   : > { %v1385_v11 = vpop.f32.mrf.mxu1  ;;  %v1452_v54 = vadd.f32 %v1451_v18, %v1450_v27 }
 0x172   : > { %v1339_v37 = vadd.f32 %v1323_v3, %v1264_v25 }
 0x174   : > { %v1396_v8 = vadd.f32 %v1380_v19, %v1339_v37 }
 0x175   : > { %v1187_v60 = vpop.f32.mrf.mxu2  ;;  %v1251_v42 = vpop.f32.mrf.mxu3 }
 0x176   : > { %v1404_v43 = vpack.c.bf16 %v1396_v8, %v1396_v8  ;;  %v1201_v47 = vadd.f32 %v1187_v60, %v988_v38  ;;  %v1326_v41 = vpop.f32.mrf.mxu0  ;;  %v1443_v14 = vmul.f32 %v1396_v8, %v1396_v8  ;;  %v1423_v20 = vsel %vm682_vm5, %v1396_v8, 0.0 }
 0x177   : > { %v1424_v31 = vadd.f32 %v1423_v20, %v1422_v13 }
 0x178   : > { %1413 = vst.msk [vmem:[%s2119_s22 + $0xc] sm:$0xf] %vm1409_vm0, %v1404_v43  ;;  %v1265_v46 = vadd.f32 %v1251_v42, %v1201_v47  ;;  %v1453_v28 = vsel %vm682_vm5, %v1443_v14, 0.0 }
 0x179   : > { %v1388_v24 = vpop.f32.mrf.mxu1  ;;  %v1454_v26 = vadd.f32 %v1453_v28, %v1452_v54 }
 0x17a   : > { %v1340_v4 = vadd.f32 %v1326_v41, %v1265_v46 }
 0x17c   : > { %v1397_v10 = vadd.f32 %v1383_v40, %v1340_v4 }
 0x17d   : > { %v1189_v32 = vpop.f32.mrf.mxu2  ;;  %v1253_v0 = vpop.f32.mrf.mxu3 }
 0x17e   : > { %v1405_v17 = vpack.c.bf16 %v1397_v10, %v1397_v10  ;;  %v1202_v57 = vadd.f32 %v1189_v32, %v990_v62  ;;  %v1328_v48 = vpop.f32.mrf.mxu0  ;;  %v1444_v21 = vmul.f32 %v1397_v10, %v1397_v10  ;;  %v1425_v9 = vsel %vm682_vm5, %v1397_v10, 0.0 }
 0x17f   : > { %v1426_v3 = vadd.f32 %v1425_v9, %v1424_v31 }
 0x180   : > { %1414 = vst.msk [vmem:[%s2119_s22 + $0x10] sm:$0xf] %vm1409_vm0, %v1405_v17  ;;  %v1266_v29 = vadd.f32 %v1253_v0, %v1202_v57  ;;  %v1455_v2 = vsel %vm682_vm5, %v1444_v21, 0.0 }
 0x181   : > { %v1456_v8 = vadd.f32 %v1455_v2, %v1454_v26  ;;  %v1390_v42 = vpop.f32.mrf.mxu1 }
 0x182   : > { %v1341_v53 = vadd.f32 %v1328_v48, %v1266_v29 }
 0x184   : > { %v1398_v1 = vadd.f32 %v1385_v11, %v1341_v53 }
 0x185   : > { %v1192_v58 = vpop.f32.mrf.mxu2  ;;  %v1256_v59 = vpop.f32.mrf.mxu3 }
 0x186   : > { %v1406_v49 = vpack.c.bf16 %v1398_v1, %v1398_v1  ;;  %v1203_v35 = vadd.f32 %v1192_v58, %v993_v55  ;;  %v1331_v50 = vpop.f32.mrf.mxu0  ;;  %v1445_v30 = vmul.f32 %v1398_v1, %v1398_v1  ;;  %v1427_v56 = vsel %vm682_vm5, %v1398_v1, 0.0 }
 0x187   : > { %v1428_v60 = vadd.f32 %v1427_v56, %v1426_v3 }
 0x188   : > { %1415 = vst.msk [vmem:[%s2119_s22 + $0x14] sm:$0xf] %vm1409_vm0, %v1406_v49  ;;  %v1267_v12 = vadd.f32 %v1256_v59, %v1203_v35  ;;  %v1457_v37 = vsel %vm682_vm5, %v1445_v30, 0.0 }
 0x189   : > { %v1458_v41 = vadd.f32 %v1457_v37, %v1456_v8 }
 0x18a   : > { %v1342_v52 = vadd.f32 %v1331_v50, %v1267_v12 }
 0x18c   : > { %v1399_v23 = vadd.f32 %v1388_v24, %v1342_v52 }
 0x18d   : > { %v1194_v5 = vpop.f32.mrf.mxu2  ;;  %v1258_v39 = vpop.f32.mrf.mxu3 }
 0x18e   : > { %v1407_v19 = vpack.c.bf16 %v1399_v23, %v1399_v23  ;;  %v1204_v45 = vadd.f32 %v1194_v5, %v995_v51  ;;  %v1446_v33 = vmul.f32 %v1399_v23, %v1399_v23  ;;  %v1333_v25 = vpop.f32.mrf.mxu0  ;;  %v1429_v38 = vsel %vm682_vm5, %v1399_v23, 0.0 }
 0x18f   : > { %v1430_v46 = vadd.f32 %v1429_v38, %v1428_v60 }
 0x190   : > { %1416 = vst.msk [vmem:[%s2119_s22 + $0x18] sm:$0xf] %vm1409_vm0, %v1407_v19  ;;  %v1268_v34 = vadd.f32 %v1258_v39, %v1204_v45  ;;  %v1459_v43 = vsel %vm682_vm5, %v1446_v33, 0.0 }
 0x191   : > { %v1460_v32 = vadd.f32 %v1459_v43, %v1458_v41 }
 0x192   : > { %v1343_v40 = vadd.f32 %v1333_v25, %v1268_v34 }
 0x194   : > { %v1400_v47 = vadd.f32 %v1390_v42, %v1343_v40 }
 0x196   : > { %v1408_v4 = vpack.c.bf16 %v1400_v47, %v1400_v47  ;;  %v1431_v62 = vsel %vm682_vm5, %v1400_v47, 0.0  ;;  %v1447_v10 = vmul.f32 %v1400_v47, %v1400_v47 }
 0x197   : > { %v1432_v0 = vadd.f32 %v1431_v62, %v1430_v46 }
 0x198   : > { %1417 = vst.msk [vmem:[%s2119_s22 + $0x1c] sm:$0xf] %vm1409_vm0, %v1408_v4  ;;  %v1461_v17 = vsel %vm682_vm5, %v1447_v10, 0.0 }
 0x199   : > { %v1433_v57 = vrot.slane %v1432_v0, 4  ;;  %v1462_v48 = vadd.f32 %v1461_v17, %v1460_v32 }
 0x19b   : > { %v1434_v11 = vadd.f32 %v1433_v57, %v1432_v0  ;;  %v1463_v29 = vrot.slane %v1462_v48, 4 }
 0x19d   : > { %v1435_v53 = vrot.slane %v1434_v11, 2  ;;  %v1464_v55 = vadd.f32 %v1463_v29, %v1462_v48 }
 0x19f   : > { %v1436_v1 = vadd.f32 %v1435_v53, %v1434_v11  ;;  %v1465_v58 = vrot.slane %v1464_v55, 2 }
 0x1a1   : > { %v1437_v59 = vrot.slane %v1436_v1, 1  ;;  %v1466_v61 = vadd.f32 %v1465_v58, %v1464_v55 }
 0x1a3   : > { %v1467_v49 = vrot.slane %v1466_v61, 1  ;;  %v1438_v35 = vadd.f32 %v1437_v59, %v1436_v1 }
 0x1a5   : > { %v1468_v63 = vadd.f32 %v1467_v49, %v1466_v61 }
 0x1a7   : > { %v1471_v50 = vsel %vm581_vm2, %v1438_v35, %v1468_v63 }
 0x1a8   : > { %v1473_v6 = vsel %vm1472_vm10, %v1471_v50, 0.0 }
 0x1a9   : > { %1474 = vst.msk [vmem:[%s235_s26] sm:$0xff] %vm682_vm5, %v1473_v6 }
 0x1aa PF: > { %s16_s18 = sadd.s32 1, %s1659_s18  }
 0x1ab   : > { %p13_p4 = scmp.ge.s32.totalorder %s16_s18, 4  }
 0x1ad   :  { %15 = sbr.rel (!%p13_p4) target bundleno = 1 (0x1), region = 78 }

// kernel: bottleneck_forward.9
= control target key start
LH: loop header
LB: loop body
LE: loop exit
PB: predicated region body
PF: predicated region fallthrough
CT: control target
= control target key end

     0   :  { %vm232_vm0 = vcmask 130048   ;;  %s567_s0 = inlined_call_operand.vmem [shape: bf16[128,16], index: 0, kind: input, shape index: {}]   ;;  %s568_s1 = inlined_call_operand.vmem [shape: bf16[128,16], index: 1, kind: input, shape index: {}]   ;;  %s569_s2 = inlined_call_operand.vmem [shape: f32[1,16], index: 2, kind: input, shape index: {}]   ;;  %s570_s3 = inlined_call_operand.vmem [shape: f32[1,16], index: 3, kind: input, shape index: {}]   ;;  %s571_s4 = inlined_call_operand.vmem [shape: f32[1,16], index: 4, kind: input, shape index: {}]   ;;  %s572_s5 = inlined_call_operand.vmem [shape: f32[1,16], index: 5, kind: input, shape index: {}]   ;;  %s573_s6 = inlined_call_operand.hbm [shape: f32[128,16], index: 6, kind: output, shape index: {}]  }
   0x1   :  { %v268_v0 = vld [vmem:[%s567_s0] sm:$0xff]   ;;  %v331_v12 = vld [vmem:[%s567_s0 + $0x8] sm:$0xff]   ;;  %v332_v18 = vld [vmem:[%s567_s0 + $0x10] sm:$0xff]  }
   0x2   :  { %v422_v1 = vld [vmem:[%s569_s2] ss:$0 sm:$0xff]  ;;  %v269_v2 = vunpack.c.l.bf16 %v268_v0  ;;  %v270_v5 = vunpack.c.h.bf16 %v268_v0  ;;  %v338_v13 = vld [vmem:[%s568_s1 + $0x8] sm:$0xff]   ;;  %v273_v16 = vunpack.c.l.bf16 %v331_v12  ;;  %v339_v19 = vld [vmem:[%s568_s1 + $0x10] sm:$0xff]   ;;  %v274_v22 = vunpack.c.h.bf16 %v331_v12 }
   0x3   :  { %v427_v3 = vld [vmem:[%s570_s3] ss:$0 sm:$0xff]  ;;  %v305_v17 = vunpack.c.l.bf16 %v338_v13  ;;  %v306_v23 = vunpack.c.h.bf16 %v338_v13  ;;  %v277_v30 = vunpack.c.l.bf16 %v332_v18  ;;  %v309_v31 = vunpack.c.l.bf16 %v339_v19 }
   0x4   :  { %v300_v4 = vld [vmem:[%s568_s1] sm:$0xff]   ;;  %v60_v9 = vmul.f32 %v422_v1, %v269_v2  ;;  %v61_v11 = vmul.f32 %v422_v1, %v270_v5  ;;  %v62_v26 = vmul.f32 %v422_v1, %v273_v16  ;;  %v63_v28 = vmul.f32 %v422_v1, %v274_v22 }
   0x5   :  { %v301_v6 = vunpack.c.l.bf16 %v300_v4  ;;  %v435_v7 = vld [vmem:[%s571_s4] ss:$0 sm:$0xff]  ;;  %v302_v8 = vunpack.c.h.bf16 %v300_v4 }
   0x6   :  { %v441_v10 = vld [vmem:[%s572_s5] ss:$0 sm:$0xff]  ;;  %v80_v20 = vadd.f32 %v427_v3, %v60_v9  ;;  %v81_v21 = vadd.f32 %v427_v3, %v61_v11  ;;  %v134_v27 = vmul.f32 %v435_v7, %v305_v17  ;;  %v135_v29 = vmul.f32 %v435_v7, %v306_v23 }
   0x7   :  { %v132_v14 = vmul.f32 %v435_v7, %v301_v6  ;;  %v133_v15 = vmul.f32 %v435_v7, %v302_v8  ;;  %v82_v34 = vadd.f32 %v427_v3, %v62_v26 }
   0x8   :  { %v154_v35 = vadd.f32 %v441_v10, %v134_v27 }
   0x9   :  { %v152_v24 = vadd.f32 %v441_v10, %v132_v14  ;;  %v153_v25 = vadd.f32 %v441_v10, %v133_v15 }
   0xb   :  { %v168_v32 = vadd.f32 %v152_v24, %v80_v20  ;;  %v169_v33 = vadd.f32 %v153_v25, %v81_v21 }
   0xc   :  { %11 = vsyncpa [#allocation3], 0  ;;  %v83_v36 = vadd.f32 %v427_v3, %v63_v28  ;;  %v155_v37 = vadd.f32 %v441_v10, %v135_v29  ;;  %v64_v38 = vmul.f32 %v422_v1, %v277_v30  ;;  %v136_v39 = vmul.f32 %v435_v7, %v309_v31  ;;  %v333_v46 = vld [vmem:[%s567_s0 + $0x18] sm:$0xff]   ;;  %v334_v61 = vld [vmem:[%s567_s0 + $0x20] sm:$0xff]   ;;  %s255_s9 = sshll.u32 %s573_s6, 4  ;;  %s379_s10 = smov 128   ;;  %s256_s9 = int_to_ptr.hbm [resolvable:$true] %s255_s9 }
   0xd   :  { %vm184_vm1 = vcmp.ge.f32.partialorder %v168_v32, 0.0  ;;  %v200_v40 = vmul.f32 0.01, %v168_v32  ;;  %vm185_vm2 = vcmp.ge.f32.partialorder %v169_v33, 0.0  ;;  %v201_v41 = vmul.f32 0.01, %v169_v33 }
   0xe   :  { %v170_v42 = vadd.f32 %v154_v35, %v82_v34  ;;  %v171_v43 = vadd.f32 %v155_v37, %v83_v36  ;;  %v84_v44 = vadd.f32 %v427_v3, %v64_v38  ;;  %v156_v45 = vadd.f32 %v441_v10, %v136_v39  ;;  %v340_v51 = vld [vmem:[%s568_s1 + $0x18] sm:$0xff]   ;;  %v341_v62 = vld [vmem:[%s568_s1 + $0x20] sm:$0xff]   ;;  %v335_v26 = vld [vmem:[%s567_s0 + $0x28] sm:$0xff]   ;;  %s380_s4 = smov 8  }
   0xf   :  { %v216_v47 = vsel %vm184_vm1, %v168_v32, %v200_v40  ;;  %v217_v48 = vsel %vm185_vm2, %v169_v33, %v201_v41  ;;  %v278_v49 = vunpack.c.h.bf16 %v332_v18  ;;  %v310_v50 = vunpack.c.h.bf16 %v339_v19  ;;  %v342_v27 = vld [vmem:[%s568_s1 + $0x28] sm:$0xff]  }
  0x10   :  { %233 = vst.msk [vmem:[#allocation2] sm:$0xff] %vm232_vm0, %v216_v47  ;;  %vm186_vm3 = vcmp.ge.f32.partialorder %v170_v42, 0.0  ;;  %v202_v52 = vmul.f32 0.01, %v170_v42  ;;  %vm187_vm4 = vcmp.ge.f32.partialorder %v171_v43, 0.0  ;;  %v172_v53 = vadd.f32 %v156_v45, %v84_v44 }
  0x11   :  { %234 = vst.msk [vmem:[#allocation2 + $0x8] sm:$0xff] %vm232_vm0, %v217_v48  ;;  %v203_v54 = vmul.f32 0.01, %v171_v43  ;;  %v65_v55 = vmul.f32 %v422_v1, %v278_v49  ;;  %v137_v56 = vmul.f32 %v435_v7, %v310_v50  ;;  %v281_v57 = vunpack.c.l.bf16 %v333_v46 }
  0x12   :  { %v218_v58 = vsel %vm186_vm3, %v170_v42, %v202_v52  ;;  %vm188_vm5 = vcmp.ge.f32.partialorder %v172_v53, 0.0  ;;  %v204_v59 = vmul.f32 0.01, %v172_v53  ;;  %v313_v60 = vunpack.c.l.bf16 %v340_v51  ;;  %v336_v42 = vld [vmem:[%s567_s0 + $0x30] sm:$0xff]  }
  0x13   :  { %235 = vst.msk [vmem:[#allocation2 + $0x10] sm:$0xff] %vm232_vm0, %v218_v58  ;;  %v219_v63 = vsel %vm187_vm4, %v171_v43, %v203_v54  ;;  %v85_v0 = vadd.f32 %v427_v3, %v65_v55  ;;  %v157_v2 = vadd.f32 %v441_v10, %v137_v56  ;;  %v66_v4 = vmul.f32 %v422_v1, %v281_v57 }
  0x14   :  { %236 = vst.msk [vmem:[#allocation2 + $0x18] sm:$0xff] %vm232_vm0, %v219_v63  ;;  %v220_v5 = vsel %vm188_vm5, %v172_v53, %v204_v59  ;;  %v138_v6 = vmul.f32 %v435_v7, %v313_v60  ;;  %v282_v8 = vunpack.c.h.bf16 %v333_v46  ;;  %v314_v9 = vunpack.c.h.bf16 %v340_v51  ;;  %v343_v46 = vld [vmem:[%s568_s1 + $0x30] sm:$0xff]   ;;  %v337_v59 = vld [vmem:[%s567_s0 + $0x38] sm:$0xff]   ;;  %s378_s0 = smov [#allocation2]  }
  0x15   :  { %237 = vst.msk [vmem:[#allocation2 + $0x20] sm:$0xff] %vm232_vm0, %v220_v5  ;;  %v173_v11 = vadd.f32 %v157_v2, %v85_v0  ;;  %v86_v12 = vadd.f32 %v427_v3, %v66_v4  ;;  %v285_v13 = vunpack.c.l.bf16 %v334_v61  ;;  %v317_v14 = vunpack.c.l.bf16 %v341_v62  ;;  %v344_v5 = vld [vmem:[%s568_s1 + $0x38] sm:$0xff]   ;;  %s253_s1 = sshll.u32 %s378_s0, 4  ;;  %s254_s1 = int_to_ptr.vmem [resolvable:$true] %s253_s1 }
  0x16   :  { %v158_v15 = vadd.f32 %v441_v10, %v138_v6  ;;  %v67_v16 = vmul.f32 %v422_v1, %v282_v8  ;;  %v139_v17 = vmul.f32 %v435_v7, %v314_v9  ;;  %v286_v18 = vunpack.c.h.bf16 %v334_v61 }
  0x17   :  { %vm189_vm6 = vcmp.ge.f32.partialorder %v173_v11, 0.0  ;;  %v205_v19 = vmul.f32 0.01, %v173_v11  ;;  %v68_v20 = vmul.f32 %v422_v1, %v285_v13  ;;  %v140_v21 = vmul.f32 %v435_v7, %v317_v14 }
  0x18   :  { %v174_v22 = vadd.f32 %v158_v15, %v86_v12  ;;  %v87_v23 = vadd.f32 %v427_v3, %v67_v16  ;;  %v159_v24 = vadd.f32 %v441_v10, %v139_v17  ;;  %v69_v25 = vmul.f32 %v422_v1, %v286_v18 }
  0x19   :  { %v221_v28 = vsel %vm189_vm6, %v173_v11, %v205_v19  ;;  %v88_v29 = vadd.f32 %v427_v3, %v68_v20  ;;  %v160_v30 = vadd.f32 %v441_v10, %v140_v21  ;;  %v318_v31 = vunpack.c.h.bf16 %v341_v62 }
  0x1a   :  { %238 = vst.msk [vmem:[#allocation2 + $0x28] sm:$0xff] %vm232_vm0, %v221_v28  ;;  %vm190_vm7 = vcmp.ge.f32.partialorder %v174_v22, 0.0  ;;  %v206_v32 = vmul.f32 0.01, %v174_v22  ;;  %v175_v33 = vadd.f32 %v159_v24, %v87_v23  ;;  %v89_v34 = vadd.f32 %v427_v3, %v69_v25 }
  0x1b   :  { %v176_v35 = vadd.f32 %v160_v30, %v88_v29  ;;  %v141_v36 = vmul.f32 %v435_v7, %v318_v31  ;;  %v289_v37 = vunpack.c.l.bf16 %v335_v26  ;;  %v321_v38 = vunpack.c.l.bf16 %v342_v27 }
  0x1c   :  { %v222_v39 = vsel %vm190_vm7, %v174_v22, %v206_v32  ;;  %vm191_vm8 = vcmp.ge.f32.partialorder %v175_v33, 0.0  ;;  %v207_v40 = vmul.f32 0.01, %v175_v33  ;;  %v290_v41 = vunpack.c.h.bf16 %v335_v26 }
  0x1d   :  { %239 = vst.msk [vmem:[#allocation2 + $0x30] sm:$0xff] %vm232_vm0, %v222_v39  ;;  %vm192_vm9 = vcmp.ge.f32.partialorder %v176_v35, 0.0  ;;  %v208_v43 = vmul.f32 0.01, %v176_v35  ;;  %v161_v44 = vadd.f32 %v441_v10, %v141_v36  ;;  %v70_v45 = vmul.f32 %v422_v1, %v289_v37 }
  0x1e   :  { %v223_v47 = vsel %vm191_vm8, %v175_v33, %v207_v40  ;;  %v142_v48 = vmul.f32 %v435_v7, %v321_v38  ;;  %v71_v49 = vmul.f32 %v422_v1, %v290_v41  ;;  %v322_v50 = vunpack.c.h.bf16 %v342_v27 }
  0x1f   :  { %240 = vst.msk [vmem:[#allocation2 + $0x38] sm:$0xff] %vm232_vm0, %v223_v47  ;;  %v224_v51 = vsel %vm192_vm9, %v176_v35, %v208_v43  ;;  %v177_v52 = vadd.f32 %v161_v44, %v89_v34  ;;  %v90_v53 = vadd.f32 %v427_v3, %v70_v45  ;;  %v293_v54 = vunpack.c.l.bf16 %v336_v42 }
  0x20   :  { %241 = vst.msk [vmem:[#allocation2 + $0x40] sm:$0xff] %vm232_vm0, %v224_v51  ;;  %v162_v55 = vadd.f32 %v441_v10, %v142_v48  ;;  %v91_v56 = vadd.f32 %v427_v3, %v71_v49  ;;  %v143_v57 = vmul.f32 %v435_v7, %v322_v50  ;;  %v325_v58 = vunpack.c.l.bf16 %v343_v46 }
  0x21   :  { %vm193_vm10 = vcmp.ge.f32.partialorder %v177_v52, 0.0  ;;  %v209_v60 = vmul.f32 0.01, %v177_v52  ;;  %v72_v61 = vmul.f32 %v422_v1, %v293_v54  ;;  %v294_v62 = vunpack.c.h.bf16 %v336_v42 }
  0x22   :  { %v178_v63 = vadd.f32 %v162_v55, %v90_v53  ;;  %v163_v0 = vadd.f32 %v441_v10, %v143_v57  ;;  %v144_v2 = vmul.f32 %v435_v7, %v325_v58  ;;  %v326_v4 = vunpack.c.h.bf16 %v343_v46 }
  0x23   :  { %v225_v6 = vsel %vm193_vm10, %v177_v52, %v209_v60  ;;  %v92_v8 = vadd.f32 %v427_v3, %v72_v61  ;;  %v73_v9 = vmul.f32 %v422_v1, %v294_v62  ;;  %v297_v11 = vunpack.c.l.bf16 %v337_v59 }
  0x24   :  { %242 = vst.msk [vmem:[#allocation2 + $0x48] sm:$0xff] %vm232_vm0, %v225_v6  ;;  %vm194_vm11 = vcmp.ge.f32.partialorder %v178_v63, 0.0  ;;  %v210_v12 = vmul.f32 0.01, %v178_v63  ;;  %v179_v13 = vadd.f32 %v163_v0, %v91_v56  ;;  %v164_v14 = vadd.f32 %v441_v10, %v144_v2 }
  0x25   :  { %v93_v15 = vadd.f32 %v427_v3, %v73_v9  ;;  %v145_v16 = vmul.f32 %v435_v7, %v326_v4  ;;  %v74_v17 = vmul.f32 %v422_v1, %v297_v11  ;;  %v329_v18 = vunpack.c.l.bf16 %v344_v5 }
  0x26   :  { %v226_v19 = vsel %vm194_vm11, %v178_v63, %v210_v12  ;;  %vm195_vm12 = vcmp.ge.f32.partialorder %v179_v13, 0.0  ;;  %v211_v20 = vmul.f32 0.01, %v179_v13  ;;  %v180_v21 = vadd.f32 %v164_v14, %v92_v8 }
  0x27   :  { %243 = vst.msk [vmem:[#allocation2 + $0x50] sm:$0xff] %vm232_vm0, %v226_v19  ;;  %v165_v22 = vadd.f32 %v441_v10, %v145_v16  ;;  %v94_v23 = vadd.f32 %v427_v3, %v74_v17  ;;  %v146_v24 = vmul.f32 %v435_v7, %v329_v18  ;;  %v298_v25 = vunpack.c.h.bf16 %v337_v59 }
  0x28   :  { %v227_v26 = vsel %vm195_vm12, %v179_v13, %v211_v20  ;;  %vm196_vm13 = vcmp.ge.f32.partialorder %v180_v21, 0.0  ;;  %v212_v27 = vmul.f32 0.01, %v180_v21  ;;  %v330_v28 = vunpack.c.h.bf16 %v344_v5 }
  0x29   :  { %244 = vst.msk [vmem:[#allocation2 + $0x58] sm:$0xff] %vm232_vm0, %v227_v26  ;;  %v181_v29 = vadd.f32 %v165_v22, %v93_v15  ;;  %v166_v30 = vadd.f32 %v441_v10, %v146_v24  ;;  %v75_v31 = vmul.f32 %v422_v1, %v298_v25 }
  0x2a   :  { %v228_v32 = vsel %vm196_vm13, %v180_v21, %v212_v27  ;;  %v147_v33 = vmul.f32 %v435_v7, %v330_v28 }
  0x2b   :  { %245 = vst.msk [vmem:[#allocation2 + $0x60] sm:$0xff] %vm232_vm0, %v228_v32  ;;  %vm197_vm14 = vcmp.ge.f32.partialorder %v181_v29, 0.0  ;;  %v213_v34 = vmul.f32 0.01, %v181_v29  ;;  %v182_v35 = vadd.f32 %v166_v30, %v94_v23  ;;  %v95_v36 = vadd.f32 %v427_v3, %v75_v31 }
  0x2c   :  { %v167_v37 = vadd.f32 %v441_v10, %v147_v33 }
  0x2d   :  { %v229_v38 = vsel %vm197_vm14, %v181_v29, %v213_v34  ;;  %vm198_vm15 = vcmp.ge.f32.partialorder %v182_v35, 0.0  ;;  %v214_v39 = vmul.f32 0.01, %v182_v35 }
  0x2e   :  { %246 = vst.msk [vmem:[#allocation2 + $0x68] sm:$0xff] %vm232_vm0, %v229_v38  ;;  %v183_v1 = vadd.f32 %v167_v37, %v95_v36 }
  0x2f   :  { %v230_v7 = vsel %vm198_vm15, %v182_v35, %v214_v39 }
  0x30   :  { %247 = vst.msk [vmem:[#allocation2 + $0x70] sm:$0xff] %vm232_vm0, %v230_v7  ;;  %vm199_vm1 = vcmp.ge.f32.partialorder %v183_v1, 0.0  ;;  %v215_v40 = vmul.f32 0.01, %v183_v1 }
  0x32   :  { %v231_v3 = vsel %vm199_vm1, %v183_v1, %v215_v40 }
  0x33   :  { %248 = vst.msk [vmem:[#allocation2 + $0x78] sm:$0xff] %vm232_vm0, %v231_v3 }
  0x34   :  { %261 = dma.vmem_to_hbm [thread:$0]  %s254_s1, 2048, %s256_s9, [#allocation3], %s379_s10, %s379_s10, %s380_s4  }
  0x35   :  { %376 = dma.done.wait [#allocation3], 2048  }
  0x36   :  { %377 = vsyncadd [#allocation3], 4294965248 }
  0x37   :  { %266 = vsyncpa [#allocation3], 1 }

</bundles_post_ra>
